<compile_context>
chip_gen: v7x
topology: tpu7x:2x2x1
jax: 0.10.0
libtpu: 0.0.40
codegen_flags: <defaults>
</compile_context>

<pallas_src>
import jax
import jax.numpy as jnp
from jax.experimental import pallas as pl
from jax.experimental.pallas import tpu as pltpu


def _vmem_spec():
    return pl.BlockSpec(memory_space=pltpu.MemorySpace.VMEM)


# ----------------------------- Pallas kernels ------------------------------ #

def _conv_bn_relu_pool_kernel(p0, p1, p2, p3, w_ref, s_ref, b_ref, o_ref):
    """Fused conv(as matmul) + folded-BN affine + 2x2 maxpool + ReLU.

    p0..p3: (M, K) bf16 patch matrices, one per 2x2-pool window position,
            rows ordered (n, i, j) over the pooled output grid.
    w_ref : (K, Cout) bf16 folded conv weights.
    s_ref, b_ref: (1, Cout) f32 folded BN scale / (conv-bias+BN) bias.
    o_ref : (M, Cout) bf16 pooled activation.
    """
    w = w_ref[...]
    s = s_ref[...]
    b = b_ref[...]

    def win(p_ref):
        z = jnp.dot(p_ref[...], w, preferred_element_type=jnp.float32)
        return z * s + b

    m = jnp.maximum(jnp.maximum(win(p0), win(p1)), jnp.maximum(win(p2), win(p3)))
    # relu(max(.)) == max(relu(.)) since ReLU is monotone.
    o_ref[...] = jnp.maximum(m, 0.0).astype(jnp.bfloat16)


def conv_bn_relu_pool(patches, w_col, scale, bias):
    m = patches[0].shape[0]
    cout = w_col.shape[1]
    return pl.pallas_call(
        _conv_bn_relu_pool_kernel,
        out_shape=jax.ShapeDtypeStruct((m, cout), jnp.bfloat16),
        in_specs=[_vmem_spec()] * 7,
        out_specs=_vmem_spec(),
    )(*patches, w_col, scale, bias)


def _mlp_head_kernel(x_ref, w1_ref, b1_ref, w2_ref, b2_ref, o_ref):
    """fc1 + ReLU (+ eval-mode Dropout = identity) + fc2, fully in VMEM."""
    h = jnp.dot(x_ref[...], w1_ref[...], preferred_element_type=jnp.float32)
    h = jnp.maximum(h + b1_ref[...], 0.0).astype(jnp.bfloat16)
    o_ref[...] = (
        jnp.dot(h, w2_ref[...], preferred_element_type=jnp.float32) + b2_ref[...]
    )


def mlp_head(feat, w1, b1, w2, b2):
    n = feat.shape[0]
    nout = w2.shape[1]
    return pl.pallas_call(
        _mlp_head_kernel,
        out_shape=jax.ShapeDtypeStruct((n, nout), jnp.float32),
        in_specs=[_vmem_spec()] * 5,
        out_specs=_vmem_spec(),
    )(feat, w1, b1, w2, b2)


# ------------------------------- JAX glue ---------------------------------- #

def pool_window_patches(x):
    """x: (N, H, W, C) NHWC -> 4 arrays of shape (N*hp*wp, 9*C).

    One patch matrix per 2x2-maxpool window position (py, px); rows ordered
    (n, i, j) over the pooled grid, columns ordered (ky, kx, c) to match the
    (2, 3, 1, 0)-transposed conv weights.
    """
    n, h, w, c = x.shape
    ho, wo = h - 2, w - 2
    assert ho % 2 == 0 and wo % 2 == 0, "pooled dims must be even"
    hp, wp = ho // 2, wo // 2
    groups = []
    for py in range(2):
        for px in range(2):
            taps = [
                x[:, py + ky::2, px + kx::2, :][:, :hp, :wp, :]
                for ky in range(3) for kx in range(3)
            ]
            t = jnp.stack(taps, axis=3)                  # (N, hp, wp, 9, C)
            groups.append(t.reshape(n * hp * wp, 9 * c))
    return groups, n, hp, wp


def init_params(key):
    eps = 1e-5

    def conv_block(k, cin, cout, cin_pad=None):
        cin_pad = cin if cin_pad is None else cin_pad
        k1, k2, k3, k4, k5, k6 = jax.random.split(k, 6)
        w = jax.random.normal(k1, (cout, cin, 3, 3), jnp.float32) * 0.05  # torch layout
        b = jax.random.normal(k2, (cout,), jnp.float32) * 0.05
        gamma = jax.random.uniform(k3, (cout,), jnp.float32, 0.5, 1.5)
        beta = jax.random.normal(k4, (cout,), jnp.float32) * 0.05
        mean = jax.random.normal(k5, (cout,), jnp.float32) * 0.05
        var = jax.random.uniform(k6, (cout,), jnp.float32, 0.5, 1.5)
        s = gamma / jnp.sqrt(var + eps)
        if cin_pad != cin:                                # pad K at param-prep time
            w = jnp.pad(w, ((0, 0), (0, cin_pad - cin), (0, 0), (0, 0)))
        # W_col[(ky, kx, cin), cout] matches the patch (ky, kx, c) ordering.
        w_col = jnp.transpose(w, (2, 3, 1, 0)).reshape(9 * cin_pad, cout)
        eff_bias = (b - mean) * s + beta                  # fold conv bias + BN
        return (w_col.astype(jnp.bfloat16),
                s.reshape(1, cout).astype(jnp.float32),
                eff_bias.reshape(1, cout).astype(jnp.float32))

    def fc_params(ka, kb):
        k1, k2 = jax.random.split(ka)
        k3, k4 = jax.random.split(kb)
        w1 = jax.random.normal(k1, (128, 256), jnp.float32) * 0.05   # torch [out, in]
        b1 = jax.random.normal(k2, (128,), jnp.float32) * 0.05
        w2 = jax.random.normal(k3, (24, 128), jnp.float32) * 0.05
        b2 = jax.random.normal(k4, (24,), jnp.float32) * 0.05
        # Fold the PyTorch NCHW flatten into fc1: permute its input dims from
        # (c, i, j) order to the NHWC (i, j, c) order produced by the conv3 kernel.
        w1p = jnp.transpose(w1.reshape(128, 64, 2, 2), (2, 3, 1, 0)).reshape(256, 128)
        return (w1p.astype(jnp.bfloat16), b1.reshape(1, 128),
                jnp.transpose(w2).astype(jnp.bfloat16), b2.reshape(1, 24))

    kc1, kc2, kc3, kf1, kf2 = jax.random.split(key, 5)
    return {
        "conv1": conv_block(kc1, 3, 64, cin_pad=8),
        "conv2": conv_block(kc2, 64, 64),
        "conv3": conv_block(kc3, 64, 64),
        "fc": fc_params(kf1, kf2),
    }


def forward(x_nchw, params):
    n, c, h, w = x_nchw.shape
    assert (c, h, w) == (3, 30, 30), "Network requires 3x30x30 inputs (-> 256 feats)"
    # NCHW -> NHWC, zero-pad channels 3 -> 8, bf16 for the MXU (f32 accumulate).
    x = jnp.transpose(x_nchw, (0, 2, 3, 1)).astype(jnp.float32)
    x = jnp.pad(x, ((0, 0), (0, 0), (0, 0), (0, 8 - c))).astype(jnp.bfloat16)

    for name in ("conv1", "conv2", "conv3"):
        w_col, s, b = params[name]
        patches, n_, hp, wp = pool_window_patches(x)
        # Dropout2d(0.1) after conv2 is identity in eval mode.
        y = conv_bn_relu_pool(patches, w_col, s, b)      # (N*hp*wp, 64) bf16
        x = y.reshape(n_, hp, wp, w_col.shape[1])        # free contiguous reshape

    # (N, 2, 2, 64) -> (N, 256): contiguous NHWC flatten; fc1 weights were
    # pre-permuted in init_params, so no runtime transpose is needed.
    feat = x.reshape(n, 2 * 2 * 64)

    w1, b1, w2, b2 = params["fc"]
    # Dropout(0.3) between fc1 and fc2 is identity in eval mode.
    return mlp_head(feat, w1, b1, w2, b2)


if __name__ == "__main__":
    key = jax.random.PRNGKey(0)
    k_x, k_p = jax.random.split(key)
    # 3x30x30 input -> three (3x3 conv + 2x2 pool) stages -> 64*2*2 = 256 feats,
    # matching nn.Linear(256, 128).
    x = jax.random.normal(k_x, (2, 3, 30, 30), jnp.float32)
    params = init_params(k_p)

    out = jax.jit(forward)(x, params)
    out = jax.block_until_ready(out)
    assert out.shape == (2, 24), out.shape
    print("KERNEL_OK")
</pallas_src>

<mosaic_0001>
module attributes {stable_mosaic.version = 11 : i64} {
  func.func @_conv_bn_relu_pool_kernel(%arg0: memref<392x72xbf16, #tpu.memory_space<vmem>>, %arg1: memref<392x72xbf16, #tpu.memory_space<vmem>>, %arg2: memref<392x72xbf16, #tpu.memory_space<vmem>>, %arg3: memref<392x72xbf16, #tpu.memory_space<vmem>>, %arg4: memref<72x64xbf16, #tpu.memory_space<vmem>>, %arg5: memref<1x64xf32, #tpu.memory_space<vmem>>, %arg6: memref<1x64xf32, #tpu.memory_space<vmem>>, %arg7: memref<392x64xbf16, #tpu.memory_space<vmem>>) attributes {dimension_semantics = [], scalar_prefetch = 0 : i64, scratch_operands = 0 : i64, tpu.core_type = #tpu.core_type<tc>} {
    %c0 = arith.constant 0 : index
    %c0_0 = arith.constant 0 : index
    %0 = vector.load %arg4[%c0, %c0_0] : memref<72x64xbf16, #tpu.memory_space<vmem>>, vector<72x64xbf16>
    %c0_1 = arith.constant 0 : index
    %c0_2 = arith.constant 0 : index
    %1 = vector.load %arg5[%c0_1, %c0_2] : memref<1x64xf32, #tpu.memory_space<vmem>>, vector<1x64xf32>
    %c0_3 = arith.constant 0 : index
    %c0_4 = arith.constant 0 : index
    %2 = vector.load %arg6[%c0_3, %c0_4] : memref<1x64xf32, #tpu.memory_space<vmem>>, vector<1x64xf32>
    %c0_5 = arith.constant 0 : index
    %c0_6 = arith.constant 0 : index
    %3 = vector.load %arg0[%c0_5, %c0_6] : memref<392x72xbf16, #tpu.memory_space<vmem>>, vector<392x72xbf16>
    %cst = arith.constant dense<0.000000e+00> : vector<392x64xf32>
    %4 = tpu.matmul %3, %0, %cst {dimension_numbers = #tpu.dot_dimension_numbers<[1], [0], [0], [1], [0, 0, 1, 1], [], []>} : vector<392x72xbf16>, vector<72x64xbf16>, vector<392x64xf32> -> vector<392x64xf32>
    %5 = vector.broadcast %1 : vector<1x64xf32> to vector<392x64xf32>
    %6 = arith.mulf %4, %5 : vector<392x64xf32>
    %7 = vector.broadcast %2 : vector<1x64xf32> to vector<392x64xf32>
    %8 = arith.addf %6, %7 : vector<392x64xf32>
    %c0_7 = arith.constant 0 : index
    %c0_8 = arith.constant 0 : index
    %9 = vector.load %arg1[%c0_7, %c0_8] : memref<392x72xbf16, #tpu.memory_space<vmem>>, vector<392x72xbf16>
    %cst_9 = arith.constant dense<0.000000e+00> : vector<392x64xf32>
    %10 = tpu.matmul %9, %0, %cst_9 {dimension_numbers = #tpu.dot_dimension_numbers<[1], [0], [0], [1], [0, 0, 1, 1], [], []>} : vector<392x72xbf16>, vector<72x64xbf16>, vector<392x64xf32> -> vector<392x64xf32>
    %11 = vector.broadcast %1 : vector<1x64xf32> to vector<392x64xf32>
    %12 = arith.mulf %10, %11 : vector<392x64xf32>
    %13 = vector.broadcast %2 : vector<1x64xf32> to vector<392x64xf32>
    %14 = arith.addf %12, %13 : vector<392x64xf32>
    %15 = arith.maximumf %8, %14 : vector<392x64xf32>
    %c0_10 = arith.constant 0 : index
    %c0_11 = arith.constant 0 : index
    %16 = vector.load %arg2[%c0_10, %c0_11] : memref<392x72xbf16, #tpu.memory_space<vmem>>, vector<392x72xbf16>
    %cst_12 = arith.constant dense<0.000000e+00> : vector<392x64xf32>
    %17 = tpu.matmul %16, %0, %cst_12 {dimension_numbers = #tpu.dot_dimension_numbers<[1], [0], [0], [1], [0, 0, 1, 1], [], []>} : vector<392x72xbf16>, vector<72x64xbf16>, vector<392x64xf32> -> vector<392x64xf32>
    %18 = vector.broadcast %1 : vector<1x64xf32> to vector<392x64xf32>
    %19 = arith.mulf %17, %18 : vector<392x64xf32>
    %20 = vector.broadcast %2 : vector<1x64xf32> to vector<392x64xf32>
    %21 = arith.addf %19, %20 : vector<392x64xf32>
    %c0_13 = arith.constant 0 : index
    %c0_14 = arith.constant 0 : index
    %22 = vector.load %arg3[%c0_13, %c0_14] : memref<392x72xbf16, #tpu.memory_space<vmem>>, vector<392x72xbf16>
    %cst_15 = arith.constant dense<0.000000e+00> : vector<392x64xf32>
    %23 = tpu.matmul %22, %0, %cst_15 {dimension_numbers = #tpu.dot_dimension_numbers<[1], [0], [0], [1], [0, 0, 1, 1], [], []>} : vector<392x72xbf16>, vector<72x64xbf16>, vector<392x64xf32> -> vector<392x64xf32>
    %24 = vector.broadcast %1 : vector<1x64xf32> to vector<392x64xf32>
    %25 = arith.mulf %23, %24 : vector<392x64xf32>
    %26 = vector.broadcast %2 : vector<1x64xf32> to vector<392x64xf32>
    %27 = arith.addf %25, %26 : vector<392x64xf32>
    %28 = arith.maximumf %21, %27 : vector<392x64xf32>
    %29 = arith.maximumf %15, %28 : vector<392x64xf32>
    %cst_16 = arith.constant 0.000000e+00 : f32
    %30 = vector.broadcast %cst_16 : f32 to vector<392x64xf32>
    %31 = arith.maximumf %29, %30 : vector<392x64xf32>
    %32 = arith.truncf %31 : vector<392x64xf32> to vector<392x64xbf16>
    %c0_17 = arith.constant 0 : index
    %c0_18 = arith.constant 0 : index
    %33 = vector.load %arg7[%c0_17, %c0_18] : memref<392x64xbf16, #tpu.memory_space<vmem>>, vector<392x64xbf16>
    tpu.vector_store %arg7[%c0_17, %c0_18], %32 {strides = array<i32>} : memref<392x64xbf16, #tpu.memory_space<vmem>>, vector<392x64xbf16>,
    return
  }
}

module attributes {stable_mosaic.version = 11 : i64} {
  func.func @_conv_bn_relu_pool_kernel(%arg0: memref<72x576xbf16, #tpu.memory_space<vmem>>, %arg1: memref<72x576xbf16, #tpu.memory_space<vmem>>, %arg2: memref<72x576xbf16, #tpu.memory_space<vmem>>, %arg3: memref<72x576xbf16, #tpu.memory_space<vmem>>, %arg4: memref<576x64xbf16, #tpu.memory_space<vmem>>, %arg5: memref<1x64xf32, #tpu.memory_space<vmem>>, %arg6: memref<1x64xf32, #tpu.memory_space<vmem>>, %arg7: memref<72x64xbf16, #tpu.memory_space<vmem>>) attributes {dimension_semantics = [], scalar_prefetch = 0 : i64, scratch_operands = 0 : i64, tpu.core_type = #tpu.core_type<tc>} {
    %c0 = arith.constant 0 : index
    %c0_0 = arith.constant 0 : index
    %0 = vector.load %arg4[%c0, %c0_0] : memref<576x64xbf16, #tpu.memory_space<vmem>>, vector<576x64xbf16>
    %c0_1 = arith.constant 0 : index
    %c0_2 = arith.constant 0 : index
    %1 = vector.load %arg5[%c0_1, %c0_2] : memref<1x64xf32, #tpu.memory_space<vmem>>, vector<1x64xf32>
    %c0_3 = arith.constant 0 : index
    %c0_4 = arith.constant 0 : index
    %2 = vector.load %arg6[%c0_3, %c0_4] : memref<1x64xf32, #tpu.memory_space<vmem>>, vector<1x64xf32>
    %c0_5 = arith.constant 0 : index
    %c0_6 = arith.constant 0 : index
    %3 = vector.load %arg0[%c0_5, %c0_6] : memref<72x576xbf16, #tpu.memory_space<vmem>>, vector<72x576xbf16>
    %cst = arith.constant dense<0.000000e+00> : vector<72x64xf32>
    %4 = tpu.matmul %3, %0, %cst {dimension_numbers = #tpu.dot_dimension_numbers<[1], [0], [0], [1], [0, 0, 1, 1], [], []>} : vector<72x576xbf16>, vector<576x64xbf16>, vector<72x64xf32> -> vector<72x64xf32>
    %5 = vector.broadcast %1 : vector<1x64xf32> to vector<72x64xf32>
    %6 = arith.mulf %4, %5 : vector<72x64xf32>
    %7 = vector.broadcast %2 : vector<1x64xf32> to vector<72x64xf32>
    %8 = arith.addf %6, %7 : vector<72x64xf32>
    %c0_7 = arith.constant 0 : index
    %c0_8 = arith.constant 0 : index
    %9 = vector.load %arg1[%c0_7, %c0_8] : memref<72x576xbf16, #tpu.memory_space<vmem>>, vector<72x576xbf16>
    %cst_9 = arith.constant dense<0.000000e+00> : vector<72x64xf32>
    %10 = tpu.matmul %9, %0, %cst_9 {dimension_numbers = #tpu.dot_dimension_numbers<[1], [0], [0], [1], [0, 0, 1, 1], [], []>} : vector<72x576xbf16>, vector<576x64xbf16>, vector<72x64xf32> -> vector<72x64xf32>
    %11 = vector.broadcast %1 : vector<1x64xf32> to vector<72x64xf32>
    %12 = arith.mulf %10, %11 : vector<72x64xf32>
    %13 = vector.broadcast %2 : vector<1x64xf32> to vector<72x64xf32>
    %14 = arith.addf %12, %13 : vector<72x64xf32>
    %15 = arith.maximumf %8, %14 : vector<72x64xf32>
    %c0_10 = arith.constant 0 : index
    %c0_11 = arith.constant 0 : index
    %16 = vector.load %arg2[%c0_10, %c0_11] : memref<72x576xbf16, #tpu.memory_space<vmem>>, vector<72x576xbf16>
    %cst_12 = arith.constant dense<0.000000e+00> : vector<72x64xf32>
    %17 = tpu.matmul %16, %0, %cst_12 {dimension_numbers = #tpu.dot_dimension_numbers<[1], [0], [0], [1], [0, 0, 1, 1], [], []>} : vector<72x576xbf16>, vector<576x64xbf16>, vector<72x64xf32> -> vector<72x64xf32>
    %18 = vector.broadcast %1 : vector<1x64xf32> to vector<72x64xf32>
    %19 = arith.mulf %17, %18 : vector<72x64xf32>
    %20 = vector.broadcast %2 : vector<1x64xf32> to vector<72x64xf32>
    %21 = arith.addf %19, %20 : vector<72x64xf32>
    %c0_13 = arith.constant 0 : index
    %c0_14 = arith.constant 0 : index
    %22 = vector.load %arg3[%c0_13, %c0_14] : memref<72x576xbf16, #tpu.memory_space<vmem>>, vector<72x576xbf16>
    %cst_15 = arith.constant dense<0.000000e+00> : vector<72x64xf32>
    %23 = tpu.matmul %22, %0, %cst_15 {dimension_numbers = #tpu.dot_dimension_numbers<[1], [0], [0], [1], [0, 0, 1, 1], [], []>} : vector<72x576xbf16>, vector<576x64xbf16>, vector<72x64xf32> -> vector<72x64xf32>
    %24 = vector.broadcast %1 : vector<1x64xf32> to vector<72x64xf32>
    %25 = arith.mulf %23, %24 : vector<72x64xf32>
    %26 = vector.broadcast %2 : vector<1x64xf32> to vector<72x64xf32>
    %27 = arith.addf %25, %26 : vector<72x64xf32>
    %28 = arith.maximumf %21, %27 : vector<72x64xf32>
    %29 = arith.maximumf %15, %28 : vector<72x64xf32>
    %cst_16 = arith.constant 0.000000e+00 : f32
    %30 = vector.broadcast %cst_16 : f32 to vector<72x64xf32>
    %31 = arith.maximumf %29, %30 : vector<72x64xf32>
    %32 = arith.truncf %31 : vector<72x64xf32> to vector<72x64xbf16>
    %c0_17 = arith.constant 0 : index
    %c0_18 = arith.constant 0 : index
    %33 = vector.load %arg7[%c0_17, %c0_18] : memref<72x64xbf16, #tpu.memory_space<vmem>>, vector<72x64xbf16>
    tpu.vector_store %arg7[%c0_17, %c0_18], %32 {strides = array<i32>} : memref<72x64xbf16, #tpu.memory_space<vmem>>, vector<72x64xbf16>,
    return
  }
}

module attributes {stable_mosaic.version = 11 : i64} {
  func.func @_conv_bn_relu_pool_kernel(%arg0: memref<8x576xbf16, #tpu.memory_space<vmem>>, %arg1: memref<8x576xbf16, #tpu.memory_space<vmem>>, %arg2: memref<8x576xbf16, #tpu.memory_space<vmem>>, %arg3: memref<8x576xbf16, #tpu.memory_space<vmem>>, %arg4: memref<576x64xbf16, #tpu.memory_space<vmem>>, %arg5: memref<1x64xf32, #tpu.memory_space<vmem>>, %arg6: memref<1x64xf32, #tpu.memory_space<vmem>>, %arg7: memref<8x64xbf16, #tpu.memory_space<vmem>>) attributes {dimension_semantics = [], scalar_prefetch = 0 : i64, scratch_operands = 0 : i64, tpu.core_type = #tpu.core_type<tc>} {
    %c0 = arith.constant 0 : index
    %c0_0 = arith.constant 0 : index
    %0 = vector.load %arg4[%c0, %c0_0] : memref<576x64xbf16, #tpu.memory_space<vmem>>, vector<576x64xbf16>
    %c0_1 = arith.constant 0 : index
    %c0_2 = arith.constant 0 : index
    %1 = vector.load %arg5[%c0_1, %c0_2] : memref<1x64xf32, #tpu.memory_space<vmem>>, vector<1x64xf32>
    %c0_3 = arith.constant 0 : index
    %c0_4 = arith.constant 0 : index
    %2 = vector.load %arg6[%c0_3, %c0_4] : memref<1x64xf32, #tpu.memory_space<vmem>>, vector<1x64xf32>
    %c0_5 = arith.constant 0 : index
    %c0_6 = arith.constant 0 : index
    %3 = vector.load %arg0[%c0_5, %c0_6] : memref<8x576xbf16, #tpu.memory_space<vmem>>, vector<8x576xbf16>
    %cst = arith.constant dense<0.000000e+00> : vector<8x64xf32>
    %4 = tpu.matmul %3, %0, %cst {dimension_numbers = #tpu.dot_dimension_numbers<[1], [0], [0], [1], [0, 0, 1, 1], [], []>} : vector<8x576xbf16>, vector<576x64xbf16>, vector<8x64xf32> -> vector<8x64xf32>
    %5 = vector.broadcast %1 : vector<1x64xf32> to vector<8x64xf32>
    %6 = arith.mulf %4, %5 : vector<8x64xf32>
    %7 = vector.broadcast %2 : vector<1x64xf32> to vector<8x64xf32>
    %8 = arith.addf %6, %7 : vector<8x64xf32>
    %c0_7 = arith.constant 0 : index
    %c0_8 = arith.constant 0 : index
    %9 = vector.load %arg1[%c0_7, %c0_8] : memref<8x576xbf16, #tpu.memory_space<vmem>>, vector<8x576xbf16>
    %cst_9 = arith.constant dense<0.000000e+00> : vector<8x64xf32>
    %10 = tpu.matmul %9, %0, %cst_9 {dimension_numbers = #tpu.dot_dimension_numbers<[1], [0], [0], [1], [0, 0, 1, 1], [], []>} : vector<8x576xbf16>, vector<576x64xbf16>, vector<8x64xf32> -> vector<8x64xf32>
    %11 = vector.broadcast %1 : vector<1x64xf32> to vector<8x64xf32>
    %12 = arith.mulf %10, %11 : vector<8x64xf32>
    %13 = vector.broadcast %2 : vector<1x64xf32> to vector<8x64xf32>
    %14 = arith.addf %12, %13 : vector<8x64xf32>
    %15 = arith.maximumf %8, %14 : vector<8x64xf32>
    %c0_10 = arith.constant 0 : index
    %c0_11 = arith.constant 0 : index
    %16 = vector.load %arg2[%c0_10, %c0_11] : memref<8x576xbf16, #tpu.memory_space<vmem>>, vector<8x576xbf16>
    %cst_12 = arith.constant dense<0.000000e+00> : vector<8x64xf32>
    %17 = tpu.matmul %16, %0, %cst_12 {dimension_numbers = #tpu.dot_dimension_numbers<[1], [0], [0], [1], [0, 0, 1, 1], [], []>} : vector<8x576xbf16>, vector<576x64xbf16>, vector<8x64xf32> -> vector<8x64xf32>
    %18 = vector.broadcast %1 : vector<1x64xf32> to vector<8x64xf32>
    %19 = arith.mulf %17, %18 : vector<8x64xf32>
    %20 = vector.broadcast %2 : vector<1x64xf32> to vector<8x64xf32>
    %21 = arith.addf %19, %20 : vector<8x64xf32>
    %c0_13 = arith.constant 0 : index
    %c0_14 = arith.constant 0 : index
    %22 = vector.load %arg3[%c0_13, %c0_14] : memref<8x576xbf16, #tpu.memory_space<vmem>>, vector<8x576xbf16>
    %cst_15 = arith.constant dense<0.000000e+00> : vector<8x64xf32>
    %23 = tpu.matmul %22, %0, %cst_15 {dimension_numbers = #tpu.dot_dimension_numbers<[1], [0], [0], [1], [0, 0, 1, 1], [], []>} : vector<8x576xbf16>, vector<576x64xbf16>, vector<8x64xf32> -> vector<8x64xf32>
    %24 = vector.broadcast %1 : vector<1x64xf32> to vector<8x64xf32>
    %25 = arith.mulf %23, %24 : vector<8x64xf32>
    %26 = vector.broadcast %2 : vector<1x64xf32> to vector<8x64xf32>
    %27 = arith.addf %25, %26 : vector<8x64xf32>
    %28 = arith.maximumf %21, %27 : vector<8x64xf32>
    %29 = arith.maximumf %15, %28 : vector<8x64xf32>
    %cst_16 = arith.constant 0.000000e+00 : f32
    %30 = vector.broadcast %cst_16 : f32 to vector<8x64xf32>
    %31 = arith.maximumf %29, %30 : vector<8x64xf32>
    %32 = arith.truncf %31 : vector<8x64xf32> to vector<8x64xbf16>
    %c0_17 = arith.constant 0 : index
    %c0_18 = arith.constant 0 : index
    %33 = vector.load %arg7[%c0_17, %c0_18] : memref<8x64xbf16, #tpu.memory_space<vmem>>, vector<8x64xbf16>
    tpu.vector_store %arg7[%c0_17, %c0_18], %32 {strides = array<i32>} : memref<8x64xbf16, #tpu.memory_space<vmem>>, vector<8x64xbf16>,
    return
  }
}

module attributes {stable_mosaic.version = 11 : i64} {
  func.func @_mlp_head_kernel(%arg0: memref<2x256xbf16, #tpu.memory_space<vmem>>, %arg1: memref<256x128xbf16, #tpu.memory_space<vmem>>, %arg2: memref<1x128xf32, #tpu.memory_space<vmem>>, %arg3: memref<128x24xbf16, #tpu.memory_space<vmem>>, %arg4: memref<1x24xf32, #tpu.memory_space<vmem>>, %arg5: memref<2x24xf32, #tpu.memory_space<vmem>>) attributes {dimension_semantics = [], scalar_prefetch = 0 : i64, scratch_operands = 0 : i64, tpu.core_type = #tpu.core_type<tc>} {
    %c0 = arith.constant 0 : index
    %c0_0 = arith.constant 0 : index
    %0 = vector.load %arg0[%c0, %c0_0] : memref<2x256xbf16, #tpu.memory_space<vmem>>, vector<2x256xbf16>
    %c0_1 = arith.constant 0 : index
    %c0_2 = arith.constant 0 : index
    %1 = vector.load %arg1[%c0_1, %c0_2] : memref<256x128xbf16, #tpu.memory_space<vmem>>, vector<256x128xbf16>
    %cst = arith.constant dense<0.000000e+00> : vector<2x128xf32>
    %2 = tpu.matmul %0, %1, %cst {dimension_numbers = #tpu.dot_dimension_numbers<[1], [0], [0], [1], [0, 0, 1, 1], [], []>} : vector<2x256xbf16>, vector<256x128xbf16>, vector<2x128xf32> -> vector<2x128xf32>
    %c0_3 = arith.constant 0 : index
    %c0_4 = arith.constant 0 : index
    %3 = vector.load %arg2[%c0_3, %c0_4] : memref<1x128xf32, #tpu.memory_space<vmem>>, vector<1x128xf32>
    %4 = vector.broadcast %3 : vector<1x128xf32> to vector<2x128xf32>
    %5 = arith.addf %2, %4 : vector<2x128xf32>
    %cst_5 = arith.constant 0.000000e+00 : f32
    %6 = vector.broadcast %cst_5 : f32 to vector<2x128xf32>
    %7 = arith.maximumf %5, %6 : vector<2x128xf32>
    %8 = arith.truncf %7 : vector<2x128xf32> to vector<2x128xbf16>
    %c0_6 = arith.constant 0 : index
    %c0_7 = arith.constant 0 : index
    %9 = vector.load %arg3[%c0_6, %c0_7] : memref<128x24xbf16, #tpu.memory_space<vmem>>, vector<128x24xbf16>
    %cst_8 = arith.constant dense<0.000000e+00> : vector<2x24xf32>
    %10 = tpu.matmul %8, %9, %cst_8 {dimension_numbers = #tpu.dot_dimension_numbers<[1], [0], [0], [1], [0, 0, 1, 1], [], []>} : vector<2x128xbf16>, vector<128x24xbf16>, vector<2x24xf32> -> vector<2x24xf32>
    %c0_9 = arith.constant 0 : index
    %c0_10 = arith.constant 0 : index
    %11 = vector.load %arg4[%c0_9, %c0_10] : memref<1x24xf32, #tpu.memory_space<vmem>>, vector<1x24xf32>
    %12 = vector.broadcast %11 : vector<1x24xf32> to vector<2x24xf32>
    %13 = arith.addf %10, %12 : vector<2x24xf32>
    %c0_11 = arith.constant 0 : index
    %c0_12 = arith.constant 0 : index
    %14 = vector.load %arg5[%c0_11, %c0_12] : memref<2x24xf32, #tpu.memory_space<vmem>>, vector<2x24xf32>
    tpu.vector_store %arg5[%c0_11, %c0_12], %13 {strides = array<i32>} : memref<2x24xf32, #tpu.memory_space<vmem>>, vector<2x24xf32>,
    return
  }
}

</mosaic_0001>

<bundles_post_ra>
// kernel: forward.4
= control target key start
LH: loop header
LB: loop body
LE: loop exit
PB: predicated region body
PF: predicated region fallthrough
CT: control target
= control target key end

     0   :  { %v5557_v0 = vmov 0.0   ;;  %vm3814_vm0 = vmmov 0   ;;  %vm313_vm1 = vcmask 1043456   ;;  %vm237_vm2 = vcmask 588800   ;;  %s5549_s4 = inlined_call_operand.vmem [shape: bf16[72,64], index: 4, kind: input, shape index: {}]   ;;  %s5550_s0 = inlined_call_operand.vmem [shape: bf16[392,72], index: 0, kind: input, shape index: {}]   ;;  %s5551_s1 = inlined_call_operand.vmem [shape: bf16[392,72], index: 1, kind: input, shape index: {}]   ;;  %s5552_s2 = inlined_call_operand.vmem [shape: bf16[392,72], index: 2, kind: input, shape index: {}]   ;;  %s5553_s3 = inlined_call_operand.vmem [shape: bf16[392,72], index: 3, kind: input, shape index: {}]   ;;  %s5554_s5 = inlined_call_operand.vmem [shape: f32[1,64], index: 5, kind: input, shape index: {}]   ;;  %s5555_s6 = inlined_call_operand.vmem [shape: f32[1,64], index: 6, kind: input, shape index: {}]   ;;  %s5556_s7 = inlined_call_operand.vmem [shape: bf16[392,64], index: 7, kind: output, shape index: {}]  }
   0x1   :  { %3262 = vmatprep.subr.bf16.mxu0 %v5557_v0  ;;  %3372 = vmatprep.subr.bf16.mxu1 %v5557_v0  ;;  %v3704_v1 = vld [vmem:[%s5549_s4] sm:$0xff]   ;;  %v3705_v2 = vld [vmem:[%s5549_s4 + $0x8] sm:$0xff]   ;;  %v3706_v3 = vld [vmem:[%s5549_s4 + $0x10] sm:$0xff]   ;;  %vm2783_vm3 = vcmask 519168  }
   0x2   :  { %3272 = vmatprep.mubr.msk.bf16.mxu0 %vm3814_vm0, %v5557_v0  ;;  %3382 = vmatprep.mubr.msk.bf16.mxu1 %vm3814_vm0, %v5557_v0  ;;  %v3707_v4 = vld [vmem:[%s5549_s4 + $0x18] sm:$0xff]   ;;  %v3708_v5 = vld [vmem:[%s5549_s4 + $0x20] ss:$0 sps:$4 sm:$0xff]   ;;  %v3711_v9 = vld [vmem:[%s5550_s0 + $0x8] sm:$0xff]  }
   0x3   :  { %3263 = vmatpush3.bf16.msra.mxu0 %v3704_v1  ;;  %3373 = vmatpush3.bf16.msra.mxu1 %v3704_v1  ;;  %v315_v6 = vsel %vm313_vm1, %v3708_v5, 0  ;;  %v3709_v7 = vld [vmem:[%s5550_s0] sm:$0xff]   ;;  %v3712_v10 = vld [vmem:[%s5551_s1 + $0x8] sm:$0xff]   ;;  %v3713_v11 = vld [vmem:[%s5550_s0 + $0x10] sm:$0xff]  }
   0x4   :  { %3264 = vmatprep.subr.bf16.mxu0 %v5557_v0  ;;  %3374 = vmatprep.subr.bf16.mxu1 %v5557_v0  ;;  %v3710_v8 = vld [vmem:[%s5551_s1] sm:$0xff]   ;;  %v3714_v12 = vld [vmem:[%s5551_s1 + $0x10] sm:$0xff]   ;;  %v3715_v13 = vld [vmem:[%s5550_s0 + $0x18] sm:$0xff]  }
   0x5   :  { %v3716_v14 = vld [vmem:[%s5551_s1 + $0x18] sm:$0xff]   ;;  %v3717_v15 = vld [vmem:[%s5550_s0 + $0x20] sm:$0xff]   ;;  %v3719_v17 = vld [vmem:[%s5550_s0 + $0x28] sm:$0xff]  }
   0x6   :  { %v3718_v16 = vld [vmem:[%s5551_s1 + $0x20] sm:$0xff]   ;;  %v3720_v18 = vld [vmem:[%s5551_s1 + $0x28] sm:$0xff]   ;;  %v3721_v19 = vld [vmem:[%s5550_s0 + $0x30] sm:$0xff]  }
   0x7   :  { %3265 = vmatpush3.bf16.msra.mxu0 %v3705_v2  ;;  %3375 = vmatpush3.bf16.msra.mxu1 %v3705_v2  ;;  %v3722_v20 = vld [vmem:[%s5551_s1 + $0x30] sm:$0xff]   ;;  %v3723_v21 = vld [vmem:[%s5550_s0 + $0x38] sm:$0xff]   ;;  %v3725_v23 = vld [vmem:[%s5550_s0 + $0x40] sm:$0xff]  }
   0x8   :  { %3266 = vmatprep.subr.bf16.mxu0 %v5557_v0  ;;  %3376 = vmatprep.subr.bf16.mxu1 %v5557_v0  ;;  %v3724_v22 = vld [vmem:[%s5551_s1 + $0x38] sm:$0xff]   ;;  %v3726_v24 = vld [vmem:[%s5551_s1 + $0x40] sm:$0xff]   ;;  %v3727_v25 = vld [vmem:[%s5550_s0 + $0x48] sm:$0xff]  }
   0x9   :  { %v3728_v26 = vld [vmem:[%s5551_s1 + $0x48] sm:$0xff]   ;;  %v3729_v27 = vld [vmem:[%s5550_s0 + $0x50] sm:$0xff]   ;;  %v3731_v29 = vld [vmem:[%s5550_s0 + $0x58] sm:$0xff]  }
   0xa   :  { %v3730_v28 = vld [vmem:[%s5551_s1 + $0x50] sm:$0xff]   ;;  %v3732_v30 = vld [vmem:[%s5551_s1 + $0x58] sm:$0xff]   ;;  %v3733_v31 = vld [vmem:[%s5550_s0 + $0x60] sm:$0xff]  }
   0xb   :  { %3267 = vmatpush3.bf16.msra.mxu0 %v3706_v3  ;;  %3377 = vmatpush3.bf16.msra.mxu1 %v3706_v3  ;;  %v3734_v32 = vld [vmem:[%s5551_s1 + $0x60] sm:$0xff]   ;;  %v3735_v33 = vld [vmem:[%s5550_s0 + $0x68] sm:$0xff]   ;;  %v3737_v35 = vld [vmem:[%s5550_s0 + $0x70] sm:$0xff]  }
   0xc   :  { %3268 = vmatprep.subr.bf16.mxu0 %v5557_v0  ;;  %3378 = vmatprep.subr.bf16.mxu1 %v5557_v0  ;;  %v3736_v34 = vld [vmem:[%s5551_s1 + $0x68] sm:$0xff]   ;;  %v3738_v36 = vld [vmem:[%s5551_s1 + $0x70] sm:$0xff]   ;;  %v3739_v37 = vld [vmem:[%s5550_s0 + $0x78] sm:$0xff]  }
   0xd   :  { %v3740_v38 = vld [vmem:[%s5551_s1 + $0x78] sm:$0xff]   ;;  %v3741_v39 = vld [vmem:[%s5550_s0 + $0x80] sm:$0xff]   ;;  %v3743_v41 = vld [vmem:[%s5550_s0 + $0x88] sm:$0xff]  }
   0xe   :  { %v3742_v40 = vld [vmem:[%s5551_s1 + $0x80] sm:$0xff]   ;;  %v3744_v42 = vld [vmem:[%s5551_s1 + $0x88] sm:$0xff]   ;;  %v3745_v43 = vld [vmem:[%s5550_s0 + $0x90] sm:$0xff]  }
   0xf   :  { %3269 = vmatpush3.bf16.msra.mxu0 %v3707_v4  ;;  %3379 = vmatpush3.bf16.msra.mxu1 %v3707_v4  ;;  %v3746_v44 = vld [vmem:[%s5551_s1 + $0x90] sm:$0xff]   ;;  %v3747_v45 = vld [vmem:[%s5550_s0 + $0x98] sm:$0xff]   ;;  %v3749_v47 = vld [vmem:[%s5550_s0 + $0xa0] sm:$0xff]  }
  0x10   :  { %3270 = vmatprep.subr.bf16.mxu0 %v5557_v0  ;;  %3380 = vmatprep.subr.bf16.mxu1 %v5557_v0  ;;  %v3748_v46 = vld [vmem:[%s5551_s1 + $0x98] sm:$0xff]   ;;  %v3750_v48 = vld [vmem:[%s5551_s1 + $0xa0] sm:$0xff]   ;;  %v3751_v49 = vld [vmem:[%s5550_s0 + $0xa8] sm:$0xff]  }
  0x11   :  { %v3752_v50 = vld [vmem:[%s5551_s1 + $0xa8] sm:$0xff]   ;;  %v3753_v51 = vld [vmem:[%s5550_s0 + $0xb0] sm:$0xff]   ;;  %v3755_v53 = vld [vmem:[%s5550_s0 + $0xb8] sm:$0xff]  }
  0x12   :  { %v3754_v52 = vld [vmem:[%s5551_s1 + $0xb0] sm:$0xff]   ;;  %v3756_v54 = vld [vmem:[%s5551_s1 + $0xb8] sm:$0xff]   ;;  %v3757_v55 = vld [vmem:[%s5550_s0 + $0xc0] ss:$0 sps:$4 sm:$0xff]  }
  0x13   :  { %3271 = vmatpush3.bf16.msra.mxu0 %v315_v6  ;;  %3381 = vmatpush3.bf16.msra.mxu1 %v315_v6  ;;  %v3758_v56 = vld [vmem:[%s5551_s1 + $0xc0] ss:$0 sps:$4 sm:$0xff]   ;;  %v3761_v59 = vld [vmem:[%s5552_s2 + $0x8] sm:$0xff]  }
  0x14   :  { %3482 = vmatprep.subr.bf16.mxu0 %v5557_v0  ;;  %3592 = vmatprep.subr.bf16.mxu1 %v5557_v0  ;;  %v3759_v57 = vld [vmem:[%s5552_s2] sm:$0xff]   ;;  %v3762_v60 = vld [vmem:[%s5553_s3 + $0x8] sm:$0xff]  }
  0x15   :  { %v3760_v58 = vld [vmem:[%s5553_s3] sm:$0xff]  }
  0x16   :  { %3273 = vmatmul.mubr.msk.bf16.vlgmr.msra.gmra.mrb[0].mxu0 %vm237_vm2, %v3709_v7  ;;  %3383 = vmatmul.mubr.msk.bf16.vlgmr.msra.gmra.mrb[0].mxu1 %vm237_vm2, %v3710_v8  ;;  %v4217_v61 = vld [vmem:[%s5554_s5] ss:$0 sm:$0xff]  ;;  %v3764_v7 = vld [vmem:[%s5553_s3 + $0x10] sm:$0xff]  }
  0x17   :  { %3483 = vmatpush3.bf16.msra.mxu0 %v3704_v1  ;;  %3593 = vmatpush3.bf16.msra.mxu1 %v3704_v1  ;;  %v4226_v62 = vld [vmem:[%s5555_s6] ss:$0 sm:$0xff] }
  0x18   :  { %3276 = vmatprep.mubr.msk.bf16.mxu0 %vm3814_vm0, %v5557_v0  ;;  %3386 = vmatprep.mubr.msk.bf16.mxu1 %vm3814_vm0, %v5557_v0 }
  0x19   :  { %3484 = vmatprep.subr.bf16.mxu0 %v5557_v0  ;;  %3594 = vmatprep.subr.bf16.mxu1 %v5557_v0 }
  0x1b   :  { %3485 = vmatpush3.bf16.msra.mxu0 %v3705_v2  ;;  %3595 = vmatpush3.bf16.msra.mxu1 %v3705_v2 }
  0x1c   :  { %3486 = vmatprep.subr.bf16.mxu0 %v5557_v0  ;;  %3596 = vmatprep.subr.bf16.mxu1 %v5557_v0 }
  0x1e   :  { %3277 = vmatmul.mubr.msk.bf16.gmra.mrb[4].mxu0 %vm237_vm2, %v3711_v9  ;;  %3387 = vmatmul.mubr.msk.bf16.gmra.mrb[4].mxu1 %vm237_vm2, %v3712_v10 }
  0x1f   :  { %3280 = vmatprep.mubr.msk.bf16.mxu0 %vm3814_vm0, %v5557_v0  ;;  %3390 = vmatprep.mubr.msk.bf16.mxu1 %vm3814_vm0, %v5557_v0 }
  0x20   :  { %3487 = vmatpush3.bf16.msra.mxu0 %v3706_v3  ;;  %3597 = vmatpush3.bf16.msra.mxu1 %v3706_v3 }
  0x21   :  { %3488 = vmatprep.subr.bf16.mxu0 %v5557_v0  ;;  %3598 = vmatprep.subr.bf16.mxu1 %v5557_v0 }
  0x24   :  { %3489 = vmatpush3.bf16.msra.mxu0 %v3707_v4  ;;  %3599 = vmatpush3.bf16.msra.mxu1 %v3707_v4 }
  0x25   :  { %3490 = vmatprep.subr.bf16.mxu0 %v5557_v0  ;;  %3600 = vmatprep.subr.bf16.mxu1 %v5557_v0 }
  0x26   :  { %3281 = vmatmul.mubr.msk.bf16.gmra.mrb[8].mxu0 %vm237_vm2, %v3713_v11  ;;  %3391 = vmatmul.mubr.msk.bf16.gmra.mrb[8].mxu1 %vm237_vm2, %v3714_v12 }
  0x27   :  { %3284 = vmatprep.mubr.msk.bf16.mxu0 %vm3814_vm0, %v5557_v0  ;;  %3394 = vmatprep.mubr.msk.bf16.mxu1 %vm3814_vm0, %v5557_v0 }
  0x28   :  { %3491 = vmatpush3.bf16.msra.mxu0 %v315_v6  ;;  %3601 = vmatpush3.bf16.msra.mxu1 %v315_v6  ;;  %v3763_v6 = vld [vmem:[%s5552_s2 + $0x10] sm:$0xff]  }
  0x2e   :  { %3285 = vmatmul.mubr.msk.bf16.gmra.mrb[12].mxu0 %vm237_vm2, %v3715_v13  ;;  %3395 = vmatmul.mubr.msk.bf16.gmra.mrb[12].mxu1 %vm237_vm2, %v3716_v14 }
  0x2f   :  { %3288 = vmatprep.mubr.msk.bf16.mxu0 %vm3814_vm0, %v5557_v0  ;;  %3398 = vmatprep.mubr.msk.bf16.mxu1 %vm3814_vm0, %v5557_v0 }
  0x36   :  { %3289 = vmatmul.mubr.msk.bf16.gmra.mrb[16].mxu0 %vm237_vm2, %v3717_v15  ;;  %3399 = vmatmul.mubr.msk.bf16.gmra.mrb[16].mxu1 %vm237_vm2, %v3718_v16 }
  0x37   :  { %3292 = vmatprep.mubr.msk.bf16.mxu0 %vm3814_vm0, %v5557_v0  ;;  %3402 = vmatprep.mubr.msk.bf16.mxu1 %vm3814_vm0, %v5557_v0 }
  0x3e   :  { %3293 = vmatmul.mubr.msk.bf16.gmra.mrb[20].mxu0 %vm237_vm2, %v3719_v17  ;;  %3403 = vmatmul.mubr.msk.bf16.gmra.mrb[20].mxu1 %vm237_vm2, %v3720_v18 }
  0x3f   :  { %3296 = vmatprep.mubr.msk.bf16.mxu0 %vm3814_vm0, %v5557_v0  ;;  %3406 = vmatprep.mubr.msk.bf16.mxu1 %vm3814_vm0, %v5557_v0 }
  0x46   :  { %3297 = vmatmul.mubr.msk.bf16.gmra.mrb[24].mxu0 %vm237_vm2, %v3721_v19  ;;  %3407 = vmatmul.mubr.msk.bf16.gmra.mrb[24].mxu1 %vm237_vm2, %v3722_v20 }
  0x47   :  { %3300 = vmatprep.mubr.msk.bf16.mxu0 %vm3814_vm0, %v5557_v0  ;;  %3410 = vmatprep.mubr.msk.bf16.mxu1 %vm3814_vm0, %v5557_v0 }
  0x4e   :  { %3301 = vmatmul.mubr.msk.bf16.gmra.mrb[28].mxu0 %vm237_vm2, %v3723_v21  ;;  %3411 = vmatmul.mubr.msk.bf16.gmra.mrb[28].mxu1 %vm237_vm2, %v3724_v22 }
  0x4f   :  { %3304 = vmatprep.mubr.msk.bf16.mxu0 %vm3814_vm0, %v5557_v0  ;;  %3414 = vmatprep.mubr.msk.bf16.mxu1 %vm3814_vm0, %v5557_v0 }
  0x56   :  { %3305 = vmatmul.mubr.msk.bf16.gmra.mrb[32].mxu0 %vm237_vm2, %v3725_v23  ;;  %3415 = vmatmul.mubr.msk.bf16.gmra.mrb[32].mxu1 %vm237_vm2, %v3726_v24 }
  0x57   :  { %3308 = vmatprep.mubr.msk.bf16.mxu0 %vm3814_vm0, %v5557_v0  ;;  %3418 = vmatprep.mubr.msk.bf16.mxu1 %vm3814_vm0, %v5557_v0 }
  0x5e   :  { %3309 = vmatmul.mubr.msk.bf16.gmra.mrb[36].mxu0 %vm237_vm2, %v3727_v25  ;;  %3419 = vmatmul.mubr.msk.bf16.gmra.mrb[36].mxu1 %vm237_vm2, %v3728_v26  ;;  %v3765_v26 = vld [vmem:[%s5552_s2 + $0x18] sm:$0xff]  }
  0x5f   :  { %3312 = vmatprep.mubr.msk.bf16.mxu0 %vm3814_vm0, %v5557_v0  ;;  %3422 = vmatprep.mubr.msk.bf16.mxu1 %vm3814_vm0, %v5557_v0 }
  0x66   :  { %3313 = vmatmul.mubr.msk.bf16.gmra.mrb[40].mxu0 %vm237_vm2, %v3729_v27  ;;  %3423 = vmatmul.mubr.msk.bf16.gmra.mrb[40].mxu1 %vm237_vm2, %v3730_v28  ;;  %v3766_v27 = vld [vmem:[%s5553_s3 + $0x18] sm:$0xff]  }
  0x67   :  { %3316 = vmatprep.mubr.msk.bf16.mxu0 %vm3814_vm0, %v5557_v0  ;;  %3426 = vmatprep.mubr.msk.bf16.mxu1 %vm3814_vm0, %v5557_v0 }
  0x6e   :  { %3317 = vmatmul.mubr.msk.bf16.gmra.mrb[44].mxu0 %vm237_vm2, %v3731_v29  ;;  %3427 = vmatmul.mubr.msk.bf16.gmra.mrb[44].mxu1 %vm237_vm2, %v3732_v30 }
  0x6f   :  { %3320 = vmatprep.mubr.msk.bf16.mxu0 %vm3814_vm0, %v5557_v0  ;;  %3430 = vmatprep.mubr.msk.bf16.mxu1 %vm3814_vm0, %v5557_v0 }
  0x76   :  { %3321 = vmatmul.mubr.msk.bf16.gmra.mrb[48].mxu0 %vm237_vm2, %v3733_v31  ;;  %3431 = vmatmul.mubr.msk.bf16.gmra.mrb[48].mxu1 %vm237_vm2, %v3734_v32 }
  0x77   :  { %3324 = vmatprep.mubr.msk.bf16.mxu0 %vm3814_vm0, %v5557_v0  ;;  %3434 = vmatprep.mubr.msk.bf16.mxu1 %vm3814_vm0, %v5557_v0 }
  0x7e   :  { %3325 = vmatmul.mubr.msk.bf16.gmra.mrb[52].mxu0 %vm237_vm2, %v3735_v33  ;;  %3435 = vmatmul.mubr.msk.bf16.gmra.mrb[52].mxu1 %vm237_vm2, %v3736_v34 }
  0x7f   :  { %3328 = vmatprep.mubr.msk.bf16.mxu0 %vm3814_vm0, %v5557_v0  ;;  %3438 = vmatprep.mubr.msk.bf16.mxu1 %vm3814_vm0, %v5557_v0 }
  0x86   :  { %3329 = vmatmul.mubr.msk.bf16.gmra.mrb[56].mxu0 %vm237_vm2, %v3737_v35  ;;  %3439 = vmatmul.mubr.msk.bf16.gmra.mrb[56].mxu1 %vm237_vm2, %v3738_v36 }
  0x87   :  { %3332 = vmatprep.mubr.msk.bf16.mxu0 %vm3814_vm0, %v5557_v0  ;;  %3442 = vmatprep.mubr.msk.bf16.mxu1 %vm3814_vm0, %v5557_v0 }
  0x8e   :  { %3333 = vmatmul.mubr.msk.bf16.gmra.mrb[60].mxu0 %vm237_vm2, %v3739_v37  ;;  %3443 = vmatmul.mubr.msk.bf16.gmra.mrb[60].mxu1 %vm237_vm2, %v3740_v38 }
  0x8f   :  { %3336 = vmatprep.mubr.msk.bf16.mxu0 %vm3814_vm0, %v5557_v0  ;;  %3446 = vmatprep.mubr.msk.bf16.mxu1 %vm3814_vm0, %v5557_v0 }
  0x96   :  { %3337 = vmatmul.mubr.msk.bf16.gmra.mrb[64].mxu0 %vm237_vm2, %v3741_v39  ;;  %3447 = vmatmul.mubr.msk.bf16.gmra.mrb[64].mxu1 %vm237_vm2, %v3742_v40 }
  0x97   :  { %3340 = vmatprep.mubr.msk.bf16.mxu0 %vm3814_vm0, %v5557_v0  ;;  %3450 = vmatprep.mubr.msk.bf16.mxu1 %vm3814_vm0, %v5557_v0 }
  0x9e   :  { %3341 = vmatmul.mubr.msk.bf16.gmra.mrb[68].mxu0 %vm237_vm2, %v3743_v41  ;;  %3451 = vmatmul.mubr.msk.bf16.gmra.mrb[68].mxu1 %vm237_vm2, %v3744_v42 }
  0x9f   :  { %3344 = vmatprep.mubr.msk.bf16.mxu0 %vm3814_vm0, %v5557_v0  ;;  %3454 = vmatprep.mubr.msk.bf16.mxu1 %vm3814_vm0, %v5557_v0 }
  0xa6   :  { %3345 = vmatmul.mubr.msk.bf16.gmra.mrb[72].mxu0 %vm237_vm2, %v3745_v43  ;;  %3455 = vmatmul.mubr.msk.bf16.gmra.mrb[72].mxu1 %vm237_vm2, %v3746_v44 }
  0xa7   :  { %3348 = vmatprep.mubr.msk.bf16.mxu0 %vm3814_vm0, %v5557_v0  ;;  %3458 = vmatprep.mubr.msk.bf16.mxu1 %vm3814_vm0, %v5557_v0 }
  0xae   :  { %3349 = vmatmul.mubr.msk.bf16.gmra.mrb[76].mxu0 %vm237_vm2, %v3747_v45  ;;  %3459 = vmatmul.mubr.msk.bf16.gmra.mrb[76].mxu1 %vm237_vm2, %v3748_v46  ;;  %v3767_v46 = vld [vmem:[%s5552_s2 + $0x20] sm:$0xff]  }
  0xaf   :  { %3352 = vmatprep.mubr.msk.bf16.mxu0 %vm3814_vm0, %v5557_v0  ;;  %3462 = vmatprep.mubr.msk.bf16.mxu1 %vm3814_vm0, %v5557_v0 }
  0xb6   :  { %3353 = vmatmul.mubr.msk.bf16.gmra.mrb[80].mxu0 %vm237_vm2, %v3749_v47  ;;  %3463 = vmatmul.mubr.msk.bf16.gmra.mrb[80].mxu1 %vm237_vm2, %v3750_v48  ;;  %v3768_v47 = vld [vmem:[%s5553_s3 + $0x20] sm:$0xff]  }
  0xb7   :  { %3356 = vmatprep.mubr.msk.bf16.mxu0 %vm3814_vm0, %v5557_v0  ;;  %3466 = vmatprep.mubr.msk.bf16.mxu1 %vm3814_vm0, %v5557_v0 }
  0xbe   :  { %3357 = vmatmul.mubr.msk.bf16.gmra.mrb[84].mxu0 %vm237_vm2, %v3751_v49  ;;  %3467 = vmatmul.mubr.msk.bf16.gmra.mrb[84].mxu1 %vm237_vm2, %v3752_v50 }
  0xbf   :  { %3360 = vmatprep.mubr.msk.bf16.mxu0 %vm3814_vm0, %v5557_v0  ;;  %3470 = vmatprep.mubr.msk.bf16.mxu1 %vm3814_vm0, %v5557_v0 }
  0xc6   :  { %3361 = vmatmul.mubr.msk.bf16.gmra.mrb[88].mxu0 %vm237_vm2, %v3753_v51  ;;  %3471 = vmatmul.mubr.msk.bf16.gmra.mrb[88].mxu1 %vm237_vm2, %v3754_v52 }
  0xc7   :  { %3364 = vmatprep.mubr.msk.bf16.mxu0 %vm3814_vm0, %v5557_v0  ;;  %3474 = vmatprep.mubr.msk.bf16.mxu1 %vm3814_vm0, %v5557_v0 }
  0xce   :  { %3365 = vmatmul.mubr.msk.bf16.gmra.mrb[92].mxu0 %vm237_vm2, %v3755_v53  ;;  %3475 = vmatmul.mubr.msk.bf16.gmra.mrb[92].mxu1 %vm237_vm2, %v3756_v54 }
  0xcf   :  { %3368 = vmatprep.mubr.msk.bf16.mxu0 %vm3814_vm0, %v5557_v0  ;;  %3478 = vmatprep.mubr.msk.bf16.mxu1 %vm3814_vm0, %v5557_v0 }
  0xd6   :  { %3369 = vmatmul.mubr.msk.bf16.gmra.mrb[96].mxu0 %vm237_vm2, %v3757_v55  ;;  %3479 = vmatmul.mubr.msk.bf16.gmra.mrb[96].mxu1 %vm237_vm2, %v3758_v56 }
  0xd7   :  { %3492 = vmatprep.mubr.msk.bf16.mxu0 %vm3814_vm0, %v5557_v0  ;;  %3602 = vmatprep.mubr.msk.bf16.mxu1 %vm3814_vm0, %v5557_v0 }
  0xde   :  { %3493 = vmatmul.mubr.msk.bf16.vlgmr.msra.gmra.mrb[100].mxu0 %vm237_vm2, %v3759_v57  ;;  %3603 = vmatmul.mubr.msk.bf16.vlgmr.msra.gmra.mrb[100].mxu1 %vm237_vm2, %v3760_v58 }
  0xdf   :  { %3496 = vmatprep.mubr.msk.bf16.mxu0 %vm3814_vm0, %v5557_v0  ;;  %3606 = vmatprep.mubr.msk.bf16.mxu1 %vm3814_vm0, %v5557_v0 }
  0xe6   :  { %3497 = vmatmul.mubr.msk.bf16.gmra.mrb[104].mxu0 %vm237_vm2, %v3761_v59  ;;  %3607 = vmatmul.mubr.msk.bf16.gmra.mrb[104].mxu1 %vm237_vm2, %v3762_v60 }
  0xe7   :  { %3500 = vmatprep.mubr.msk.bf16.mxu0 %vm3814_vm0, %v5557_v0  ;;  %3610 = vmatprep.mubr.msk.bf16.mxu1 %vm3814_vm0, %v5557_v0 }
  0xe9   :  { %v351_v63 = vpop.f32.mrb[0].mxu0  ;;  %v940_v1 = vpop.f32.mrb[0].mxu1 }
  0xea   :  { %v555_v2 = vmul.f32 %v4217_v61, %v351_v63  ;;  %v1138_v3 = vmul.f32 %v4217_v61, %v940_v1  ;;  %v3274_v4 = vpop.f32.mrb[1].mxu0  ;;  %v3384_v5 = vpop.f32.mrb[1].mxu1 }
  0xeb   :  { %v354_v8 = vpop.f32.mrb[2].mxu0  ;;  %v943_v9 = vpop.f32.mrb[2].mxu1  ;;  %v3769_v5 = vld [vmem:[%s5552_s2 + $0x28] sm:$0xff]  }
  0xec   :  { %v4237_v10 = vadd.f32 %v4226_v62, %v555_v2  ;;  %v4240_v11 = vadd.f32 %v4226_v62, %v1138_v3  ;;  %v556_v12 = vmul.f32 %v4217_v61, %v354_v8  ;;  %v1139_v13 = vmul.f32 %v4217_v61, %v943_v9  ;;  %v3275_v14 = vpop.f32.mrb[3].mxu0  ;;  %v3385_v15 = vpop.f32.mrb[3].mxu1 }
  0xee   :  { %v4247_v17 = vadd.f32 %v4226_v62, %v556_v12  ;;  %v4250_v18 = vadd.f32 %v4226_v62, %v1139_v13  ;;  %3501 = vmatmul.mubr.msk.bf16.gmra.mrb[108].mxu0 %vm237_vm2, %v3763_v6  ;;  %3611 = vmatmul.mubr.msk.bf16.gmra.mrb[108].mxu1 %vm237_vm2, %v3764_v7  ;;  %v3770_v6 = vld [vmem:[%s5553_s3 + $0x28] sm:$0xff]  }
  0xef   :  { %3504 = vmatprep.mubr.msk.bf16.mxu0 %vm3814_vm0, %v5557_v0  ;;  %3614 = vmatprep.mubr.msk.bf16.mxu1 %vm3814_vm0, %v5557_v0 }
  0xf1   :  { %v359_v20 = vpop.f32.mrb[4].mxu0  ;;  %v948_v21 = vpop.f32.mrb[4].mxu1 }
  0xf2   :  { %v557_v22 = vmul.f32 %v4217_v61, %v359_v20  ;;  %v1140_v23 = vmul.f32 %v4217_v61, %v948_v21  ;;  %v3278_v24 = vpop.f32.mrb[5].mxu0  ;;  %v3388_v25 = vpop.f32.mrb[5].mxu1 }
  0xf3   :  { %v362_v28 = vpop.f32.mrb[6].mxu0  ;;  %v951_v29 = vpop.f32.mrb[6].mxu1 }
  0xf4   :  { %v4269_v30 = vadd.f32 %v4226_v62, %v557_v22  ;;  %v4272_v31 = vadd.f32 %v4226_v62, %v1140_v23  ;;  %v558_v32 = vmul.f32 %v4217_v61, %v362_v28  ;;  %v1141_v33 = vmul.f32 %v4217_v61, %v951_v29  ;;  %v3279_v34 = vpop.f32.mrb[7].mxu0  ;;  %v3389_v35 = vpop.f32.mrb[7].mxu1 }
  0xf5   :  { %v3772_v34 = vld [vmem:[%s5553_s3 + $0x30] sm:$0xff]  }
  0xf6   :  { %v4279_v37 = vadd.f32 %v4226_v62, %v558_v32  ;;  %v4282_v38 = vadd.f32 %v4226_v62, %v1141_v33  ;;  %3505 = vmatmul.mubr.msk.bf16.gmra.mrb[112].mxu0 %vm237_vm2, %v3765_v26  ;;  %3615 = vmatmul.mubr.msk.bf16.gmra.mrb[112].mxu1 %vm237_vm2, %v3766_v27  ;;  %v3771_v33 = vld [vmem:[%s5552_s2 + $0x30] sm:$0xff]  }
  0xf7   :  { %3508 = vmatprep.mubr.msk.bf16.mxu0 %vm3814_vm0, %v5557_v0  ;;  %3618 = vmatprep.mubr.msk.bf16.mxu1 %vm3814_vm0, %v5557_v0 }
  0xf9   :  { %v367_v40 = vpop.f32.mrb[8].mxu0  ;;  %v956_v41 = vpop.f32.mrb[8].mxu1 }
  0xfa   :  { %v559_v42 = vmul.f32 %v4217_v61, %v367_v40  ;;  %v1142_v43 = vmul.f32 %v4217_v61, %v956_v41  ;;  %v3282_v44 = vpop.f32.mrb[9].mxu0  ;;  %v3392_v45 = vpop.f32.mrb[9].mxu1 }
  0xfb   :  { %v370_v48 = vpop.f32.mrb[10].mxu0  ;;  %v959_v49 = vpop.f32.mrb[10].mxu1 }
  0xfc   :  { %v4301_v50 = vadd.f32 %v4226_v62, %v559_v42  ;;  %v4304_v51 = vadd.f32 %v4226_v62, %v1142_v43  ;;  %v560_v52 = vmul.f32 %v4217_v61, %v370_v48  ;;  %v1143_v53 = vmul.f32 %v4217_v61, %v959_v49  ;;  %v3283_v54 = vpop.f32.mrb[11].mxu0  ;;  %v3393_v55 = vpop.f32.mrb[11].mxu1 }
  0xfe   :  { %v4311_v57 = vadd.f32 %v4226_v62, %v560_v52  ;;  %v4314_v58 = vadd.f32 %v4226_v62, %v1143_v53  ;;  %3509 = vmatmul.mubr.msk.bf16.gmra.mrb[116].mxu0 %vm237_vm2, %v3767_v46  ;;  %3619 = vmatmul.mubr.msk.bf16.gmra.mrb[116].mxu1 %vm237_vm2, %v3768_v47 }
  0xff   :  { %3512 = vmatprep.mubr.msk.bf16.mxu0 %vm3814_vm0, %v5557_v0  ;;  %3622 = vmatprep.mubr.msk.bf16.mxu1 %vm3814_vm0, %v5557_v0 }
 0x101   :  { %v375_v60 = vpop.f32.mrb[12].mxu0  ;;  %v964_v63 = vpop.f32.mrb[12].mxu1 }
 0x102   :  { %v561_v1 = vmul.f32 %v4217_v61, %v375_v60  ;;  %v1144_v2 = vmul.f32 %v4217_v61, %v964_v63  ;;  %v3286_v3 = vpop.f32.mrb[13].mxu0  ;;  %v3396_v4 = vpop.f32.mrb[13].mxu1 }
 0x103   :  { %v378_v7 = vpop.f32.mrb[14].mxu0  ;;  %v967_v8 = vpop.f32.mrb[14].mxu1  ;;  %v3774_v3 = vld [vmem:[%s5553_s3 + $0x38] sm:$0xff]  }
 0x104   :  { %v4333_v9 = vadd.f32 %v4226_v62, %v561_v1  ;;  %v4336_v12 = vadd.f32 %v4226_v62, %v1144_v2  ;;  %v562_v13 = vmul.f32 %v4217_v61, %v378_v7  ;;  %v1145_v14 = vmul.f32 %v4217_v61, %v967_v8  ;;  %v3287_v15 = vpop.f32.mrb[15].mxu0  ;;  %v3397_v20 = vpop.f32.mrb[15].mxu1  ;;  %v3773_v2 = vld [vmem:[%s5552_s2 + $0x38] sm:$0xff]  }
 0x106   :  { %v4343_v22 = vadd.f32 %v4226_v62, %v562_v13  ;;  %v4346_v23 = vadd.f32 %v4226_v62, %v1145_v14  ;;  %3513 = vmatmul.mubr.msk.bf16.gmra.mrb[120].mxu0 %vm237_vm2, %v3769_v5  ;;  %3623 = vmatmul.mubr.msk.bf16.gmra.mrb[120].mxu1 %vm237_vm2, %v3770_v6 }
 0x107   :  { %3516 = vmatprep.mubr.msk.bf16.mxu0 %vm3814_vm0, %v5557_v0  ;;  %3626 = vmatprep.mubr.msk.bf16.mxu1 %vm3814_vm0, %v5557_v0 }
 0x109   :  { %v383_v25 = vpop.f32.mrb[16].mxu0  ;;  %v972_v26 = vpop.f32.mrb[16].mxu1 }
 0x10a   :  { %v563_v27 = vmul.f32 %v4217_v61, %v383_v25  ;;  %v1146_v28 = vmul.f32 %v4217_v61, %v972_v26  ;;  %v3290_v29 = vpop.f32.mrb[17].mxu0  ;;  %v3400_v32 = vpop.f32.mrb[17].mxu1 }
 0x10b   :  { %v386_v35 = vpop.f32.mrb[18].mxu0  ;;  %v975_v40 = vpop.f32.mrb[18].mxu1 }
 0x10c   :  { %v4365_v41 = vadd.f32 %v4226_v62, %v563_v27  ;;  %v4368_v42 = vadd.f32 %v4226_v62, %v1146_v28  ;;  %v564_v43 = vmul.f32 %v4217_v61, %v386_v35  ;;  %v1147_v44 = vmul.f32 %v4217_v61, %v975_v40  ;;  %v3291_v45 = vpop.f32.mrb[19].mxu0  ;;  %v3401_v46 = vpop.f32.mrb[19].mxu1  ;;  %v3775_v40 = vld [vmem:[%s5552_s2 + $0x40] sm:$0xff]  }
 0x10e   :  { %v4375_v48 = vadd.f32 %v4226_v62, %v564_v43  ;;  %v4378_v49 = vadd.f32 %v4226_v62, %v1147_v44  ;;  %3517 = vmatmul.mubr.msk.bf16.gmra.mrb[124].mxu0 %vm237_vm2, %v3771_v33  ;;  %3627 = vmatmul.mubr.msk.bf16.gmra.mrb[124].mxu1 %vm237_vm2, %v3772_v34  ;;  %v3776_v43 = vld [vmem:[%s5553_s3 + $0x40] sm:$0xff]  }
 0x10f   :  { %3520 = vmatprep.mubr.msk.bf16.mxu0 %vm3814_vm0, %v5557_v0  ;;  %3630 = vmatprep.mubr.msk.bf16.mxu1 %vm3814_vm0, %v5557_v0 }
 0x111   :  { %v391_v53 = vpop.f32.mrb[20].mxu0  ;;  %v980_v54 = vpop.f32.mrb[20].mxu1 }
 0x112   :  { %v565_v55 = vmul.f32 %v4217_v61, %v391_v53  ;;  %v1148_v60 = vmul.f32 %v4217_v61, %v980_v54  ;;  %v3294_v63 = vpop.f32.mrb[21].mxu0  ;;  %v3404_v1 = vpop.f32.mrb[21].mxu1 }
 0x113   :  { %v394_v4 = vpop.f32.mrb[22].mxu0  ;;  %v983_v5 = vpop.f32.mrb[22].mxu1 }
 0x114   :  { %v4397_v6 = vadd.f32 %v4226_v62, %v565_v55  ;;  %v4400_v7 = vadd.f32 %v4226_v62, %v1148_v60  ;;  %v566_v8 = vmul.f32 %v4217_v61, %v394_v4  ;;  %v1149_v13 = vmul.f32 %v4217_v61, %v983_v5  ;;  %v3295_v14 = vpop.f32.mrb[23].mxu0  ;;  %v3405_v15 = vpop.f32.mrb[23].mxu1 }
 0x116   :  { %v4407_v25 = vadd.f32 %v4226_v62, %v566_v8  ;;  %v4410_v26 = vadd.f32 %v4226_v62, %v1149_v13  ;;  %3521 = vmatmul.mubr.msk.bf16.gmra.mrb[128].mxu0 %vm237_vm2, %v3773_v2  ;;  %3631 = vmatmul.mubr.msk.bf16.gmra.mrb[128].mxu1 %vm237_vm2, %v3774_v3 }
 0x117   :  { %3524 = vmatprep.mubr.msk.bf16.mxu0 %vm3814_vm0, %v5557_v0  ;;  %3634 = vmatprep.mubr.msk.bf16.mxu1 %vm3814_vm0, %v5557_v0 }
 0x119   :  { %v399_v28 = vpop.f32.mrb[24].mxu0  ;;  %v988_v29 = vpop.f32.mrb[24].mxu1 }
 0x11a   :  { %v567_v32 = vmul.f32 %v4217_v61, %v399_v28  ;;  %v1150_v33 = vmul.f32 %v4217_v61, %v988_v29  ;;  %v3298_v34 = vpop.f32.mrb[25].mxu0  ;;  %v3408_v35 = vpop.f32.mrb[25].mxu1  ;;  %v3777_v29 = vld [vmem:[%s5552_s2 + $0x48] sm:$0xff]  }
 0x11b   :  { %v402_v44 = vpop.f32.mrb[26].mxu0  ;;  %v991_v45 = vpop.f32.mrb[26].mxu1 }
 0x11c   :  { %v4429_v46 = vadd.f32 %v4226_v62, %v567_v32  ;;  %v4432_v53 = vadd.f32 %v4226_v62, %v1150_v33  ;;  %v568_v54 = vmul.f32 %v4217_v61, %v402_v44  ;;  %v1151_v55 = vmul.f32 %v4217_v61, %v991_v45  ;;  %v3299_v60 = vpop.f32.mrb[27].mxu0  ;;  %v3409_v63 = vpop.f32.mrb[27].mxu1  ;;  %v3778_v32 = vld [vmem:[%s5553_s3 + $0x48] sm:$0xff]  }
 0x11e   :  { %v4439_v2 = vadd.f32 %v4226_v62, %v568_v54  ;;  %v4442_v3 = vadd.f32 %v4226_v62, %v1151_v55  ;;  %3525 = vmatmul.mubr.msk.bf16.gmra.mrb[132].mxu0 %vm237_vm2, %v3775_v40  ;;  %3635 = vmatmul.mubr.msk.bf16.gmra.mrb[132].mxu1 %vm237_vm2, %v3776_v43 }
 0x11f   :  { %3528 = vmatprep.mubr.msk.bf16.mxu0 %vm3814_vm0, %v5557_v0  ;;  %3638 = vmatprep.mubr.msk.bf16.mxu1 %vm3814_vm0, %v5557_v0 }
 0x121   :  { %v407_v5 = vpop.f32.mrb[28].mxu0  ;;  %v996_v8 = vpop.f32.mrb[28].mxu1 }
 0x122   :  { %v569_v13 = vmul.f32 %v4217_v61, %v407_v5  ;;  %v1152_v14 = vmul.f32 %v4217_v61, %v996_v8  ;;  %v3302_v15 = vpop.f32.mrb[29].mxu0  ;;  %v3412_v28 = vpop.f32.mrb[29].mxu1 }
 0x123   :  { %v410_v33 = vpop.f32.mrb[30].mxu0  ;;  %v999_v34 = vpop.f32.mrb[30].mxu1 }
 0x124   :  { %v4461_v35 = vadd.f32 %v4226_v62, %v569_v13  ;;  %v4464_v40 = vadd.f32 %v4226_v62, %v1152_v14  ;;  %v570_v43 = vmul.f32 %v4217_v61, %v410_v33  ;;  %v1153_v44 = vmul.f32 %v4217_v61, %v999_v34  ;;  %v3303_v45 = vpop.f32.mrb[31].mxu0  ;;  %v3413_v54 = vpop.f32.mrb[31].mxu1 }
 0x126   :  { %v4471_v60 = vadd.f32 %v4226_v62, %v570_v43  ;;  %v4474_v63 = vadd.f32 %v4226_v62, %v1153_v44  ;;  %3529 = vmatmul.mubr.msk.bf16.gmra.mrb[136].mxu0 %vm237_vm2, %v3777_v29  ;;  %3639 = vmatmul.mubr.msk.bf16.gmra.mrb[136].mxu1 %vm237_vm2, %v3778_v32  ;;  %v3779_v29 = vld [vmem:[%s5552_s2 + $0x50] sm:$0xff]  }
 0x127   :  { %3532 = vmatprep.mubr.msk.bf16.mxu0 %vm3814_vm0, %v5557_v0  ;;  %3642 = vmatprep.mubr.msk.bf16.mxu1 %vm3814_vm0, %v5557_v0  ;;  %v3780_v32 = vld [vmem:[%s5553_s3 + $0x50] sm:$0xff]  }
 0x129   :  { %v415_v8 = vpop.f32.mrb[32].mxu0  ;;  %v1004_v13 = vpop.f32.mrb[32].mxu1 }
 0x12a   :  { %v571_v14 = vmul.f32 %v4217_v61, %v415_v8  ;;  %v1154_v15 = vmul.f32 %v4217_v61, %v1004_v13  ;;  %v3306_v28 = vpop.f32.mrb[33].mxu0  ;;  %v3416_v33 = vpop.f32.mrb[33].mxu1 }
 0x12b   :  { %v418_v34 = vpop.f32.mrb[34].mxu0  ;;  %v1007_v43 = vpop.f32.mrb[34].mxu1 }
 0x12c   :  { %v4493_v44 = vadd.f32 %v4226_v62, %v571_v14  ;;  %v4496_v45 = vadd.f32 %v4226_v62, %v1154_v15  ;;  %v572_v54 = vmul.f32 %v4217_v61, %v418_v34  ;;  %v1155_v8 = vmul.f32 %v4217_v61, %v1007_v43  ;;  %v3307_v13 = vpop.f32.mrb[35].mxu0  ;;  %v3417_v28 = vpop.f32.mrb[35].mxu1 }
 0x12e   :  { %v4503_v5 = vadd.f32 %v4226_v62, %v572_v54  ;;  %v4506_v55 = vadd.f32 %v4226_v62, %v1155_v8  ;;  %3533 = vmatmul.mubr.msk.bf16.gmra.mrb[140].mxu0 %vm237_vm2, %v3779_v29  ;;  %3643 = vmatmul.mubr.msk.bf16.gmra.mrb[140].mxu1 %vm237_vm2, %v3780_v32  ;;  %v3781_v29 = vld [vmem:[%s5552_s2 + $0x58] sm:$0xff]  }
 0x12f   :  { %3536 = vmatprep.mubr.msk.bf16.mxu0 %vm3814_vm0, %v5557_v0  ;;  %3646 = vmatprep.mubr.msk.bf16.mxu1 %vm3814_vm0, %v5557_v0  ;;  %v3782_v32 = vld [vmem:[%s5553_s3 + $0x58] sm:$0xff]  }
 0x131   :  { %v423_v15 = vpop.f32.mrb[36].mxu0  ;;  %v1012_v34 = vpop.f32.mrb[36].mxu1 }
 0x132   :  { %v573_v43 = vmul.f32 %v4217_v61, %v423_v15  ;;  %v1156_v54 = vmul.f32 %v4217_v61, %v1012_v34  ;;  %v3310_v8 = vpop.f32.mrb[37].mxu0  ;;  %v3420_v13 = vpop.f32.mrb[37].mxu1 }
 0x133   :  { %v426_v28 = vpop.f32.mrb[38].mxu0  ;;  %v1015_v33 = vpop.f32.mrb[38].mxu1 }
 0x134   :  { %v4525_v14 = vadd.f32 %v4226_v62, %v573_v43  ;;  %v4528_v4 = vadd.f32 %v4226_v62, %v1156_v54  ;;  %v574_v15 = vmul.f32 %v4217_v61, %v426_v28  ;;  %v1157_v34 = vmul.f32 %v4217_v61, %v1015_v33  ;;  %v3311_v8 = vpop.f32.mrb[39].mxu0  ;;  %v3421_v13 = vpop.f32.mrb[39].mxu1 }
 0x136   :  { %v4535_v27 = vadd.f32 %v4226_v62, %v574_v15  ;;  %v4538_v20 = vadd.f32 %v4226_v62, %v1157_v34  ;;  %3537 = vmatmul.mubr.msk.bf16.gmra.mrb[144].mxu0 %vm237_vm2, %v3781_v29  ;;  %3647 = vmatmul.mubr.msk.bf16.gmra.mrb[144].mxu1 %vm237_vm2, %v3782_v32  ;;  %v3783_v29 = vld [vmem:[%s5552_s2 + $0x60] sm:$0xff]  }
 0x137   :  { %3540 = vmatprep.mubr.msk.bf16.mxu0 %vm3814_vm0, %v5557_v0  ;;  %3650 = vmatprep.mubr.msk.bf16.mxu1 %vm3814_vm0, %v5557_v0  ;;  %v3784_v32 = vld [vmem:[%s5553_s3 + $0x60] sm:$0xff]  }
 0x139   :  { %v431_v43 = vpop.f32.mrb[40].mxu0  ;;  %v1020_v54 = vpop.f32.mrb[40].mxu1 }
 0x13a   :  { %v575_v28 = vmul.f32 %v4217_v61, %v431_v43  ;;  %v1158_v15 = vmul.f32 %v4217_v61, %v1020_v54  ;;  %v3314_v34 = vpop.f32.mrb[41].mxu0  ;;  %v3424_v8 = vpop.f32.mrb[41].mxu1 }
 0x13b   :  { %v434_v13 = vpop.f32.mrb[42].mxu0  ;;  %v1023_v1 = vpop.f32.mrb[42].mxu1 }
 0x13c   :  { %v4557_v33 = vadd.f32 %v4226_v62, %v575_v28  ;;  %v4560_v52 = vadd.f32 %v4226_v62, %v1158_v15  ;;  %v576_v43 = vmul.f32 %v4217_v61, %v434_v13  ;;  %v1159_v54 = vmul.f32 %v4217_v61, %v1023_v1  ;;  %v3315_v34 = vpop.f32.mrb[43].mxu0  ;;  %v3425_v8 = vpop.f32.mrb[43].mxu1 }
 0x13e   :  { %v4567_v24 = vadd.f32 %v4226_v62, %v576_v43  ;;  %v4570_v21 = vadd.f32 %v4226_v62, %v1159_v54  ;;  %3541 = vmatmul.mubr.msk.bf16.gmra.mrb[148].mxu0 %vm237_vm2, %v3783_v29  ;;  %3651 = vmatmul.mubr.msk.bf16.gmra.mrb[148].mxu1 %vm237_vm2, %v3784_v32  ;;  %v3785_v29 = vld [vmem:[%s5552_s2 + $0x68] sm:$0xff]  }
 0x13f   :  { %3544 = vmatprep.mubr.msk.bf16.mxu0 %vm3814_vm0, %v5557_v0  ;;  %3654 = vmatprep.mubr.msk.bf16.mxu1 %vm3814_vm0, %v5557_v0  ;;  %v3786_v32 = vld [vmem:[%s5553_s3 + $0x68] sm:$0xff]  }
 0x141   :  { %v439_v28 = vpop.f32.mrb[44].mxu0  ;;  %v1028_v15 = vpop.f32.mrb[44].mxu1 }
 0x142   :  { %v577_v13 = vmul.f32 %v4217_v61, %v439_v28  ;;  %v1160_v43 = vmul.f32 %v4217_v61, %v1028_v15  ;;  %v3318_v54 = vpop.f32.mrb[45].mxu0  ;;  %v3428_v34 = vpop.f32.mrb[45].mxu1 }
 0x143   :  { %v442_v8 = vpop.f32.mrb[46].mxu0  ;;  %v1031_v47 = vpop.f32.mrb[46].mxu1 }
 0x144   :  { %v4589_v1 = vadd.f32 %v4226_v62, %v577_v13  ;;  %v4592_v59 = vadd.f32 %v4226_v62, %v1160_v43  ;;  %v578_v28 = vmul.f32 %v4217_v61, %v442_v8  ;;  %v1161_v15 = vmul.f32 %v4217_v61, %v1031_v47  ;;  %v3319_v54 = vpop.f32.mrb[47].mxu0  ;;  %v3429_v34 = vpop.f32.mrb[47].mxu1 }
 0x146   :  { %5613 = vst [vmem:[#allocation2_spill] sm:$0xff] %v4589_v1  ;;  %5614 = vst [vmem:[#allocation3_spill] sm:$0xff] %v4592_v59  ;;  %v4599_v39 = vadd.f32 %v4226_v62, %v578_v28  ;;  %v4602_v36 = vadd.f32 %v4226_v62, %v1161_v15  ;;  %3545 = vmatmul.mubr.msk.bf16.gmra.mrb[152].mxu0 %vm237_vm2, %v3785_v29  ;;  %3655 = vmatmul.mubr.msk.bf16.gmra.mrb[152].mxu1 %vm237_vm2, %v3786_v32  ;;  %v3787_v29 = vld [vmem:[%s5552_s2 + $0x70] sm:$0xff]  }
 0x147   :  { %3548 = vmatprep.mubr.msk.bf16.mxu0 %vm3814_vm0, %v5557_v0  ;;  %3658 = vmatprep.mubr.msk.bf16.mxu1 %vm3814_vm0, %v5557_v0  ;;  %v3788_v32 = vld [vmem:[%s5553_s3 + $0x70] sm:$0xff]  }
 0x148   :  { %5615 = vst [vmem:[#allocation4_spill] sm:$0xff] %v4599_v39  ;;  %5616 = vst [vmem:[#allocation5_spill] sm:$0xff] %v4602_v36 }
 0x149   :  { %v447_v13 = vpop.f32.mrb[48].mxu0  ;;  %v1036_v43 = vpop.f32.mrb[48].mxu1 }
 0x14a   :  { %v579_v8 = vmul.f32 %v4217_v61, %v447_v13  ;;  %v1162_v28 = vmul.f32 %v4217_v61, %v1036_v43  ;;  %v3322_v15 = vpop.f32.mrb[49].mxu0  ;;  %v3432_v54 = vpop.f32.mrb[49].mxu1 }
 0x14b   :  { %v450_v34 = vpop.f32.mrb[50].mxu0  ;;  %v1039_v56 = vpop.f32.mrb[50].mxu1 }
 0x14c   :  { %v4621_v47 = vadd.f32 %v4226_v62, %v579_v8  ;;  %v4624_v19 = vadd.f32 %v4226_v62, %v1162_v28  ;;  %v580_v13 = vmul.f32 %v4217_v61, %v450_v34  ;;  %v1163_v43 = vmul.f32 %v4217_v61, %v1039_v56  ;;  %v3323_v15 = vpop.f32.mrb[51].mxu0  ;;  %v3433_v54 = vpop.f32.mrb[51].mxu1 }
 0x14d   :  { %v5621_v8 = vmov 0.0  }
 0x14e   :  { %5617 = vst [vmem:[#allocation6_spill] sm:$0xff] %v4621_v47  ;;  %5618 = vst [vmem:[#allocation7_spill] sm:$0xff] %v4624_v19  ;;  %v4631_v0 = vadd.f32 %v4226_v62, %v580_v13  ;;  %v4634_v36 = vadd.f32 %v4226_v62, %v1163_v43  ;;  %3549 = vmatmul.mubr.msk.bf16.gmra.mrb[156].mxu0 %vm237_vm2, %v3787_v29  ;;  %3659 = vmatmul.mubr.msk.bf16.gmra.mrb[156].mxu1 %vm237_vm2, %v3788_v32  ;;  %v3789_v29 = vld [vmem:[%s5552_s2 + $0x78] sm:$0xff]  }
 0x14f   :  { %3552 = vmatprep.mubr.msk.bf16.mxu0 %vm3814_vm0, %v5621_v8  ;;  %3662 = vmatprep.mubr.msk.bf16.mxu1 %vm3814_vm0, %v5621_v8  ;;  %v3790_v32 = vld [vmem:[%s5553_s3 + $0x78] sm:$0xff]  }
 0x150   :  { %5619 = vst [vmem:[#allocation8_spill] sm:$0xff] %v4631_v0  ;;  %5620 = vst [vmem:[#allocation9_spill] sm:$0xff] %v4634_v36 }
 0x151   :  { %v455_v28 = vpop.f32.mrb[52].mxu0  ;;  %v1044_v34 = vpop.f32.mrb[52].mxu1 }
 0x152   :  { %v581_v13 = vmul.f32 %v4217_v61, %v455_v28  ;;  %v1164_v43 = vmul.f32 %v4217_v61, %v1044_v34  ;;  %v3326_v15 = vpop.f32.mrb[53].mxu0  ;;  %v3436_v54 = vpop.f32.mrb[53].mxu1 }
 0x153   :  { %v458_v16 = vpop.f32.mrb[54].mxu0  ;;  %v1047_v19 = vpop.f32.mrb[54].mxu1 }
 0x154   :  { %v4653_v56 = vadd.f32 %v4226_v62, %v581_v13  ;;  %v4656_v36 = vadd.f32 %v4226_v62, %v1164_v43  ;;  %v582_v28 = vmul.f32 %v4217_v61, %v458_v16  ;;  %v1165_v34 = vmul.f32 %v4217_v61, %v1047_v19  ;;  %v3327_v15 = vpop.f32.mrb[55].mxu0  ;;  %v3437_v54 = vpop.f32.mrb[55].mxu1 }
 0x156   :  { %5622 = vst [vmem:[#allocation10_spill] sm:$0xff] %v4653_v56  ;;  %5623 = vst [vmem:[#allocation11_spill] sm:$0xff] %v4656_v36  ;;  %v4663_v47 = vadd.f32 %v4226_v62, %v582_v28  ;;  %v4666_v39 = vadd.f32 %v4226_v62, %v1165_v34  ;;  %3553 = vmatmul.mubr.msk.bf16.gmra.mrb[160].mxu0 %vm237_vm2, %v3789_v29  ;;  %3663 = vmatmul.mubr.msk.bf16.gmra.mrb[160].mxu1 %vm237_vm2, %v3790_v32  ;;  %v3791_v29 = vld [vmem:[%s5552_s2 + $0x80] sm:$0xff]  }
 0x157   :  { %3556 = vmatprep.mubr.msk.bf16.mxu0 %vm3814_vm0, %v5621_v8  ;;  %3666 = vmatprep.mubr.msk.bf16.mxu1 %vm3814_vm0, %v5621_v8  ;;  %v3792_v32 = vld [vmem:[%s5553_s3 + $0x80] sm:$0xff]  }
 0x158   :  { %5624 = vst [vmem:[#allocation12_spill] sm:$0xff] %v4663_v47  ;;  %5625 = vst [vmem:[#allocation13_spill] sm:$0xff] %v4666_v39 }
 0x159   :  { %v463_v19 = vpop.f32.mrb[56].mxu0  ;;  %v1052_v13 = vpop.f32.mrb[56].mxu1 }
 0x15a   :  { %v583_v43 = vmul.f32 %v4217_v61, %v463_v19  ;;  %v1166_v28 = vmul.f32 %v4217_v61, %v1052_v13  ;;  %v3330_v34 = vpop.f32.mrb[57].mxu0  ;;  %v3440_v15 = vpop.f32.mrb[57].mxu1 }
 0x15b   :  { %v466_v54 = vpop.f32.mrb[58].mxu0  ;;  %v1055_v0 = vpop.f32.mrb[58].mxu1 }
 0x15c   :  { %v4685_v16 = vadd.f32 %v4226_v62, %v583_v43  ;;  %v4688_v39 = vadd.f32 %v4226_v62, %v1166_v28  ;;  %v584_v19 = vmul.f32 %v4217_v61, %v466_v54  ;;  %v1167_v13 = vmul.f32 %v4217_v61, %v1055_v0  ;;  %v3331_v34 = vpop.f32.mrb[59].mxu0  ;;  %v3441_v15 = vpop.f32.mrb[59].mxu1 }
 0x15e   :  { %5626 = vst [vmem:[#allocation14_spill] sm:$0xff] %v4685_v16  ;;  %5627 = vst [vmem:[#allocation15_spill] sm:$0xff] %v4688_v39  ;;  %v4695_v36 = vadd.f32 %v4226_v62, %v584_v19  ;;  %v4698_v56 = vadd.f32 %v4226_v62, %v1167_v13  ;;  %3557 = vmatmul.mubr.msk.bf16.gmra.mrb[164].mxu0 %vm237_vm2, %v3791_v29  ;;  %3667 = vmatmul.mubr.msk.bf16.gmra.mrb[164].mxu1 %vm237_vm2, %v3792_v32  ;;  %v3793_v29 = vld [vmem:[%s5552_s2 + $0x88] sm:$0xff]  }
 0x15f   :  { %3560 = vmatprep.mubr.msk.bf16.mxu0 %vm3814_vm0, %v5621_v8  ;;  %3670 = vmatprep.mubr.msk.bf16.mxu1 %vm3814_vm0, %v5621_v8  ;;  %v3794_v32 = vld [vmem:[%s5553_s3 + $0x88] sm:$0xff]  }
 0x160   :  { %5628 = vst [vmem:[#allocation16_spill] sm:$0xff] %v4695_v36  ;;  %5629 = vst [vmem:[#allocation17_spill] sm:$0xff] %v4698_v56 }
 0x161   :  { %v471_v43 = vpop.f32.mrb[60].mxu0  ;;  %v1060_v28 = vpop.f32.mrb[60].mxu1 }
 0x162   :  { %v585_v54 = vmul.f32 %v4217_v61, %v471_v43  ;;  %v1168_v19 = vmul.f32 %v4217_v61, %v1060_v28  ;;  %v3334_v13 = vpop.f32.mrb[61].mxu0  ;;  %v3444_v34 = vpop.f32.mrb[61].mxu1 }
 0x163   :  { %v474_v15 = vpop.f32.mrb[62].mxu0  ;;  %v1063_v47 = vpop.f32.mrb[62].mxu1 }
 0x164   :  { %v4717_v0 = vadd.f32 %v4226_v62, %v585_v54  ;;  %v4720_v56 = vadd.f32 %v4226_v62, %v1168_v19  ;;  %v586_v43 = vmul.f32 %v4217_v61, %v474_v15  ;;  %v1169_v28 = vmul.f32 %v4217_v61, %v1063_v47  ;;  %v3335_v13 = vpop.f32.mrb[63].mxu0  ;;  %v3445_v34 = vpop.f32.mrb[63].mxu1 }
 0x166   :  { %5630 = vst [vmem:[#allocation18_spill] sm:$0xff] %v4717_v0  ;;  %5631 = vst [vmem:[#allocation19_spill] sm:$0xff] %v4720_v56  ;;  %v4727_v39 = vadd.f32 %v4226_v62, %v586_v43  ;;  %v4730_v16 = vadd.f32 %v4226_v62, %v1169_v28  ;;  %3561 = vmatmul.mubr.msk.bf16.gmra.mrb[168].mxu0 %vm237_vm2, %v3793_v29  ;;  %3671 = vmatmul.mubr.msk.bf16.gmra.mrb[168].mxu1 %vm237_vm2, %v3794_v32  ;;  %v3795_v29 = vld [vmem:[%s5552_s2 + $0x90] sm:$0xff]  }
 0x167   :  { %3564 = vmatprep.mubr.msk.bf16.mxu0 %vm3814_vm0, %v5621_v8  ;;  %3674 = vmatprep.mubr.msk.bf16.mxu1 %vm3814_vm0, %v5621_v8  ;;  %v3796_v32 = vld [vmem:[%s5553_s3 + $0x90] sm:$0xff]  }
 0x168   :  { %5632 = vst [vmem:[#allocation20_spill] sm:$0xff] %v4727_v39  ;;  %5633 = vst [vmem:[#allocation21_spill] sm:$0xff] %v4730_v16 }
 0x169   :  { %v479_v54 = vpop.f32.mrb[64].mxu0  ;;  %v1068_v19 = vpop.f32.mrb[64].mxu1 }
 0x16a   :  { %v587_v15 = vmul.f32 %v4217_v61, %v479_v54  ;;  %v1170_v43 = vmul.f32 %v4217_v61, %v1068_v19  ;;  %v3338_v28 = vpop.f32.mrb[65].mxu0  ;;  %v3448_v13 = vpop.f32.mrb[65].mxu1 }
 0x16b   :  { %v482_v34 = vpop.f32.mrb[66].mxu0  ;;  %v1071_v36 = vpop.f32.mrb[66].mxu1 }
 0x16c   :  { %v4749_v47 = vadd.f32 %v4226_v62, %v587_v15  ;;  %v4752_v16 = vadd.f32 %v4226_v62, %v1170_v43  ;;  %v588_v54 = vmul.f32 %v4217_v61, %v482_v34  ;;  %v1171_v19 = vmul.f32 %v4217_v61, %v1071_v36  ;;  %v3339_v28 = vpop.f32.mrb[67].mxu0  ;;  %v3449_v13 = vpop.f32.mrb[67].mxu1 }
 0x16e   :  { %5634 = vst [vmem:[#allocation22_spill] sm:$0xff] %v4749_v47  ;;  %5635 = vst [vmem:[#allocation23_spill] sm:$0xff] %v4752_v16  ;;  %v4759_v56 = vadd.f32 %v4226_v62, %v588_v54  ;;  %v4762_v0 = vadd.f32 %v4226_v62, %v1171_v19  ;;  %3565 = vmatmul.mubr.msk.bf16.gmra.mrb[172].mxu0 %vm237_vm2, %v3795_v29  ;;  %3675 = vmatmul.mubr.msk.bf16.gmra.mrb[172].mxu1 %vm237_vm2, %v3796_v32  ;;  %v3797_v29 = vld [vmem:[%s5552_s2 + $0x98] sm:$0xff]  }
 0x16f   :  { %3568 = vmatprep.mubr.msk.bf16.mxu0 %vm3814_vm0, %v5621_v8  ;;  %3678 = vmatprep.mubr.msk.bf16.mxu1 %vm3814_vm0, %v5621_v8  ;;  %v3798_v32 = vld [vmem:[%s5553_s3 + $0x98] sm:$0xff]  }
 0x170   :  { %5636 = vst [vmem:[#allocation24_spill] sm:$0xff] %v4759_v56  ;;  %5637 = vst [vmem:[#allocation25_spill] sm:$0xff] %v4762_v0 }
 0x171   :  { %v487_v15 = vpop.f32.mrb[68].mxu0  ;;  %v1076_v43 = vpop.f32.mrb[68].mxu1 }
 0x172   :  { %v589_v34 = vmul.f32 %v4217_v61, %v487_v15  ;;  %v1172_v54 = vmul.f32 %v4217_v61, %v1076_v43  ;;  %v3342_v19 = vpop.f32.mrb[69].mxu0  ;;  %v3452_v28 = vpop.f32.mrb[69].mxu1 }
 0x173   :  { %v490_v13 = vpop.f32.mrb[70].mxu0  ;;  %v1079_v39 = vpop.f32.mrb[70].mxu1 }
 0x174   :  { %v4781_v36 = vadd.f32 %v4226_v62, %v589_v34  ;;  %v4784_v0 = vadd.f32 %v4226_v62, %v1172_v54  ;;  %v590_v15 = vmul.f32 %v4217_v61, %v490_v13  ;;  %v1173_v43 = vmul.f32 %v4217_v61, %v1079_v39  ;;  %v3343_v19 = vpop.f32.mrb[71].mxu0  ;;  %v3453_v28 = vpop.f32.mrb[71].mxu1 }
 0x176   :  { %5638 = vst [vmem:[#allocation26_spill] sm:$0xff] %v4781_v36  ;;  %5639 = vst [vmem:[#allocation27_spill] sm:$0xff] %v4784_v0  ;;  %v4791_v16 = vadd.f32 %v4226_v62, %v590_v15  ;;  %v4794_v47 = vadd.f32 %v4226_v62, %v1173_v43  ;;  %3569 = vmatmul.mubr.msk.bf16.gmra.mrb[176].mxu0 %vm237_vm2, %v3797_v29  ;;  %3679 = vmatmul.mubr.msk.bf16.gmra.mrb[176].mxu1 %vm237_vm2, %v3798_v32  ;;  %v3799_v29 = vld [vmem:[%s5552_s2 + $0xa0] sm:$0xff]  }
 0x177   :  { %3572 = vmatprep.mubr.msk.bf16.mxu0 %vm3814_vm0, %v5621_v8  ;;  %3682 = vmatprep.mubr.msk.bf16.mxu1 %vm3814_vm0, %v5621_v8  ;;  %v3800_v32 = vld [vmem:[%s5553_s3 + $0xa0] sm:$0xff]  }
 0x178   :  { %5640 = vst [vmem:[#allocation28_spill] sm:$0xff] %v4791_v16  ;;  %5641 = vst [vmem:[#allocation29_spill] sm:$0xff] %v4794_v47 }
 0x179   :  { %v495_v34 = vpop.f32.mrb[72].mxu0  ;;  %v1084_v54 = vpop.f32.mrb[72].mxu1 }
 0x17a   :  { %v591_v13 = vmul.f32 %v4217_v61, %v495_v34  ;;  %v1174_v15 = vmul.f32 %v4217_v61, %v1084_v54  ;;  %v3346_v43 = vpop.f32.mrb[73].mxu0  ;;  %v3456_v19 = vpop.f32.mrb[73].mxu1 }
 0x17b   :  { %v498_v28 = vpop.f32.mrb[74].mxu0  ;;  %v1087_v56 = vpop.f32.mrb[74].mxu1 }
 0x17c   :  { %v4813_v39 = vadd.f32 %v4226_v62, %v591_v13  ;;  %v4816_v47 = vadd.f32 %v4226_v62, %v1174_v15  ;;  %v592_v34 = vmul.f32 %v4217_v61, %v498_v28  ;;  %v1175_v54 = vmul.f32 %v4217_v61, %v1087_v56  ;;  %v3347_v43 = vpop.f32.mrb[75].mxu0  ;;  %v3457_v19 = vpop.f32.mrb[75].mxu1 }
 0x17e   :  { %5642 = vst [vmem:[#allocation30_spill] sm:$0xff] %v4813_v39  ;;  %5643 = vst [vmem:[#allocation31_spill] sm:$0xff] %v4816_v47  ;;  %v4823_v0 = vadd.f32 %v4226_v62, %v592_v34  ;;  %v4826_v36 = vadd.f32 %v4226_v62, %v1175_v54  ;;  %3573 = vmatmul.mubr.msk.bf16.gmra.mrb[180].mxu0 %vm237_vm2, %v3799_v29  ;;  %3683 = vmatmul.mubr.msk.bf16.gmra.mrb[180].mxu1 %vm237_vm2, %v3800_v32  ;;  %v3801_v29 = vld [vmem:[%s5552_s2 + $0xa8] sm:$0xff]  }
 0x17f   :  { %3576 = vmatprep.mubr.msk.bf16.mxu0 %vm3814_vm0, %v5621_v8  ;;  %3686 = vmatprep.mubr.msk.bf16.mxu1 %vm3814_vm0, %v5621_v8  ;;  %v3802_v32 = vld [vmem:[%s5553_s3 + $0xa8] sm:$0xff]  }
 0x180   :  { %5644 = vst [vmem:[#allocation32_spill] sm:$0xff] %v4823_v0  ;;  %5645 = vst [vmem:[#allocation33_spill] sm:$0xff] %v4826_v36 }
 0x181   :  { %v503_v13 = vpop.f32.mrb[76].mxu0  ;;  %v1092_v15 = vpop.f32.mrb[76].mxu1 }
 0x182   :  { %v593_v28 = vmul.f32 %v4217_v61, %v503_v13  ;;  %v1176_v34 = vmul.f32 %v4217_v61, %v1092_v15  ;;  %v3350_v54 = vpop.f32.mrb[77].mxu0  ;;  %v3460_v43 = vpop.f32.mrb[77].mxu1 }
 0x183   :  { %v506_v19 = vpop.f32.mrb[78].mxu0  ;;  %v1095_v16 = vpop.f32.mrb[78].mxu1 }
 0x184   :  { %v4845_v56 = vadd.f32 %v4226_v62, %v593_v28  ;;  %v4848_v36 = vadd.f32 %v4226_v62, %v1176_v34  ;;  %v594_v13 = vmul.f32 %v4217_v61, %v506_v19  ;;  %v1177_v15 = vmul.f32 %v4217_v61, %v1095_v16  ;;  %v3351_v54 = vpop.f32.mrb[79].mxu0  ;;  %v3461_v43 = vpop.f32.mrb[79].mxu1 }
 0x186   :  { %5646 = vst [vmem:[#allocation34_spill] sm:$0xff] %v4845_v56  ;;  %5647 = vst [vmem:[#allocation35_spill] sm:$0xff] %v4848_v36  ;;  %v4855_v47 = vadd.f32 %v4226_v62, %v594_v13  ;;  %v4858_v39 = vadd.f32 %v4226_v62, %v1177_v15  ;;  %3577 = vmatmul.mubr.msk.bf16.gmra.mrb[184].mxu0 %vm237_vm2, %v3801_v29  ;;  %3687 = vmatmul.mubr.msk.bf16.gmra.mrb[184].mxu1 %vm237_vm2, %v3802_v32  ;;  %v3803_v29 = vld [vmem:[%s5552_s2 + $0xb0] sm:$0xff]  }
 0x187   :  { %3580 = vmatprep.mubr.msk.bf16.mxu0 %vm3814_vm0, %v5621_v8  ;;  %3690 = vmatprep.mubr.msk.bf16.mxu1 %vm3814_vm0, %v5621_v8  ;;  %v3804_v32 = vld [vmem:[%s5553_s3 + $0xb0] sm:$0xff]  }
 0x188   :  { %5648 = vst [vmem:[#allocation36_spill] sm:$0xff] %v4855_v47  ;;  %5649 = vst [vmem:[#allocation37_spill] sm:$0xff] %v4858_v39 }
 0x189   :  { %v511_v28 = vpop.f32.mrb[80].mxu0  ;;  %v1100_v34 = vpop.f32.mrb[80].mxu1 }
 0x18a   :  { %v595_v19 = vmul.f32 %v4217_v61, %v511_v28  ;;  %v1178_v13 = vmul.f32 %v4217_v61, %v1100_v34  ;;  %v3354_v15 = vpop.f32.mrb[81].mxu0  ;;  %v3464_v54 = vpop.f32.mrb[81].mxu1 }
 0x18b   :  { %v514_v43 = vpop.f32.mrb[82].mxu0  ;;  %v1103_v0 = vpop.f32.mrb[82].mxu1 }
 0x18c   :  { %v4877_v16 = vadd.f32 %v4226_v62, %v595_v19  ;;  %v4880_v39 = vadd.f32 %v4226_v62, %v1178_v13  ;;  %v596_v28 = vmul.f32 %v4217_v61, %v514_v43  ;;  %v1179_v34 = vmul.f32 %v4217_v61, %v1103_v0  ;;  %v3355_v15 = vpop.f32.mrb[83].mxu0  ;;  %v3465_v54 = vpop.f32.mrb[83].mxu1  ;;  %v4911_v0 = vld [vmem:[%s5555_s6] ss:$0 sm:$0xff] }
 0x18e   :  { %5650 = vst [vmem:[#allocation38_spill] sm:$0xff] %v4877_v16  ;;  %5651 = vst [vmem:[#allocation39_spill] sm:$0xff] %v4880_v39  ;;  %v4887_v36 = vadd.f32 %v4226_v62, %v596_v28  ;;  %v4890_v56 = vadd.f32 %v4226_v62, %v1179_v34  ;;  %3581 = vmatmul.mubr.msk.bf16.gmra.mrb[188].mxu0 %vm237_vm2, %v3803_v29  ;;  %3691 = vmatmul.mubr.msk.bf16.gmra.mrb[188].mxu1 %vm237_vm2, %v3804_v32  ;;  %v3805_v29 = vld [vmem:[%s5552_s2 + $0xb8] sm:$0xff]  }
 0x18f   :  { %3584 = vmatprep.mubr.msk.bf16.mxu0 %vm3814_vm0, %v5621_v8  ;;  %3694 = vmatprep.mubr.msk.bf16.mxu1 %vm3814_vm0, %v5621_v8  ;;  %v3806_v32 = vld [vmem:[%s5553_s3 + $0xb8] sm:$0xff]  }
 0x190   :  { %5652 = vst [vmem:[#allocation40_spill] sm:$0xff] %v4887_v36  ;;  %5653 = vst [vmem:[#allocation41_spill] sm:$0xff] %v4890_v56 }
 0x191   :  { %v519_v19 = vpop.f32.mrb[84].mxu0  ;;  %v1108_v13 = vpop.f32.mrb[84].mxu1 }
 0x192   :  { %v597_v43 = vmul.f32 %v4217_v61, %v519_v19  ;;  %v1180_v62 = vmul.f32 %v4217_v61, %v1108_v13  ;;  %v3358_v28 = vpop.f32.mrb[85].mxu0  ;;  %v3468_v34 = vpop.f32.mrb[85].mxu1  ;;  %v4922_v13 = vld [vmem:[%s5554_s5] ss:$0 sm:$0xff] }
 0x193   :  { %v522_v15 = vpop.f32.mrb[86].mxu0  ;;  %v1111_v54 = vpop.f32.mrb[86].mxu1 }
 0x194   :  { %v4914_v19 = vadd.f32 %v4911_v0, %v597_v43  ;;  %v4917_v61 = vadd.f32 %v4911_v0, %v1180_v62  ;;  %v598_v28 = vmul.f32 %v4922_v13, %v522_v15  ;;  %v1181_v34 = vmul.f32 %v4922_v13, %v1111_v54  ;;  %v3359_v47 = vpop.f32.mrb[87].mxu0  ;;  %v3469_v56 = vpop.f32.mrb[87].mxu1 }
 0x196   :  { %5654 = vst [vmem:[#allocation42_spill] sm:$0xff] %v4914_v19  ;;  %5655 = vst [vmem:[#allocation43_spill] sm:$0xff] %v4917_v61  ;;  %v4929_v43 = vadd.f32 %v4911_v0, %v598_v28  ;;  %v4932_v62 = vadd.f32 %v4911_v0, %v1181_v34  ;;  %3585 = vmatmul.mubr.msk.bf16.gmra.mrb[192].mxu0 %vm237_vm2, %v3805_v29  ;;  %3695 = vmatmul.mubr.msk.bf16.gmra.mrb[192].mxu1 %vm237_vm2, %v3806_v32  ;;  %v3807_v29 = vld [vmem:[%s5552_s2 + $0xc0] ss:$0 sps:$4 sm:$0xff]  }
 0x197   :  { %3588 = vmatprep.mubr.msk.bf16.mxu0 %vm3814_vm0, %v5621_v8  ;;  %3698 = vmatprep.mubr.msk.bf16.mxu1 %vm3814_vm0, %v5621_v8  ;;  %v3808_v32 = vld [vmem:[%s5553_s3 + $0xc0] ss:$0 sps:$4 sm:$0xff]  }
 0x198   :  { %5656 = vst [vmem:[#allocation44_spill] sm:$0xff] %v4929_v43  ;;  %5657 = vst [vmem:[#allocation45_spill] sm:$0xff] %v4932_v62 }
 0x199   :  { %v527_v56 = vpop.f32.mrb[88].mxu0  ;;  %v1116_v15 = vpop.f32.mrb[88].mxu1 }
 0x19a   :  { %v599_v54 = vmul.f32 %v4922_v13, %v527_v56  ;;  %v1182_v28 = vmul.f32 %v4922_v13, %v1116_v15  ;;  %v3362_v34 = vpop.f32.mrb[89].mxu0  ;;  %v3472_v36 = vpop.f32.mrb[89].mxu1 }
 0x19b   :  { %v530_v8 = vpop.f32.mrb[90].mxu0  ;;  %v1119_v61 = vpop.f32.mrb[90].mxu1 }
 0x19c   :  { %v4951_v47 = vadd.f32 %v4911_v0, %v599_v54  ;;  %v4954_v62 = vadd.f32 %v4911_v0, %v1182_v28  ;;  %v600_v56 = vmul.f32 %v4922_v13, %v530_v8  ;;  %v1183_v36 = vmul.f32 %v4922_v13, %v1119_v61  ;;  %v3363_v15 = vpop.f32.mrb[91].mxu0  ;;  %v3473_v34 = vpop.f32.mrb[91].mxu1 }
 0x19e   :  { %5658 = vst [vmem:[#allocation46_spill] sm:$0xff] %v4951_v47  ;;  %5659 = vst [vmem:[#allocation47_spill] sm:$0xff] %v4954_v62  ;;  %v4961_v19 = vadd.f32 %v4911_v0, %v600_v56  ;;  %v4964_v39 = vadd.f32 %v4911_v0, %v1183_v36  ;;  %3589 = vmatmul.mubr.msk.bf16.gmra.mrb[196].mxu0 %vm237_vm2, %v3807_v29  ;;  %3699 = vmatmul.mubr.msk.bf16.gmra.mrb[196].mxu1 %vm237_vm2, %v3808_v32 }
 0x1a0   :  { %5660 = vst [vmem:[#allocation48_spill] sm:$0xff] %v4961_v19  ;;  %5661 = vst [vmem:[#allocation49_spill] sm:$0xff] %v4964_v39 }
 0x1a1   :  { %v535_v28 = vpop.f32.mrb[92].mxu0  ;;  %v1124_v61 = vpop.f32.mrb[92].mxu1 }
 0x1a2   :  { %v601_v8 = vmul.f32 %v4922_v13, %v535_v28  ;;  %v1184_v15 = vmul.f32 %v4922_v13, %v1124_v61  ;;  %v3366_v34 = vpop.f32.mrb[93].mxu0  ;;  %v3476_v43 = vpop.f32.mrb[93].mxu1 }
 0x1a3   :  { %v538_v56 = vpop.f32.mrb[94].mxu0  ;;  %v1127_v62 = vpop.f32.mrb[94].mxu1 }
 0x1a4   :  { %v4973_v36 = vadd.f32 %v4911_v0, %v601_v8  ;;  %v4976_v29 = vadd.f32 %v4911_v0, %v1184_v15  ;;  %v602_v32 = vmul.f32 %v4922_v13, %v538_v56  ;;  %v1185_v54 = vmul.f32 %v4922_v13, %v1127_v62  ;;  %v3367_v39 = vpop.f32.mrb[95].mxu0  ;;  %v3477_v19 = vpop.f32.mrb[95].mxu1 }
 0x1a6   :  { %5662 = vst [vmem:[#allocation50_spill] sm:$0xff] %v4973_v36  ;;  %5663 = vst [vmem:[#allocation51_spill] sm:$0xff] %v4976_v29  ;;  %v4983_v61 = vadd.f32 %v4911_v0, %v602_v32  ;;  %v4986_v43 = vadd.f32 %v4911_v0, %v1185_v54 }
 0x1a8   :  { %5664 = vst [vmem:[#allocation52_spill] sm:$0xff] %v4983_v61  ;;  %5665 = vst [vmem:[#allocation53_spill] sm:$0xff] %v4986_v43 }
 0x1a9   :  { %v543_v15 = vpop.f32.mrb[96].mxu0  ;;  %v1132_v34 = vpop.f32.mrb[96].mxu1 }
 0x1aa   :  { %v603_v56 = vmul.f32 %v4922_v13, %v543_v15  ;;  %v1186_v62 = vmul.f32 %v4922_v13, %v1132_v34  ;;  %v3370_v39 = vpop.f32.mrb[97].mxu0  ;;  %v3480_v19 = vpop.f32.mrb[97].mxu1 }
 0x1ab   :  { %v546_v47 = vpop.f32.mrb[98].mxu0  ;;  %v1135_v16 = vpop.f32.mrb[98].mxu1 }
 0x1ac   :  { %v4993_v28 = vadd.f32 %v4911_v0, %v603_v56  ;;  %v4996_v32 = vadd.f32 %v4911_v0, %v1186_v62  ;;  %v3371_v54 = vpop.f32.mrb[99].mxu0  ;;  %v3481_v29 = vpop.f32.mrb[99].mxu1 }
 0x1ae   :  { %5666 = vst [vmem:[#allocation54_spill] sm:$0xff] %v4993_v28  ;;  %5667 = vst [vmem:[#allocation55_spill] sm:$0xff] %v4996_v32 }
 0x1b1   :  { %v1566_v43 = vpop.f32.mrb[100].mxu0  ;;  %v2143_v61 = vpop.f32.mrb[100].mxu1 }
 0x1b2   :  { %v1764_v15 = vmul.f32 %v4922_v13, %v1566_v43  ;;  %v2341_v34 = vmul.f32 %v4922_v13, %v2143_v61  ;;  %v3494_v39 = vpop.f32.mrb[101].mxu0  ;;  %v3604_v47 = vpop.f32.mrb[101].mxu1  ;;  %v5668_v61 = vmax.f32 %v4237_v10, %v4240_v11 }
 0x1b3   :  { %v1569_v16 = vpop.f32.mrb[102].mxu0  ;;  %v2146_v19 = vpop.f32.mrb[102].mxu1 }
 0x1b4   :  { %v1813_v56 = vadd.f32 %v4911_v0, %v1764_v15  ;;  %v2390_v62 = vadd.f32 %v4911_v0, %v2341_v34  ;;  %v1765_v54 = vmul.f32 %v4922_v13, %v1569_v16  ;;  %v2342_v29 = vmul.f32 %v4922_v13, %v2146_v19  ;;  %v3495_v36 = vpop.f32.mrb[103].mxu0  ;;  %v3605_v8 = vpop.f32.mrb[103].mxu1 }
 0x1b5   :  { %v5669_v34 = vmax.f32 %v4247_v17, %v4250_v18 }
 0x1b6   :  { %v2439_v32 = vmax.f32 %v1813_v56, %v2390_v62  ;;  %v1814_v28 = vadd.f32 %v4911_v0, %v1765_v54  ;;  %v2391_v43 = vadd.f32 %v4911_v0, %v2342_v29 }
 0x1b8   :  { %v2488_v39 = vmax.f32 %v5668_v61, %v2439_v32  ;;  %v2440_v47 = vmax.f32 %v1814_v28, %v2391_v43 }
 0x1b9   :  { %v1574_v59 = vpop.f32.mrb[104].mxu0  ;;  %v2151_v15 = vpop.f32.mrb[104].mxu1 }
 0x1ba   :  { %v2537_v1 = vmax.f32 %v2488_v39, 0.0  ;;  %v2489_v16 = vmax.f32 %v5669_v34, %v2440_v47  ;;  %v1766_v36 = vmul.f32 %v4922_v13, %v1574_v59  ;;  %v2343_v8 = vmul.f32 %v4922_v13, %v2151_v15  ;;  %v3498_v19 = vpop.f32.mrb[105].mxu0  ;;  %v3608_v56 = vpop.f32.mrb[105].mxu1 }
 0x1bb   :  { %v1577_v62 = vpop.f32.mrb[106].mxu0  ;;  %v2154_v54 = vpop.f32.mrb[106].mxu1  ;;  %v5670_v47 = vmax.f32 %v4269_v30, %v4272_v31 }
 0x1bc   :  { %v3093_v29 = vpack.c.bf16 %v2537_v1, %v2537_v1  ;;  %v2538_v10 = vmax.f32 %v2489_v16, 0.0  ;;  %v1815_v11 = vadd.f32 %v4911_v0, %v1766_v36  ;;  %v2392_v28 = vadd.f32 %v4911_v0, %v2343_v8  ;;  %v3499_v32 = vpop.f32.mrb[107].mxu0  ;;  %v3609_v43 = vpop.f32.mrb[107].mxu1 }
 0x1bd   :  { %v1767_v17 = vmul.f32 %v4922_v13, %v1577_v62  ;;  %v2344_v18 = vmul.f32 %v4922_v13, %v2154_v54 }
 0x1be   :  { %2784 = vst.msk [vmem:[%s5556_s7] sm:$0xf] %vm2783_vm3, %v3093_v29  ;;  %v3094_v59 = vpack.c.bf16 %v2538_v10, %v2538_v10  ;;  %v2441_v61 = vmax.f32 %v1815_v11, %v2392_v28  ;;  %v5671_v29 = vmax.f32 %v4279_v37, %v4282_v38 }
 0x1bf   :  { %v1816_v1 = vadd.f32 %v4911_v0, %v1767_v17  ;;  %v2393_v39 = vadd.f32 %v4911_v0, %v2344_v18 }
 0x1c0   :  { %2785 = vst.msk [vmem:[%s5556_s7 + $0x4] sm:$0xf] %vm2783_vm3, %v3094_v59  ;;  %v2490_v15 = vmax.f32 %v5670_v47, %v2441_v61  ;;  %v5672_v47 = vmax.f32 %v4301_v50, %v4304_v51 }
 0x1c1   :  { %v2442_v34 = vmax.f32 %v1816_v1, %v2393_v39  ;;  %v1582_v16 = vpop.f32.mrb[108].mxu0  ;;  %v2159_v36 = vpop.f32.mrb[108].mxu1 }
 0x1c2   :  { %v2539_v8 = vmax.f32 %v2490_v15, 0.0  ;;  %v1768_v19 = vmul.f32 %v4922_v13, %v1582_v16  ;;  %v2345_v56 = vmul.f32 %v4922_v13, %v2159_v36  ;;  %v3502_v62 = vpop.f32.mrb[109].mxu0  ;;  %v3612_v54 = vpop.f32.mrb[109].mxu1 }
 0x1c3   :  { %v2491_v10 = vmax.f32 %v5671_v29, %v2442_v34  ;;  %v1585_v11 = vpop.f32.mrb[110].mxu0  ;;  %v2162_v28 = vpop.f32.mrb[110].mxu1  ;;  %v5673_v29 = vmax.f32 %v4311_v57, %v4314_v58 }
 0x1c4   :  { %v3095_v32 = vpack.c.bf16 %v2539_v8, %v2539_v8  ;;  %v1817_v30 = vadd.f32 %v4911_v0, %v1768_v19  ;;  %v2394_v31 = vadd.f32 %v4911_v0, %v2345_v56  ;;  %v1769_v43 = vmul.f32 %v4922_v13, %v1585_v11  ;;  %v3503_v17 = vpop.f32.mrb[111].mxu0  ;;  %v3613_v18 = vpop.f32.mrb[111].mxu1 }
 0x1c5   :  { %v2540_v59 = vmax.f32 %v2491_v10, 0.0  ;;  %v2346_v61 = vmul.f32 %v4922_v13, %v2162_v28 }
 0x1c6   :  { %2786 = vst.msk [vmem:[%s5556_s7 + $0x8] sm:$0xf] %vm2783_vm3, %v3095_v32  ;;  %v2443_v37 = vmax.f32 %v1817_v30, %v2394_v31  ;;  %v1818_v38 = vadd.f32 %v4911_v0, %v1769_v43 }
 0x1c7   :  { %v3096_v1 = vpack.c.bf16 %v2540_v59, %v2540_v59  ;;  %v2395_v39 = vadd.f32 %v4911_v0, %v2346_v61 }
 0x1c8   :  { %v2492_v15 = vmax.f32 %v5672_v47, %v2443_v37  ;;  %v5674_v37 = vmax.f32 %v4333_v9, %v4336_v12 }
 0x1c9   :  { %2787 = vst.msk [vmem:[%s5556_s7 + $0xc] sm:$0xf] %vm2783_vm3, %v3096_v1  ;;  %v2444_v34 = vmax.f32 %v1818_v38, %v2395_v39  ;;  %v1590_v16 = vpop.f32.mrb[112].mxu0  ;;  %v2167_v36 = vpop.f32.mrb[112].mxu1 }
 0x1ca   :  { %v2541_v8 = vmax.f32 %v2492_v15, 0.0  ;;  %v1770_v19 = vmul.f32 %v4922_v13, %v1590_v16  ;;  %v2347_v56 = vmul.f32 %v4922_v13, %v2167_v36  ;;  %v3506_v62 = vpop.f32.mrb[113].mxu0  ;;  %v3616_v54 = vpop.f32.mrb[113].mxu1 }
 0x1cb   :  { %v2493_v50 = vmax.f32 %v5673_v29, %v2444_v34  ;;  %v1593_v51 = vpop.f32.mrb[114].mxu0  ;;  %v2170_v10 = vpop.f32.mrb[114].mxu1 }
 0x1cc   :  { %v3097_v11 = vpack.c.bf16 %v2541_v8, %v2541_v8  ;;  %v1819_v28 = vadd.f32 %v4911_v0, %v1770_v19  ;;  %v2396_v32 = vadd.f32 %v4911_v0, %v2347_v56  ;;  %v1771_v30 = vmul.f32 %v4922_v13, %v1593_v51  ;;  %v3507_v31 = vpop.f32.mrb[115].mxu0  ;;  %v3617_v43 = vpop.f32.mrb[115].mxu1 }
 0x1cd   :  { %v2542_v17 = vmax.f32 %v2493_v50, 0.0  ;;  %v2348_v18 = vmul.f32 %v4922_v13, %v2170_v10  ;;  %v5675_v19 = vmax.f32 %v4343_v22, %v4346_v23  ;;  %v5676_v31 = vmax.f32 %v4365_v41, %v4368_v42 }
 0x1ce   :  { %2788 = vst.msk [vmem:[%s5556_s7 + $0x10] sm:$0xf] %vm2783_vm3, %v3097_v11  ;;  %v2445_v57 = vmax.f32 %v1819_v28, %v2396_v32  ;;  %v1820_v58 = vadd.f32 %v4911_v0, %v1771_v30 }
 0x1cf   :  { %v3098_v59 = vpack.c.bf16 %v2542_v17, %v2542_v17  ;;  %v2397_v61 = vadd.f32 %v4911_v0, %v2348_v18 }
 0x1d0   :  { %v2494_v38 = vmax.f32 %v5674_v37, %v2445_v57 }
 0x1d1   :  { %2789 = vst.msk [vmem:[%s5556_s7 + $0x14] sm:$0xf] %vm2783_vm3, %v3098_v59  ;;  %v2446_v1 = vmax.f32 %v1820_v58, %v2397_v61  ;;  %v1598_v39 = vpop.f32.mrb[116].mxu0  ;;  %v2175_v47 = vpop.f32.mrb[116].mxu1 }
 0x1d2   :  { %v2543_v15 = vmax.f32 %v2494_v38, 0.0  ;;  %v1772_v34 = vmul.f32 %v4922_v13, %v1598_v39  ;;  %v2349_v16 = vmul.f32 %v4922_v13, %v2175_v47  ;;  %v3510_v36 = vpop.f32.mrb[117].mxu0  ;;  %v3620_v8 = vpop.f32.mrb[117].mxu1 }
 0x1d3   :  { %v2495_v9 = vmax.f32 %v5675_v19, %v2446_v1  ;;  %v1601_v12 = vpop.f32.mrb[118].mxu0  ;;  %v2178_v56 = vpop.f32.mrb[118].mxu1  ;;  %v5677_v1 = vmax.f32 %v4375_v48, %v4378_v49 }
 0x1d4   :  { %v3099_v62 = vpack.c.bf16 %v2543_v15, %v2543_v15  ;;  %v1821_v54 = vadd.f32 %v4911_v0, %v1772_v34  ;;  %v2398_v29 = vadd.f32 %v4911_v0, %v2349_v16  ;;  %v1773_v50 = vmul.f32 %v4922_v13, %v1601_v12  ;;  %v3511_v51 = vpop.f32.mrb[119].mxu0  ;;  %v3621_v10 = vpop.f32.mrb[119].mxu1 }
 0x1d5   :  { %v2544_v11 = vmax.f32 %v2495_v9, 0.0  ;;  %v2350_v28 = vmul.f32 %v4922_v13, %v2178_v56 }
 0x1d6   :  { %2790 = vst.msk [vmem:[%s5556_s7 + $0x18] sm:$0xf] %vm2783_vm3, %v3099_v62  ;;  %v2447_v22 = vmax.f32 %v1821_v54, %v2398_v29  ;;  %v1822_v23 = vadd.f32 %v4911_v0, %v1773_v50  ;;  %v5678_v62 = vmax.f32 %v4397_v6, %v4400_v7 }
 0x1d7   :  { %v3100_v32 = vpack.c.bf16 %v2544_v11, %v2544_v11  ;;  %v2399_v30 = vadd.f32 %v4911_v0, %v2350_v28 }
 0x1d8   :  { %v2496_v43 = vmax.f32 %v5676_v31, %v2447_v22 }
 0x1d9   :  { %2791 = vst.msk [vmem:[%s5556_s7 + $0x1c] sm:$0xf] %vm2783_vm3, %v3100_v32  ;;  %v2448_v17 = vmax.f32 %v1822_v23, %v2399_v30  ;;  %v1606_v18 = vpop.f32.mrb[120].mxu0  ;;  %v2183_v57 = vpop.f32.mrb[120].mxu1  ;;  %v5679_v32 = vmax.f32 %v4407_v25, %v4410_v26 }
 0x1da   :  { %v2545_v58 = vmax.f32 %v2496_v43, 0.0  ;;  %v1774_v59 = vmul.f32 %v4922_v13, %v1606_v18  ;;  %v2351_v61 = vmul.f32 %v4922_v13, %v2183_v57  ;;  %v3514_v37 = vpop.f32.mrb[121].mxu0  ;;  %v3624_v38 = vpop.f32.mrb[121].mxu1 }
 0x1db   :  { %v2497_v41 = vmax.f32 %v5677_v1, %v2448_v17  ;;  %v1609_v42 = vpop.f32.mrb[122].mxu0  ;;  %v2186_v39 = vpop.f32.mrb[122].mxu1  ;;  %v5680_v1 = vmax.f32 %v4429_v46, %v4432_v53 }
 0x1dc   :  { %v3101_v47 = vpack.c.bf16 %v2545_v58, %v2545_v58  ;;  %v1823_v15 = vadd.f32 %v4911_v0, %v1774_v59  ;;  %v2400_v34 = vadd.f32 %v4911_v0, %v2351_v61  ;;  %v1775_v16 = vmul.f32 %v4922_v13, %v1609_v42  ;;  %v3515_v36 = vpop.f32.mrb[123].mxu0  ;;  %v3625_v8 = vpop.f32.mrb[123].mxu1 }
 0x1dd   :  { %v2546_v19 = vmax.f32 %v2497_v41, 0.0  ;;  %v2352_v9 = vmul.f32 %v4922_v13, %v2186_v39 }
 0x1de   :  { %2792 = vst.msk [vmem:[%s5556_s7 + $0x20] sm:$0xf] %vm2783_vm3, %v3101_v47  ;;  %v2449_v48 = vmax.f32 %v1823_v15, %v2400_v34  ;;  %v1824_v49 = vadd.f32 %v4911_v0, %v1775_v16 }
 0x1df   :  { %v3102_v12 = vpack.c.bf16 %v2546_v19, %v2546_v19  ;;  %v2401_v56 = vadd.f32 %v4911_v0, %v2352_v9  ;;  %v5681_v19 = vmax.f32 %v4439_v2, %v4442_v3 }
 0x1e0   :  { %v2498_v54 = vmax.f32 %v5678_v62, %v2449_v48 }
 0x1e1   :  { %2793 = vst.msk [vmem:[%s5556_s7 + $0x24] sm:$0xf] %vm2783_vm3, %v3102_v12  ;;  %v2450_v29 = vmax.f32 %v1824_v49, %v2401_v56  ;;  %v1614_v50 = vpop.f32.mrb[124].mxu0  ;;  %v2191_v51 = vpop.f32.mrb[124].mxu1 }
 0x1e2   :  { %v2547_v10 = vmax.f32 %v2498_v54, 0.0  ;;  %v1776_v11 = vmul.f32 %v4922_v13, %v1614_v50  ;;  %v2353_v28 = vmul.f32 %v4922_v13, %v2191_v51  ;;  %v3518_v22 = vpop.f32.mrb[125].mxu0  ;;  %v3628_v23 = vpop.f32.mrb[125].mxu1 }
 0x1e3   :  { %v2499_v6 = vmax.f32 %v5679_v32, %v2450_v29  ;;  %v1617_v7 = vpop.f32.mrb[126].mxu0  ;;  %v2194_v30 = vpop.f32.mrb[126].mxu1 }
 0x1e4   :  { %v3103_v31 = vpack.c.bf16 %v2547_v10, %v2547_v10  ;;  %v1825_v43 = vadd.f32 %v4911_v0, %v1776_v11  ;;  %v2402_v17 = vadd.f32 %v4911_v0, %v2353_v28  ;;  %v1777_v18 = vmul.f32 %v4922_v13, %v1617_v7  ;;  %v3519_v57 = vpop.f32.mrb[127].mxu0  ;;  %v3629_v58 = vpop.f32.mrb[127].mxu1 }
 0x1e5   :  { %v2548_v59 = vmax.f32 %v2499_v6, 0.0  ;;  %v2354_v61 = vmul.f32 %v4922_v13, %v2194_v30  ;;  %v5682_v11 = vmax.f32 %v4461_v35, %v4464_v40 }
 0x1e6   :  { %2794 = vst.msk [vmem:[%s5556_s7 + $0x28] sm:$0xf] %vm2783_vm3, %v3103_v31  ;;  %v2451_v25 = vmax.f32 %v1825_v43, %v2402_v17  ;;  %v1826_v26 = vadd.f32 %v4911_v0, %v1777_v18  ;;  %v5683_v17 = vmax.f32 %v4471_v60, %v4474_v63 }
 0x1e7   :  { %v3104_v37 = vpack.c.bf16 %v2548_v59, %v2548_v59  ;;  %v2403_v38 = vadd.f32 %v4911_v0, %v2354_v61 }
 0x1e8   :  { %v2500_v41 = vmax.f32 %v5680_v1, %v2451_v25 }
 0x1e9   :  { %2795 = vst.msk [vmem:[%s5556_s7 + $0x2c] sm:$0xf] %vm2783_vm3, %v3104_v37  ;;  %v2452_v42 = vmax.f32 %v1826_v26, %v2403_v38  ;;  %v1622_v39 = vpop.f32.mrb[128].mxu0  ;;  %v2199_v47 = vpop.f32.mrb[128].mxu1 }
 0x1ea   :  { %v2549_v15 = vmax.f32 %v2500_v41, 0.0  ;;  %v1778_v34 = vmul.f32 %v4922_v13, %v1622_v39  ;;  %v2355_v16 = vmul.f32 %v4922_v13, %v2199_v47  ;;  %v3522_v36 = vpop.f32.mrb[129].mxu0  ;;  %v3632_v8 = vpop.f32.mrb[129].mxu1 }
 0x1eb   :  { %v2501_v46 = vmax.f32 %v5681_v19, %v2452_v42  ;;  %v1625_v53 = vpop.f32.mrb[130].mxu0  ;;  %v2202_v9 = vpop.f32.mrb[130].mxu1  ;;  %v5684_v42 = vmax.f32 %v4493_v44, %v4496_v45 }
 0x1ec   :  { %v3105_v48 = vpack.c.bf16 %v2549_v15, %v2549_v15  ;;  %v1827_v49 = vadd.f32 %v4911_v0, %v1778_v34  ;;  %v2404_v12 = vadd.f32 %v4911_v0, %v2355_v16  ;;  %v1779_v56 = vmul.f32 %v4922_v13, %v1625_v53  ;;  %v3523_v62 = vpop.f32.mrb[131].mxu0  ;;  %v3633_v54 = vpop.f32.mrb[131].mxu1 }
 0x1ed   :  { %v2550_v29 = vmax.f32 %v2501_v46, 0.0  ;;  %v2356_v50 = vmul.f32 %v4922_v13, %v2202_v9  ;;  %v5685_v53 = vmax.f32 %v4503_v5, %v4506_v55 }
 0x1ee   :  { %2796 = vst.msk [vmem:[%s5556_s7 + $0x30] sm:$0xf] %vm2783_vm3, %v3105_v48  ;;  %v2453_v2 = vmax.f32 %v1827_v49, %v2404_v12  ;;  %v1828_v3 = vadd.f32 %v4911_v0, %v1779_v56 }
 0x1ef   :  { %v3106_v51 = vpack.c.bf16 %v2550_v29, %v2550_v29  ;;  %v2405_v10 = vadd.f32 %v4911_v0, %v2356_v50 }
 0x1f0   :  { %v2502_v28 = vmax.f32 %v5682_v11, %v2453_v2 }
 0x1f1   :  { %2797 = vst.msk [vmem:[%s5556_s7 + $0x34] sm:$0xf] %vm2783_vm3, %v3106_v51  ;;  %v2454_v22 = vmax.f32 %v1828_v3, %v2405_v10  ;;  %v1630_v23 = vpop.f32.mrb[132].mxu0  ;;  %v2207_v32 = vpop.f32.mrb[132].mxu1  ;;  %v5686_v51 = vmax.f32 %v4525_v14, %v4528_v4 }
 0x1f2   :  { %v2551_v6 = vmax.f32 %v2502_v28, 0.0  ;;  %v1780_v7 = vmul.f32 %v4922_v13, %v1630_v23  ;;  %v2357_v30 = vmul.f32 %v4922_v13, %v2207_v32  ;;  %v3526_v31 = vpop.f32.mrb[133].mxu0  ;;  %v3636_v43 = vpop.f32.mrb[133].mxu1 }
 0x1f3   :  { %v2503_v35 = vmax.f32 %v5683_v17, %v2454_v22  ;;  %v1633_v40 = vpop.f32.mrb[134].mxu0  ;;  %v2210_v18 = vpop.f32.mrb[134].mxu1  ;;  %v5687_v31 = vmax.f32 %v4535_v27, %v4538_v20 }
 0x1f4   :  { %v3107_v57 = vpack.c.bf16 %v2551_v6, %v2551_v6  ;;  %v1829_v58 = vadd.f32 %v4911_v0, %v1780_v7  ;;  %v2406_v59 = vadd.f32 %v4911_v0, %v2357_v30  ;;  %v1781_v61 = vmul.f32 %v4922_v13, %v1633_v40  ;;  %v3527_v25 = vpop.f32.mrb[135].mxu0  ;;  %v3637_v26 = vpop.f32.mrb[135].mxu1 }
 0x1f5   :  { %v2552_v37 = vmax.f32 %v2503_v35, 0.0  ;;  %v2358_v38 = vmul.f32 %v4922_v13, %v2210_v18 }
 0x1f6   :  { %2798 = vst.msk [vmem:[%s5556_s7 + $0x38] sm:$0xf] %vm2783_vm3, %v3107_v57  ;;  %v2455_v60 = vmax.f32 %v1829_v58, %v2406_v59  ;;  %v1830_v63 = vadd.f32 %v4911_v0, %v1781_v61 }
 0x1f7   :  { %v3108_v1 = vpack.c.bf16 %v2552_v37, %v2552_v37  ;;  %v2407_v41 = vadd.f32 %v4911_v0, %v2358_v38  ;;  %v5688_v37 = vmax.f32 %v4557_v33, %v4560_v52 }
 0x1f8   :  { %v2504_v39 = vmax.f32 %v5684_v42, %v2455_v60 }
 0x1f9   :  { %2799 = vst.msk [vmem:[%s5556_s7 + $0x3c] sm:$0xf] %vm2783_vm3, %v3108_v1  ;;  %v2456_v47 = vmax.f32 %v1830_v63, %v2407_v41  ;;  %v1638_v15 = vpop.f32.mrb[136].mxu0  ;;  %v2215_v34 = vpop.f32.mrb[136].mxu1 }
 0x1fa   :  { %v2553_v16 = vmax.f32 %v2504_v39, 0.0  ;;  %v1782_v36 = vmul.f32 %v4922_v13, %v1638_v15  ;;  %v2359_v8 = vmul.f32 %v4922_v13, %v2215_v34  ;;  %v3530_v19 = vpop.f32.mrb[137].mxu0  ;;  %v3640_v46 = vpop.f32.mrb[137].mxu1  ;;  %v5689_v34 = vmax.f32 %v4567_v24, %v4570_v21 }
 0x1fb   :  { %v2505_v44 = vmax.f32 %v5685_v53, %v2456_v47  ;;  %v1641_v45 = vpop.f32.mrb[138].mxu0  ;;  %v2218_v9 = vpop.f32.mrb[138].mxu1 }
 0x1fc   :  { %v3109_v48 = vpack.c.bf16 %v2553_v16, %v2553_v16  ;;  %v1831_v49 = vadd.f32 %v4911_v0, %v1782_v36  ;;  %v2408_v12 = vadd.f32 %v4911_v0, %v2359_v8  ;;  %v1783_v56 = vmul.f32 %v4922_v13, %v1641_v45  ;;  %v3531_v62 = vpop.f32.mrb[139].mxu0  ;;  %v3641_v54 = vpop.f32.mrb[139].mxu1 }
 0x1fd   :  { %v2554_v29 = vmax.f32 %v2505_v44, 0.0  ;;  %v2360_v50 = vmul.f32 %v4922_v13, %v2218_v9 }
 0x1fe   :  { %2800 = vst.msk [vmem:[%s5556_s7 + $0x40] sm:$0xf] %vm2783_vm3, %v3109_v48  ;;  %v2457_v55 = vmax.f32 %v1831_v49, %v2408_v12  ;;  %v1832_v5 = vadd.f32 %v4911_v0, %v1783_v56  ;;  %v5690_v12 = vld [vmem:[#allocation2_spill] sm:$0xff]  ;;  %v5691_v56 = vld [vmem:[#allocation3_spill] sm:$0xff] }
 0x1ff   :  { %v3110_v2 = vpack.c.bf16 %v2554_v29, %v2554_v29  ;;  %v2409_v3 = vadd.f32 %v4911_v0, %v2360_v50  ;;  %v5692_v62 = vmax.f32 %v5690_v12, %v5691_v56 }
 0x200   :  { %v2506_v10 = vmax.f32 %v5686_v51, %v2457_v55 }
 0x201   :  { %2801 = vst.msk [vmem:[%s5556_s7 + $0x44] sm:$0xf] %vm2783_vm3, %v3110_v2  ;;  %v2458_v11 = vmax.f32 %v1832_v5, %v2409_v3  ;;  %v1646_v28 = vpop.f32.mrb[140].mxu0  ;;  %v2223_v22 = vpop.f32.mrb[140].mxu1 }
 0x202   :  { %v2555_v23 = vmax.f32 %v2506_v10, 0.0  ;;  %v1784_v32 = vmul.f32 %v4922_v13, %v1646_v28  ;;  %v2361_v6 = vmul.f32 %v4922_v13, %v2223_v22  ;;  %v3534_v7 = vpop.f32.mrb[141].mxu0  ;;  %v3644_v30 = vpop.f32.mrb[141].mxu1  ;;  %v5694_v28 = vld [vmem:[#allocation5_spill] sm:$0xff] }
 0x203   :  { %v2507_v4 = vmax.f32 %v5687_v31, %v2458_v11  ;;  %v1649_v14 = vpop.f32.mrb[142].mxu0  ;;  %v2226_v43 = vpop.f32.mrb[142].mxu1  ;;  %v5693_v11 = vld [vmem:[#allocation4_spill] sm:$0xff] }
 0x204   :  { %v3111_v17 = vpack.c.bf16 %v2555_v23, %v2555_v23  ;;  %v1833_v35 = vadd.f32 %v4911_v0, %v1784_v32  ;;  %v2410_v40 = vadd.f32 %v4911_v0, %v2361_v6  ;;  %v1785_v18 = vmul.f32 %v4922_v13, %v1649_v14  ;;  %v3535_v57 = vpop.f32.mrb[143].mxu0  ;;  %v3645_v58 = vpop.f32.mrb[143].mxu1 }
 0x205   :  { %v2556_v59 = vmax.f32 %v2507_v4, 0.0  ;;  %v2362_v61 = vmul.f32 %v4922_v13, %v2226_v43  ;;  %v5695_v22 = vmax.f32 %v5693_v11, %v5694_v28 }
 0x206   :  { %2802 = vst.msk [vmem:[%s5556_s7 + $0x48] sm:$0xf] %vm2783_vm3, %v3111_v17  ;;  %v2459_v20 = vmax.f32 %v1833_v35, %v2410_v40  ;;  %v1834_v27 = vadd.f32 %v4911_v0, %v1785_v18 }
 0x207   :  { %v3112_v25 = vpack.c.bf16 %v2556_v59, %v2556_v59  ;;  %v2411_v26 = vadd.f32 %v4911_v0, %v2362_v61  ;;  %v5696_v59 = vld [vmem:[#allocation6_spill] sm:$0xff]  ;;  %v5697_v61 = vld [vmem:[#allocation7_spill] sm:$0xff] }
 0x208   :  { %v2508_v38 = vmax.f32 %v5688_v37, %v2459_v20  ;;  %v5698_v20 = vmax.f32 %v5696_v59, %v5697_v61 }
 0x209   :  { %2803 = vst.msk [vmem:[%s5556_s7 + $0x4c] sm:$0xf] %vm2783_vm3, %v3112_v25  ;;  %v2460_v60 = vmax.f32 %v1834_v27, %v2411_v26  ;;  %v1654_v63 = vpop.f32.mrb[144].mxu0  ;;  %v2231_v1 = vpop.f32.mrb[144].mxu1 }
 0x20a   :  { %v2557_v41 = vmax.f32 %v2508_v38, 0.0  ;;  %v1786_v42 = vmul.f32 %v4922_v13, %v1654_v63  ;;  %v2363_v39 = vmul.f32 %v4922_v13, %v2231_v1  ;;  %v3538_v47 = vpop.f32.mrb[145].mxu0  ;;  %v3648_v15 = vpop.f32.mrb[145].mxu1 }
 0x20b   :  { %v2509_v52 = vmax.f32 %v5689_v34, %v2460_v60  ;;  %v1657_v33 = vpop.f32.mrb[146].mxu0  ;;  %v2234_v16 = vpop.f32.mrb[146].mxu1 }
 0x20c   :  { %v3113_v36 = vpack.c.bf16 %v2557_v41, %v2557_v41  ;;  %v1835_v8 = vadd.f32 %v4911_v0, %v1786_v42  ;;  %v2412_v19 = vadd.f32 %v4911_v0, %v2363_v39  ;;  %v1787_v46 = vmul.f32 %v4922_v13, %v1657_v33  ;;  %v3539_v53 = vpop.f32.mrb[147].mxu0  ;;  %v3649_v44 = vpop.f32.mrb[147].mxu1  ;;  %v5699_v42 = vld [vmem:[#allocation8_spill] sm:$0xff]  ;;  %v5700_v39 = vld [vmem:[#allocation9_spill] sm:$0xff] }
 0x20d   :  { %v2558_v45 = vmax.f32 %v2509_v52, 0.0  ;;  %v2364_v9 = vmul.f32 %v4922_v13, %v2234_v16  ;;  %v5701_v47 = vmax.f32 %v5699_v42, %v5700_v39 }
 0x20e   :  { %2804 = vst.msk [vmem:[%s5556_s7 + $0x50] sm:$0xf] %vm2783_vm3, %v3113_v36  ;;  %v2461_v21 = vmax.f32 %v1835_v8, %v2412_v19  ;;  %v1836_v24 = vadd.f32 %v4911_v0, %v1787_v46 }
 0x20f   :  { %v3114_v48 = vpack.c.bf16 %v2558_v45, %v2558_v45  ;;  %v2413_v49 = vadd.f32 %v4911_v0, %v2364_v9 }
 0x210   :  { %v2510_v54 = vmax.f32 %v5692_v62, %v2461_v21 }
 0x211   :  { %2805 = vst.msk [vmem:[%s5556_s7 + $0x54] sm:$0xf] %vm2783_vm3, %v3114_v48  ;;  %v2462_v29 = vmax.f32 %v1836_v24, %v2413_v49  ;;  %v1662_v50 = vpop.f32.mrb[148].mxu0  ;;  %v2239_v55 = vpop.f32.mrb[148].mxu1  ;;  %v5702_v48 = vld [vmem:[#allocation10_spill] sm:$0xff]  ;;  %v5703_v49 = vld [vmem:[#allocation11_spill] sm:$0xff] }
 0x212   :  { %v2559_v5 = vmax.f32 %v2510_v54, 0.0  ;;  %v1788_v2 = vmul.f32 %v4922_v13, %v1662_v50  ;;  %v2365_v3 = vmul.f32 %v4922_v13, %v2239_v55  ;;  %v3542_v51 = vpop.f32.mrb[149].mxu0  ;;  %v3652_v10 = vpop.f32.mrb[149].mxu1  ;;  %v5704_v12 = vmax.f32 %v5702_v48, %v5703_v49 }
 0x213   :  { %v2511_v23 = vmax.f32 %v5695_v22, %v2462_v29  ;;  %v1665_v32 = vpop.f32.mrb[150].mxu0  ;;  %v2242_v6 = vpop.f32.mrb[150].mxu1  ;;  %v5705_v51 = vld [vmem:[#allocation12_spill] sm:$0xff]  ;;  %v5706_v10 = vld [vmem:[#allocation13_spill] sm:$0xff] }
 0x214   :  { %v3115_v7 = vpack.c.bf16 %v2559_v5, %v2559_v5  ;;  %v1837_v30 = vadd.f32 %v4911_v0, %v1788_v2  ;;  %v2414_v31 = vadd.f32 %v4911_v0, %v2365_v3  ;;  %v1789_v4 = vmul.f32 %v4922_v13, %v1665_v32  ;;  %v3543_v14 = vpop.f32.mrb[151].mxu0  ;;  %v3653_v43 = vpop.f32.mrb[151].mxu1 }
 0x215   :  { %v2560_v17 = vmax.f32 %v2511_v23, 0.0  ;;  %v2366_v35 = vmul.f32 %v4922_v13, %v2242_v6  ;;  %v5707_v11 = vmax.f32 %v5705_v51, %v5706_v10 }
 0x216   :  { %2806 = vst.msk [vmem:[%s5556_s7 + $0x58] sm:$0xf] %vm2783_vm3, %v3115_v7  ;;  %v2463_v40 = vmax.f32 %v1837_v30, %v2414_v31  ;;  %v1838_v18 = vadd.f32 %v4911_v0, %v1789_v4 }
 0x217   :  { %v3116_v57 = vpack.c.bf16 %v2560_v17, %v2560_v17  ;;  %v2415_v58 = vadd.f32 %v4911_v0, %v2366_v35 }
 0x218   :  { %v2512_v27 = vmax.f32 %v5698_v20, %v2463_v40 }
 0x219   :  { %2807 = vst.msk [vmem:[%s5556_s7 + $0x5c] sm:$0xf] %vm2783_vm3, %v3116_v57  ;;  %v2464_v25 = vmax.f32 %v1838_v18, %v2415_v58  ;;  %v1670_v26 = vpop.f32.mrb[152].mxu0  ;;  %v2247_v37 = vpop.f32.mrb[152].mxu1  ;;  %v5708_v57 = vld [vmem:[#allocation14_spill] sm:$0xff]  ;;  %v5709_v58 = vld [vmem:[#allocation15_spill] sm:$0xff] }
 0x21a   :  { %v2561_v38 = vmax.f32 %v2512_v27, 0.0  ;;  %v1790_v60 = vmul.f32 %v4922_v13, %v1670_v26  ;;  %v2367_v63 = vmul.f32 %v4922_v13, %v2247_v37  ;;  %v3546_v1 = vpop.f32.mrb[153].mxu0  ;;  %v3656_v41 = vpop.f32.mrb[153].mxu1  ;;  %v5710_v59 = vmax.f32 %v5708_v57, %v5709_v58 }
 0x21b   :  { %v2513_v15 = vmax.f32 %v5701_v47, %v2464_v25  ;;  %v1673_v34 = vpop.f32.mrb[154].mxu0  ;;  %v2250_v52 = vpop.f32.mrb[154].mxu1  ;;  %v5711_v1 = vld [vmem:[#allocation16_spill] sm:$0xff]  ;;  %v5712_v41 = vld [vmem:[#allocation17_spill] sm:$0xff] }
 0x21c   :  { %v3117_v33 = vpack.c.bf16 %v2561_v38, %v2561_v38  ;;  %v1839_v16 = vadd.f32 %v4911_v0, %v1790_v60  ;;  %v2416_v36 = vadd.f32 %v4911_v0, %v2367_v63  ;;  %v1791_v8 = vmul.f32 %v4922_v13, %v1673_v34  ;;  %v3547_v19 = vpop.f32.mrb[155].mxu0  ;;  %v3657_v46 = vpop.f32.mrb[155].mxu1 }
 0x21d   :  { %v2562_v53 = vmax.f32 %v2513_v15, 0.0  ;;  %v2368_v44 = vmul.f32 %v4922_v13, %v2250_v52  ;;  %v5713_v42 = vmax.f32 %v5711_v1, %v5712_v41 }
 0x21e   :  { %2808 = vst.msk [vmem:[%s5556_s7 + $0x60] sm:$0xf] %vm2783_vm3, %v3117_v33  ;;  %v2465_v45 = vmax.f32 %v1839_v16, %v2416_v36  ;;  %v1840_v9 = vadd.f32 %v4911_v0, %v1791_v8 }
 0x21f   :  { %v3118_v21 = vpack.c.bf16 %v2562_v53, %v2562_v53  ;;  %v2417_v24 = vadd.f32 %v4911_v0, %v2368_v44 }
 0x220   :  { %v2514_v56 = vmax.f32 %v5704_v12, %v2465_v45 }
 0x221   :  { %2809 = vst.msk [vmem:[%s5556_s7 + $0x64] sm:$0xf] %vm2783_vm3, %v3118_v21  ;;  %v2466_v62 = vmax.f32 %v1840_v9, %v2417_v24  ;;  %v1678_v54 = vpop.f32.mrb[156].mxu0  ;;  %v2255_v29 = vpop.f32.mrb[156].mxu1  ;;  %v5714_v21 = vld [vmem:[#allocation18_spill] sm:$0xff]  ;;  %v5715_v24 = vld [vmem:[#allocation19_spill] sm:$0xff] }
 0x222   :  { %v2563_v50 = vmax.f32 %v2514_v56, 0.0  ;;  %v1792_v55 = vmul.f32 %v4922_v13, %v1678_v54  ;;  %v2369_v5 = vmul.f32 %v4922_v13, %v2255_v29  ;;  %v3550_v2 = vpop.f32.mrb[157].mxu0  ;;  %v3660_v3 = vpop.f32.mrb[157].mxu1  ;;  %v5716_v48 = vmax.f32 %v5714_v21, %v5715_v24 }
 0x223   :  { %v2515_v28 = vmax.f32 %v5707_v11, %v2466_v62  ;;  %v1681_v22 = vpop.f32.mrb[158].mxu0  ;;  %v2258_v23 = vpop.f32.mrb[158].mxu1  ;;  %v5717_v2 = vld [vmem:[#allocation20_spill] sm:$0xff]  ;;  %v5718_v3 = vld [vmem:[#allocation21_spill] sm:$0xff] }
 0x224   :  { %v3119_v32 = vpack.c.bf16 %v2563_v50, %v2563_v50  ;;  %v1841_v6 = vadd.f32 %v4911_v0, %v1792_v55  ;;  %v2418_v7 = vadd.f32 %v4911_v0, %v2369_v5  ;;  %v1793_v30 = vmul.f32 %v4922_v13, %v1681_v22  ;;  %v3551_v31 = vpop.f32.mrb[159].mxu0  ;;  %v3661_v4 = vpop.f32.mrb[159].mxu1 }
 0x225   :  { %v2564_v14 = vmax.f32 %v2515_v28, 0.0  ;;  %v2370_v43 = vmul.f32 %v4922_v13, %v2258_v23  ;;  %v5719_v51 = vmax.f32 %v5717_v2, %v5718_v3 }
 0x226   :  { %2810 = vst.msk [vmem:[%s5556_s7 + $0x68] sm:$0xf] %vm2783_vm3, %v3119_v32  ;;  %v2467_v17 = vmax.f32 %v1841_v6, %v2418_v7  ;;  %v1842_v35 = vadd.f32 %v4911_v0, %v1793_v30 }
 0x227   :  { %v3120_v40 = vpack.c.bf16 %v2564_v14, %v2564_v14  ;;  %v2419_v18 = vadd.f32 %v4911_v0, %v2370_v43 }
 0x228   :  { %v2516_v61 = vmax.f32 %v5710_v59, %v2467_v17 }
 0x229   :  { %2811 = vst.msk [vmem:[%s5556_s7 + $0x6c] sm:$0xf] %vm2783_vm3, %v3120_v40  ;;  %v2468_v20 = vmax.f32 %v1842_v35, %v2419_v18  ;;  %v1686_v27 = vpop.f32.mrb[160].mxu0  ;;  %v2263_v25 = vpop.f32.mrb[160].mxu1  ;;  %v5720_v40 = vld [vmem:[#allocation22_spill] sm:$0xff]  ;;  %v5721_v18 = vld [vmem:[#allocation23_spill] sm:$0xff] }
 0x22a   :  { %v2565_v26 = vmax.f32 %v2516_v61, 0.0  ;;  %v1794_v37 = vmul.f32 %v4922_v13, %v1686_v27  ;;  %v2371_v38 = vmul.f32 %v4922_v13, %v2263_v25  ;;  %v3554_v60 = vpop.f32.mrb[161].mxu0  ;;  %v3664_v63 = vpop.f32.mrb[161].mxu1  ;;  %v5722_v57 = vmax.f32 %v5720_v40, %v5721_v18 }
 0x22b   :  { %v2517_v39 = vmax.f32 %v5713_v42, %v2468_v20  ;;  %v1689_v47 = vpop.f32.mrb[162].mxu0  ;;  %v2266_v15 = vpop.f32.mrb[162].mxu1  ;;  %v5724_v60 = vld [vmem:[#allocation25_spill] sm:$0xff] }
 0x22c   :  { %v3121_v34 = vpack.c.bf16 %v2565_v26, %v2565_v26  ;;  %v1843_v52 = vadd.f32 %v4911_v0, %v1794_v37  ;;  %v2420_v33 = vadd.f32 %v4911_v0, %v2371_v38  ;;  %v1795_v16 = vmul.f32 %v4922_v13, %v1689_v47  ;;  %v3555_v36 = vpop.f32.mrb[163].mxu0  ;;  %v3665_v8 = vpop.f32.mrb[163].mxu1  ;;  %v5371_v47 = vld [vmem:[%s5555_s6] ss:$0 sm:$0xff] }
 0x22d   :  { %v2566_v19 = vmax.f32 %v2517_v39, 0.0  ;;  %v2372_v46 = vmul.f32 %v4922_v13, %v2266_v15 }
 0x22e   :  { %2812 = vst.msk [vmem:[%s5556_s7 + $0x70] sm:$0xf] %vm2783_vm3, %v3121_v34  ;;  %v2469_v53 = vmax.f32 %v1843_v52, %v2420_v33  ;;  %v1844_v44 = vadd.f32 %v4911_v0, %v1795_v16 }
 0x22f   :  { %v3122_v45 = vpack.c.bf16 %v2566_v19, %v2566_v19  ;;  %v2421_v9 = vadd.f32 %v4911_v0, %v2372_v46 }
 0x230   :  { %v2518_v49 = vmax.f32 %v5716_v48, %v2469_v53 }
 0x231   :  { %2813 = vst.msk [vmem:[%s5556_s7 + $0x74] sm:$0xf] %vm2783_vm3, %v3122_v45  ;;  %v2470_v12 = vmax.f32 %v1844_v44, %v2421_v9  ;;  %v1694_v56 = vpop.f32.mrb[164].mxu0  ;;  %v2271_v62 = vpop.f32.mrb[164].mxu1  ;;  %v5726_v45 = vld [vmem:[#allocation26_spill] sm:$0xff]  ;;  %v5727_v9 = vld [vmem:[#allocation27_spill] sm:$0xff] }
 0x232   :  { %v2567_v54 = vmax.f32 %v2518_v49, 0.0  ;;  %v1796_v29 = vmul.f32 %v4922_v13, %v1694_v56  ;;  %v2373_v50 = vmul.f32 %v4922_v13, %v2271_v62  ;;  %v3558_v55 = vpop.f32.mrb[165].mxu0  ;;  %v3668_v5 = vpop.f32.mrb[165].mxu1  ;;  %v5728_v21 = vmax.f32 %v5726_v45, %v5727_v9 }
 0x233   :  { %v2519_v10 = vmax.f32 %v5719_v51, %v2470_v12  ;;  %v1697_v11 = vpop.f32.mrb[166].mxu0  ;;  %v2274_v28 = vpop.f32.mrb[166].mxu1  ;;  %v5729_v55 = vld [vmem:[#allocation28_spill] sm:$0xff]  ;;  %v5730_v5 = vld [vmem:[#allocation29_spill] sm:$0xff] }
 0x234   :  { %v3123_v22 = vpack.c.bf16 %v2567_v54, %v2567_v54  ;;  %v1845_v23 = vadd.f32 %v4911_v0, %v1796_v29  ;;  %v2422_v32 = vadd.f32 %v4911_v0, %v2373_v50  ;;  %v1797_v6 = vmul.f32 %v4922_v13, %v1697_v11  ;;  %v3559_v7 = vpop.f32.mrb[167].mxu0  ;;  %v3669_v30 = vpop.f32.mrb[167].mxu1 }
 0x235   :  { %v2568_v31 = vmax.f32 %v2519_v10, 0.0  ;;  %v2374_v4 = vmul.f32 %v4922_v13, %v2274_v28  ;;  %v5731_v2 = vmax.f32 %v5729_v55, %v5730_v5 }
 0x236   :  { %2814 = vst.msk [vmem:[%s5556_s7 + $0x78] sm:$0xf] %vm2783_vm3, %v3123_v22  ;;  %v2471_v14 = vmax.f32 %v1845_v23, %v2422_v32  ;;  %v1846_v43 = vadd.f32 %v4911_v0, %v1797_v6 }
 0x237   :  { %v3124_v17 = vpack.c.bf16 %v2568_v31, %v2568_v31  ;;  %v2423_v35 = vadd.f32 %v4911_v0, %v2374_v4  ;;  %v5723_v0 = vld [vmem:[#allocation24_spill] sm:$0xff] }
 0x238   :  { %v2520_v58 = vmax.f32 %v5722_v57, %v2471_v14  ;;  %v5725_v63 = vmax.f32 %v5723_v0, %v5724_v60 }
 0x239   :  { %2815 = vst.msk [vmem:[%s5556_s7 + $0x7c] sm:$0xf] %vm2783_vm3, %v3124_v17  ;;  %v2472_v59 = vmax.f32 %v1846_v43, %v2423_v35  ;;  %v1702_v61 = vpop.f32.mrb[168].mxu0  ;;  %v2279_v20 = vpop.f32.mrb[168].mxu1  ;;  %v5732_v17 = vld [vmem:[#allocation30_spill] sm:$0xff]  ;;  %v5733_v35 = vld [vmem:[#allocation31_spill] sm:$0xff] }
 0x23a   :  { %v2569_v27 = vmax.f32 %v2520_v58, 0.0  ;;  %v1798_v25 = vmul.f32 %v4922_v13, %v1702_v61  ;;  %v2375_v26 = vmul.f32 %v4922_v13, %v2279_v20  ;;  %v3562_v37 = vpop.f32.mrb[169].mxu0  ;;  %v3672_v38 = vpop.f32.mrb[169].mxu1  ;;  %v5378_v13 = vld [vmem:[%s5554_s5] ss:$0 sm:$0xff]  ;;  %v5734_v40 = vmax.f32 %v5732_v17, %v5733_v35 }
 0x23b   :  { %v2521_v1 = vmax.f32 %v5725_v63, %v2472_v59  ;;  %v1705_v41 = vpop.f32.mrb[170].mxu0  ;;  %v2282_v42 = vpop.f32.mrb[170].mxu1  ;;  %v5735_v37 = vld [vmem:[#allocation32_spill] sm:$0xff]  ;;  %v5736_v38 = vld [vmem:[#allocation33_spill] sm:$0xff] }
 0x23c   :  { %v3125_v39 = vpack.c.bf16 %v2569_v27, %v2569_v27  ;;  %v1847_v15 = vadd.f32 %v5371_v47, %v1798_v25  ;;  %v2424_v34 = vadd.f32 %v5371_v47, %v2375_v26  ;;  %v1799_v52 = vmul.f32 %v5378_v13, %v1705_v41  ;;  %v3563_v33 = vpop.f32.mrb[171].mxu0  ;;  %v3673_v16 = vpop.f32.mrb[171].mxu1 }
 0x23d   :  { %v2570_v36 = vmax.f32 %v2521_v1, 0.0  ;;  %v2376_v8 = vmul.f32 %v5378_v13, %v2282_v42  ;;  %v5737_v0 = vmax.f32 %v5735_v37, %v5736_v38 }
 0x23e   :  { %2816 = vst.msk [vmem:[%s5556_s7 + $0x80] sm:$0xf] %vm2783_vm3, %v3125_v39  ;;  %v2473_v19 = vmax.f32 %v1847_v15, %v2424_v34  ;;  %v1848_v46 = vadd.f32 %v5371_v47, %v1799_v52 }
 0x23f   :  { %v3126_v53 = vpack.c.bf16 %v2570_v36, %v2570_v36  ;;  %v2425_v44 = vadd.f32 %v5371_v47, %v2376_v8 }
 0x240   :  { %v2522_v24 = vmax.f32 %v5728_v21, %v2473_v19 }
 0x241   :  { %2817 = vst.msk [vmem:[%s5556_s7 + $0x84] sm:$0xf] %vm2783_vm3, %v3126_v53  ;;  %v2474_v48 = vmax.f32 %v1848_v46, %v2425_v44  ;;  %v1710_v49 = vpop.f32.mrb[172].mxu0  ;;  %v2287_v12 = vpop.f32.mrb[172].mxu1  ;;  %v5738_v53 = vld [vmem:[#allocation34_spill] sm:$0xff]  ;;  %v5739_v44 = vld [vmem:[#allocation35_spill] sm:$0xff] }
 0x242   :  { %v2571_v56 = vmax.f32 %v2522_v24, 0.0  ;;  %v1800_v62 = vmul.f32 %v5378_v13, %v1710_v49  ;;  %v2377_v54 = vmul.f32 %v5378_v13, %v2287_v12  ;;  %v3566_v29 = vpop.f32.mrb[173].mxu0  ;;  %v3676_v50 = vpop.f32.mrb[173].mxu1  ;;  %v5740_v45 = vmax.f32 %v5738_v53, %v5739_v44 }
 0x243   :  { %v2523_v3 = vmax.f32 %v5731_v2, %v2474_v48  ;;  %v1713_v51 = vpop.f32.mrb[174].mxu0  ;;  %v2290_v10 = vpop.f32.mrb[174].mxu1  ;;  %v5741_v29 = vld [vmem:[#allocation36_spill] sm:$0xff]  ;;  %v5742_v50 = vld [vmem:[#allocation37_spill] sm:$0xff] }
 0x244   :  { %v3127_v11 = vpack.c.bf16 %v2571_v56, %v2571_v56  ;;  %v1849_v28 = vadd.f32 %v5371_v47, %v1800_v62  ;;  %v2426_v22 = vadd.f32 %v5371_v47, %v2377_v54  ;;  %v1801_v23 = vmul.f32 %v5378_v13, %v1713_v51  ;;  %v3567_v32 = vpop.f32.mrb[175].mxu0  ;;  %v3677_v6 = vpop.f32.mrb[175].mxu1 }
 0x245   :  { %v2572_v7 = vmax.f32 %v2523_v3, 0.0  ;;  %v2378_v30 = vmul.f32 %v5378_v13, %v2290_v10  ;;  %v5743_v55 = vmax.f32 %v5741_v29, %v5742_v50 }
 0x246   :  { %2818 = vst.msk [vmem:[%s5556_s7 + $0x88] sm:$0xf] %vm2783_vm3, %v3127_v11  ;;  %v2475_v31 = vmax.f32 %v1849_v28, %v2426_v22  ;;  %v1850_v4 = vadd.f32 %v5371_v47, %v1801_v23 }
 0x247   :  { %v3128_v14 = vpack.c.bf16 %v2572_v7, %v2572_v7  ;;  %v2427_v43 = vadd.f32 %v5371_v47, %v2378_v30 }
 0x248   :  { %v2524_v18 = vmax.f32 %v5734_v40, %v2475_v31 }
 0x249   :  { %2819 = vst.msk [vmem:[%s5556_s7 + $0x8c] sm:$0xf] %vm2783_vm3, %v3128_v14  ;;  %v2476_v57 = vmax.f32 %v1850_v4, %v2427_v43  ;;  %v1718_v58 = vpop.f32.mrb[176].mxu0  ;;  %v2295_v59 = vpop.f32.mrb[176].mxu1  ;;  %v5744_v14 = vld [vmem:[#allocation38_spill] sm:$0xff]  ;;  %v5745_v43 = vld [vmem:[#allocation39_spill] sm:$0xff] }
 0x24a   :  { %v2573_v61 = vmax.f32 %v2524_v18, 0.0  ;;  %v1802_v20 = vmul.f32 %v5378_v13, %v1718_v58  ;;  %v2379_v27 = vmul.f32 %v5378_v13, %v2295_v59  ;;  %v3570_v25 = vpop.f32.mrb[177].mxu0  ;;  %v3680_v26 = vpop.f32.mrb[177].mxu1  ;;  %v5746_v17 = vmax.f32 %v5744_v14, %v5745_v43 }
 0x24b   :  { %v2525_v60 = vmax.f32 %v5737_v0, %v2476_v57  ;;  %v1721_v63 = vpop.f32.mrb[178].mxu0  ;;  %v2298_v1 = vpop.f32.mrb[178].mxu1  ;;  %v5747_v25 = vld [vmem:[#allocation40_spill] sm:$0xff]  ;;  %v5748_v26 = vld [vmem:[#allocation41_spill] sm:$0xff] }
 0x24c   :  { %v3129_v41 = vpack.c.bf16 %v2573_v61, %v2573_v61  ;;  %v1851_v42 = vadd.f32 %v5371_v47, %v1802_v20  ;;  %v2428_v39 = vadd.f32 %v5371_v47, %v2379_v27  ;;  %v1803_v15 = vmul.f32 %v5378_v13, %v1721_v63  ;;  %v3571_v34 = vpop.f32.mrb[179].mxu0  ;;  %v3681_v52 = vpop.f32.mrb[179].mxu1 }
 0x24d   :  { %v2574_v33 = vmax.f32 %v2525_v60, 0.0  ;;  %v2380_v16 = vmul.f32 %v5378_v13, %v2298_v1  ;;  %v5749_v37 = vmax.f32 %v5747_v25, %v5748_v26 }
 0x24e   :  { %2820 = vst.msk [vmem:[%s5556_s7 + $0x90] sm:$0xf] %vm2783_vm3, %v3129_v41  ;;  %v2477_v36 = vmax.f32 %v1851_v42, %v2428_v39  ;;  %v1852_v8 = vadd.f32 %v5371_v47, %v1803_v15 }
 0x24f   :  { %v3130_v19 = vpack.c.bf16 %v2574_v33, %v2574_v33  ;;  %v2429_v46 = vadd.f32 %v5371_v47, %v2380_v16 }
 0x250   :  { %v2526_v9 = vmax.f32 %v5740_v45, %v2477_v36 }
 0x251   :  { %2821 = vst.msk [vmem:[%s5556_s7 + $0x94] sm:$0xf] %vm2783_vm3, %v3130_v19  ;;  %v2478_v21 = vmax.f32 %v1852_v8, %v2429_v46  ;;  %v1726_v24 = vpop.f32.mrb[180].mxu0  ;;  %v2303_v48 = vpop.f32.mrb[180].mxu1  ;;  %v5750_v19 = vld [vmem:[#allocation42_spill] sm:$0xff]  ;;  %v5751_v46 = vld [vmem:[#allocation43_spill] sm:$0xff] }
 0x252   :  { %v2575_v49 = vmax.f32 %v2526_v9, 0.0  ;;  %v1804_v12 = vmul.f32 %v5378_v13, %v1726_v24  ;;  %v2381_v56 = vmul.f32 %v5378_v13, %v2303_v48  ;;  %v3574_v62 = vpop.f32.mrb[181].mxu0  ;;  %v3684_v54 = vpop.f32.mrb[181].mxu1  ;;  %v5752_v53 = vmax.f32 %v5750_v19, %v5751_v46 }
 0x253   :  { %v2527_v5 = vmax.f32 %v5743_v55, %v2478_v21  ;;  %v1729_v2 = vpop.f32.mrb[182].mxu0  ;;  %v2306_v3 = vpop.f32.mrb[182].mxu1  ;;  %v5753_v62 = vld [vmem:[#allocation44_spill] sm:$0xff]  ;;  %v5754_v54 = vld [vmem:[#allocation45_spill] sm:$0xff] }
 0x254   :  { %v3131_v51 = vpack.c.bf16 %v2575_v49, %v2575_v49  ;;  %v1853_v10 = vadd.f32 %v5371_v47, %v1804_v12  ;;  %v2430_v11 = vadd.f32 %v5371_v47, %v2381_v56  ;;  %v1805_v28 = vmul.f32 %v5378_v13, %v1729_v2  ;;  %v3575_v22 = vpop.f32.mrb[183].mxu0  ;;  %v3685_v23 = vpop.f32.mrb[183].mxu1 }
 0x255   :  { %v2576_v32 = vmax.f32 %v2527_v5, 0.0  ;;  %v2382_v6 = vmul.f32 %v5378_v13, %v2306_v3  ;;  %v5755_v29 = vmax.f32 %v5753_v62, %v5754_v54 }
 0x256   :  { %2822 = vst.msk [vmem:[%s5556_s7 + $0x98] sm:$0xf] %vm2783_vm3, %v3131_v51  ;;  %v2479_v7 = vmax.f32 %v1853_v10, %v2430_v11  ;;  %v1854_v30 = vadd.f32 %v5371_v47, %v1805_v28 }
 0x257   :  { %v3132_v31 = vpack.c.bf16 %v2576_v32, %v2576_v32  ;;  %v2431_v4 = vadd.f32 %v5371_v47, %v2382_v6 }
 0x258   :  { %v2528_v35 = vmax.f32 %v5746_v17, %v2479_v7 }
 0x259   :  { %2823 = vst.msk [vmem:[%s5556_s7 + $0x9c] sm:$0xf] %vm2783_vm3, %v3132_v31  ;;  %v2480_v40 = vmax.f32 %v1854_v30, %v2431_v4  ;;  %v1734_v18 = vpop.f32.mrb[184].mxu0  ;;  %v2311_v57 = vpop.f32.mrb[184].mxu1  ;;  %v5756_v31 = vld [vmem:[#allocation46_spill] sm:$0xff]  ;;  %v5757_v4 = vld [vmem:[#allocation47_spill] sm:$0xff] }
 0x25a   :  { %v2577_v58 = vmax.f32 %v2528_v35, 0.0  ;;  %v1806_v59 = vmul.f32 %v5378_v13, %v1734_v18  ;;  %v2383_v61 = vmul.f32 %v5378_v13, %v2311_v57  ;;  %v3578_v20 = vpop.f32.mrb[185].mxu0  ;;  %v3688_v27 = vpop.f32.mrb[185].mxu1  ;;  %v5758_v14 = vmax.f32 %v5756_v31, %v5757_v4 }
 0x25b   :  { %v2529_v38 = vmax.f32 %v5749_v37, %v2480_v40  ;;  %v1737_v0 = vpop.f32.mrb[186].mxu0  ;;  %v2314_v60 = vpop.f32.mrb[186].mxu1  ;;  %v5759_v20 = vld [vmem:[#allocation48_spill] sm:$0xff]  ;;  %v5760_v27 = vld [vmem:[#allocation49_spill] sm:$0xff] }
 0x25c   :  { %v3133_v63 = vpack.c.bf16 %v2577_v58, %v2577_v58  ;;  %v1855_v1 = vadd.f32 %v5371_v47, %v1806_v59  ;;  %v2432_v41 = vadd.f32 %v5371_v47, %v2383_v61  ;;  %v1807_v42 = vmul.f32 %v5378_v13, %v1737_v0  ;;  %v3579_v39 = vpop.f32.mrb[187].mxu0  ;;  %v3689_v15 = vpop.f32.mrb[187].mxu1 }
 0x25d   :  { %v2578_v34 = vmax.f32 %v2529_v38, 0.0  ;;  %v2384_v52 = vmul.f32 %v5378_v13, %v2314_v60  ;;  %v5761_v25 = vmax.f32 %v5759_v20, %v5760_v27 }
 0x25e   :  { %2824 = vst.msk [vmem:[%s5556_s7 + $0xa0] sm:$0xf] %vm2783_vm3, %v3133_v63  ;;  %v2481_v33 = vmax.f32 %v1855_v1, %v2432_v41  ;;  %v1856_v16 = vadd.f32 %v5371_v47, %v1807_v42 }
 0x25f   :  { %v3134_v36 = vpack.c.bf16 %v2578_v34, %v2578_v34  ;;  %v2433_v8 = vadd.f32 %v5371_v47, %v2384_v52 }
 0x260   :  { %v2530_v44 = vmax.f32 %v5752_v53, %v2481_v33 }
 0x261   :  { %2825 = vst.msk [vmem:[%s5556_s7 + $0xa4] sm:$0xf] %vm2783_vm3, %v3134_v36  ;;  %v2482_v45 = vmax.f32 %v1856_v16, %v2433_v8  ;;  %v1742_v9 = vpop.f32.mrb[188].mxu0  ;;  %v2319_v21 = vpop.f32.mrb[188].mxu1  ;;  %v5762_v36 = vld [vmem:[#allocation50_spill] sm:$0xff]  ;;  %v5763_v8 = vld [vmem:[#allocation51_spill] sm:$0xff] }
 0x262   :  { %v2579_v24 = vmax.f32 %v2530_v44, 0.0  ;;  %v1808_v48 = vmul.f32 %v5378_v13, %v1742_v9  ;;  %v2385_v49 = vmul.f32 %v5378_v13, %v2319_v21  ;;  %v3582_v12 = vpop.f32.mrb[189].mxu0  ;;  %v3692_v56 = vpop.f32.mrb[189].mxu1  ;;  %v5764_v19 = vmax.f32 %v5762_v36, %v5763_v8 }
 0x263   :  { %v2531_v50 = vmax.f32 %v5755_v29, %v2482_v45  ;;  %v1745_v55 = vpop.f32.mrb[190].mxu0  ;;  %v2322_v5 = vpop.f32.mrb[190].mxu1  ;;  %v5765_v12 = vld [vmem:[#allocation52_spill] sm:$0xff]  ;;  %v5766_v56 = vld [vmem:[#allocation53_spill] sm:$0xff] }
 0x264   :  { %v3135_v2 = vpack.c.bf16 %v2579_v24, %v2579_v24  ;;  %v1857_v3 = vadd.f32 %v5371_v47, %v1808_v48  ;;  %v2434_v51 = vadd.f32 %v5371_v47, %v2385_v49  ;;  %v1809_v10 = vmul.f32 %v5378_v13, %v1745_v55  ;;  %v3583_v11 = vpop.f32.mrb[191].mxu0  ;;  %v3693_v28 = vpop.f32.mrb[191].mxu1 }
 0x265   :  { %v2580_v22 = vmax.f32 %v2531_v50, 0.0  ;;  %v2386_v23 = vmul.f32 %v5378_v13, %v2322_v5  ;;  %v5767_v62 = vmax.f32 %v5765_v12, %v5766_v56  ;;  %v5768_v28 = vld [vmem:[#allocation54_spill] sm:$0xff] }
 0x266   :  { %2826 = vst.msk [vmem:[%s5556_s7 + $0xa8] sm:$0xf] %vm2783_vm3, %v3135_v2  ;;  %v2483_v32 = vmax.f32 %v1857_v3, %v2434_v51  ;;  %v1858_v6 = vadd.f32 %v5371_v47, %v1809_v10 }
 0x267   :  { %v3136_v7 = vpack.c.bf16 %v2580_v22, %v2580_v22  ;;  %v2435_v30 = vadd.f32 %v5371_v47, %v2386_v23  ;;  %v5769_v22 = vld [vmem:[#allocation55_spill] sm:$0xff] }
 0x268   :  { %v2532_v43 = vmax.f32 %v5758_v14, %v2483_v32  ;;  %v5770_v23 = vmax.f32 %v5768_v28, %v5769_v22 }
 0x269   :  { %2827 = vst.msk [vmem:[%s5556_s7 + $0xac] sm:$0xf] %vm2783_vm3, %v3136_v7  ;;  %v2484_v17 = vmax.f32 %v1858_v6, %v2435_v30  ;;  %v1750_v35 = vpop.f32.mrb[192].mxu0  ;;  %v2327_v40 = vpop.f32.mrb[192].mxu1 }
 0x26a   :  { %v2581_v18 = vmax.f32 %v2532_v43, 0.0  ;;  %v1810_v57 = vmul.f32 %v5378_v13, %v1750_v35  ;;  %v2387_v58 = vmul.f32 %v5378_v13, %v2327_v40  ;;  %v3586_v59 = vpop.f32.mrb[193].mxu0  ;;  %v3696_v61 = vpop.f32.mrb[193].mxu1 }
 0x26b   :  { %v2533_v26 = vmax.f32 %v5761_v25, %v2484_v17  ;;  %v1753_v37 = vpop.f32.mrb[194].mxu0  ;;  %v2330_v38 = vpop.f32.mrb[194].mxu1 }
 0x26c   :  { %v3137_v0 = vpack.c.bf16 %v2581_v18, %v2581_v18  ;;  %v1859_v60 = vadd.f32 %v5371_v47, %v1810_v57  ;;  %v2436_v63 = vadd.f32 %v5371_v47, %v2387_v58  ;;  %v1811_v1 = vmul.f32 %v5378_v13, %v1753_v37  ;;  %v3587_v41 = vpop.f32.mrb[195].mxu0  ;;  %v3697_v42 = vpop.f32.mrb[195].mxu1 }
 0x26d   :  { %v2582_v39 = vmax.f32 %v2533_v26, 0.0  ;;  %v2388_v15 = vmul.f32 %v5378_v13, %v2330_v38 }
 0x26e   :  { %2828 = vst.msk [vmem:[%s5556_s7 + $0xb0] sm:$0xf] %vm2783_vm3, %v3137_v0  ;;  %v2485_v34 = vmax.f32 %v1859_v60, %v2436_v63  ;;  %v1860_v52 = vadd.f32 %v5371_v47, %v1811_v1 }
 0x26f   :  { %v3138_v33 = vpack.c.bf16 %v2582_v39, %v2582_v39  ;;  %v2437_v16 = vadd.f32 %v5371_v47, %v2388_v15 }
 0x270   :  { %v2534_v46 = vmax.f32 %v5764_v19, %v2485_v34 }
 0x271   :  { %2829 = vst.msk [vmem:[%s5556_s7 + $0xb4] sm:$0xf] %vm2783_vm3, %v3138_v33  ;;  %v2486_v53 = vmax.f32 %v1860_v52, %v2437_v16  ;;  %v1758_v44 = vpop.f32.mrb[196].mxu0  ;;  %v2335_v45 = vpop.f32.mrb[196].mxu1 }
 0x272   :  { %v2583_v9 = vmax.f32 %v2534_v46, 0.0  ;;  %v1812_v21 = vmul.f32 %v5378_v13, %v1758_v44  ;;  %v2389_v24 = vmul.f32 %v5378_v13, %v2335_v45  ;;  %v3590_v48 = vpop.f32.mrb[197].mxu0  ;;  %v3700_v49 = vpop.f32.mrb[197].mxu1 }
 0x273   :  { %v2535_v54 = vmax.f32 %v5767_v62, %v2486_v53  ;;  %v1761_v29 = vpop.f32.mrb[198].mxu0  ;;  %v2338_v50 = vpop.f32.mrb[198].mxu1 }
 0x274   :  { %v3139_v55 = vpack.c.bf16 %v2583_v9, %v2583_v9  ;;  %v1861_v5 = vadd.f32 %v5371_v47, %v1812_v21  ;;  %v2438_v2 = vadd.f32 %v5371_v47, %v2389_v24  ;;  %v3591_v3 = vpop.f32.mrb[199].mxu0  ;;  %v3701_v51 = vpop.f32.mrb[199].mxu1 }
 0x275   :  { %v2584_v10 = vmax.f32 %v2535_v54, 0.0 }
 0x276   :  { %2830 = vst.msk [vmem:[%s5556_s7 + $0xb8] sm:$0xf] %vm2783_vm3, %v3139_v55  ;;  %v2487_v13 = vmax.f32 %v1861_v5, %v2438_v2 }
 0x277   :  { %v3140_v11 = vpack.c.bf16 %v2584_v10, %v2584_v10 }
 0x278   :  { %v2536_v32 = vmax.f32 %v5770_v23, %v2487_v13 }
 0x279   :  { %2831 = vst.msk [vmem:[%s5556_s7 + $0xbc] sm:$0xf] %vm2783_vm3, %v3140_v11 }
 0x27a   :  { %v2585_v47 = vmax.f32 %v2536_v32, 0.0 }
 0x27c   :  { %v3141_v6 = vpack.c.bf16 %v2585_v47, %v2585_v47 }
 0x27e   :  { %2832 = vst.msk [vmem:[%s5556_s7 + $0xc0] sm:$0xf] %vm2783_vm3, %v3141_v6 }

// kernel: forward.5
= control target key start
LH: loop header
LB: loop body
LE: loop exit
PB: predicated region body
PF: predicated region fallthrough
CT: control target
= control target key end

     0   :  { %v2851_v34 = vmov 0.0   ;;  %vm2852_vm0 = vmmov 0   ;;  %vm461_vm1 = vcmask 523264   ;;  %vm1975_vm2 = vcmask 519168   ;;  %s3873_s4 = inlined_call_operand.vmem [shape: bf16[576,64], index: 4, kind: input, shape index: {}]   ;;  %s3874_s0 = inlined_call_operand.vmem [shape: bf16[72,576], index: 0, kind: input, shape index: {}]   ;;  %s3875_s1 = inlined_call_operand.vmem [shape: bf16[72,576], index: 1, kind: input, shape index: {}]   ;;  %s3876_s2 = inlined_call_operand.vmem [shape: bf16[72,576], index: 2, kind: input, shape index: {}]   ;;  %s3877_s3 = inlined_call_operand.vmem [shape: bf16[72,576], index: 3, kind: input, shape index: {}]   ;;  %s3878_s5 = inlined_call_operand.vmem [shape: f32[1,64], index: 5, kind: input, shape index: {}]   ;;  %s3879_s6 = inlined_call_operand.vmem [shape: f32[1,64], index: 6, kind: input, shape index: {}]   ;;  %s3880_s7 = inlined_call_operand.vmem [shape: bf16[72,64], index: 7, kind: output, shape index: {}]  }
   0x1   :  { %v2896_v0 = vld [vmem:[%s3873_s4 + $0x40] sm:$0xff]   ;;  %v2919_v4 = vld [vmem:[%s3873_s4 + $0x48] sm:$0xff]   ;;  %v2943_v8 = vld [vmem:[%s3873_s4 + $0x50] sm:$0xff]  }
   0x2   :  { %v2901_v1 = vld [vmem:[%s3873_s4 + $0xc0] sm:$0xff]   ;;  %2165 = vmatprep.subr.bf16.mxu0 %v2896_v0  ;;  %v2925_v5 = vld [vmem:[%s3873_s4 + $0xc8] sm:$0xff]   ;;  %v2949_v9 = vld [vmem:[%s3873_s4 + $0xd0] sm:$0xff]  }
   0x3   :  { %v2907_v2 = vld [vmem:[%s3873_s4] sm:$0xff]   ;;  %2211 = vmatprep.subr.bf16.mxu1 %v2901_v1  ;;  %v2931_v6 = vld [vmem:[%s3873_s4 + $0x8] sm:$0xff]   ;;  %v2955_v10 = vld [vmem:[%s3873_s4 + $0x10] sm:$0xff]  }
   0x4   :  { %v2913_v3 = vld [vmem:[%s3873_s4 + $0x80] sm:$0xff]   ;;  %2166 = vmatpush3.bf16.msra.mxu0 %v2907_v2  ;;  %v2937_v7 = vld [vmem:[%s3873_s4 + $0x88] sm:$0xff]   ;;  %v2961_v11 = vld [vmem:[%s3873_s4 + $0x90] sm:$0xff]  }
   0x5   :  { %2212 = vmatpush3.bf16.msra.mxu1 %v2913_v3  ;;  %2167 = vmatprep.subr.bf16.mxu0 %v2919_v4  ;;  %v2967_v12 = vld [vmem:[%s3873_s4 + $0x58] sm:$0xff]   ;;  %v2991_v16 = vld [vmem:[%s3873_s4 + $0x60] sm:$0xff]   ;;  %v3015_v20 = vld [vmem:[%s3873_s4 + $0x68] sm:$0xff]  }
   0x6   :  { %2213 = vmatprep.subr.bf16.mxu1 %v2925_v5  ;;  %v2973_v13 = vld [vmem:[%s3873_s4 + $0xd8] sm:$0xff]   ;;  %v2997_v17 = vld [vmem:[%s3873_s4 + $0xe0] sm:$0xff]   ;;  %v3021_v21 = vld [vmem:[%s3873_s4 + $0xe8] sm:$0xff]  }
   0x7   :  { %v2979_v14 = vld [vmem:[%s3873_s4 + $0x18] sm:$0xff]   ;;  %v3003_v18 = vld [vmem:[%s3873_s4 + $0x20] sm:$0xff]   ;;  %v3027_v22 = vld [vmem:[%s3873_s4 + $0x28] sm:$0xff]  }
   0x8   :  { %2168 = vmatpush3.bf16.msra.mxu0 %v2931_v6  ;;  %v2985_v15 = vld [vmem:[%s3873_s4 + $0x98] sm:$0xff]   ;;  %v3009_v19 = vld [vmem:[%s3873_s4 + $0xa0] sm:$0xff]   ;;  %v3033_v23 = vld [vmem:[%s3873_s4 + $0xa8] sm:$0xff]  }
   0x9   :  { %2214 = vmatpush3.bf16.msra.mxu1 %v2937_v7  ;;  %2169 = vmatprep.subr.bf16.mxu0 %v2943_v8  ;;  %v3039_v24 = vld [vmem:[%s3873_s4 + $0x70] sm:$0xff]   ;;  %v3063_v28 = vld [vmem:[%s3873_s4 + $0x78] sm:$0xff]   ;;  %v2720_v36 = vld [vmem:[%s3874_s0 + $0xc] ss:$20 sps:$4 sm:$0xff]  }
   0xa   :  { %2215 = vmatprep.subr.bf16.mxu1 %v2949_v9  ;;  %v3045_v25 = vld [vmem:[%s3873_s4 + $0xf0] sm:$0xff]   ;;  %v3069_v29 = vld [vmem:[%s3873_s4 + $0xf8] sm:$0xff]   ;;  %v3102_v37 = vld [vmem:[%s3873_s4 + $0x100] sm:$0xff]   ;;  %581 = vmatprep.mubr.bf16.mxu1 %v2720_v36 }
   0xb   :  { %v3051_v26 = vld [vmem:[%s3873_s4 + $0x30] sm:$0xff]   ;;  %v3075_v30 = vld [vmem:[%s3873_s4 + $0x38] sm:$0xff]   ;;  %v2722_v38 = vld [vmem:[%s3874_s0 + $0x2c] ss:$20 sps:$4 sm:$0xff]  }
   0xc   :  { %2170 = vmatpush3.bf16.msra.mxu0 %v2955_v10  ;;  %v3057_v27 = vld [vmem:[%s3873_s4 + $0xb0] sm:$0xff]   ;;  %v3081_v31 = vld [vmem:[%s3873_s4 + $0xb8] sm:$0xff]   ;;  %v3116_v40 = vld [vmem:[%s3873_s4 + $0x108] sm:$0xff]  }
   0xd   :  { %2216 = vmatpush3.bf16.msra.mxu1 %v2961_v11  ;;  %2171 = vmatprep.subr.bf16.mxu0 %v2967_v12  ;;  %v2715_v32 = vld [vmem:[%s3874_s0] ss:$20 sps:$4 sm:$0xff]   ;;  %v2717_v33 = vld [vmem:[%s3874_s0 + $0x4] ss:$20 sps:$4 sm:$0xff]   ;;  %v2718_v35 = vld [vmem:[%s3874_s0 + $0x8] ss:$20 sps:$4 sm:$0xff]  }
   0xe   :  { %2217 = vmatprep.subr.bf16.mxu1 %v2973_v13  ;;  %509 = vmatprep.mubr.bf16.mxu0 %v2717_v33  ;;  %v2724_v39 = vld [vmem:[%s3874_s0 + $0x34] ss:$20 sps:$4 sm:$0xff]   ;;  %v2727_v42 = vld [vmem:[%s3874_s0 + $0x30] ss:$20 sps:$4 sm:$0xff]   ;;  %v3146_v46 = vld [vmem:[%s3873_s4 + $0x118] sm:$0xff]  }
   0xf   :  { %v2726_v41 = vld [vmem:[%s3874_s0 + $0x28] ss:$20 sps:$4 sm:$0xff]   ;;  %v3138_v45 = vld [vmem:[%s3873_s4 + $0x110] sm:$0xff]   ;;  %v2734_v48 = vld [vmem:[%s3874_s0 + $0x58] ss:$20 sps:$4 sm:$0xff]  }
  0x10   :  { %2172 = vmatpush3.bf16.msra.mxu0 %v2979_v14  ;;  %v2729_v43 = vld [vmem:[%s3874_s0 + $0x54] ss:$20 sps:$4 sm:$0xff]   ;;  %v2731_v44 = vld [vmem:[%s3874_s0 + $0x5c] ss:$20 sps:$4 sm:$0xff]   ;;  %v2738_v50 = vld [vmem:[%s3874_s0 + $0x84] ss:$20 sps:$4 sm:$0xff]  }
  0x11   :  { %2218 = vmatpush3.bf16.msra.mxu1 %v2985_v15  ;;  %2173 = vmatprep.subr.bf16.mxu0 %v2991_v16  ;;  %v2733_v47 = vld [vmem:[%s3874_s0 + $0x50] ss:$20 sps:$4 sm:$0xff]   ;;  %v126_v52 = vld [vmem:[%s3874_s0 + $0xa8] sm:$0xff]  ;;  %v2741_v54 = vld [vmem:[%s3874_s0 + $0x80] ss:$20 sps:$4 sm:$0xff]  }
  0x12   :  { %2219 = vmatprep.subr.bf16.mxu1 %v2997_v17  ;;  %v2736_v49 = vld [vmem:[%s3874_s0 + $0x7c] ss:$20 sps:$4 sm:$0xff]   ;;  %v125_v51 = vld [vmem:[%s3874_s0 + $0xa0] sm:$0xff]  ;;  %v2740_v53 = vld [vmem:[%s3874_s0 + $0x78] ss:$20 sps:$4 sm:$0xff]   ;;  %v2012_v56 = vcombine.high %v126_v52, %v126_v52  ;;  %v2011_v58 = vcombine.low %v126_v52, %v126_v52 }
  0x13   :  { %v2010_v55 = vcombine.high %v125_v51, %v125_v51  ;;  %v2009_v57 = vcombine.low %v125_v51, %v125_v51  ;;  %v2749_v59 = vld [vmem:[%s3875_s1 + $0x4] ss:$20 sps:$4 sm:$0xff]   ;;  %v2747_v61 = vld [vmem:[%s3875_s1] ss:$20 sps:$4 sm:$0xff]  }
  0x14   :  { %2174 = vmatpush3.bf16.msra.mxu0 %v3003_v18  ;;  %v2750_v60 = vld [vmem:[%s3874_s0 + $0x10] ss:$20 sps:$4 sm:$0xff]   ;;  %v2751_v62 = vld [vmem:[%s3875_s1 + $0x2c] ss:$20 sps:$4 sm:$0xff]   ;;  %v2755_v33 = vld [vmem:[%s3875_s1 + $0x54] ss:$20 sps:$4 sm:$0xff]  }
  0x15   :  { %2220 = vmatpush3.bf16.msra.mxu1 %v3009_v19  ;;  %2175 = vmatprep.subr.bf16.mxu0 %v3015_v20  ;;  %v2753_v63 = vld [vmem:[%s3874_s0 + $0x38] ss:$20 sps:$4 sm:$0xff]   ;;  %v2758_v36 = vld [vmem:[%s3875_s1 + $0x50] ss:$20 sps:$4 sm:$0xff]   ;;  %v2770_v51 = vld [vmem:[%s3875_s1 + $0x34] ss:$20 sps:$4 sm:$0xff]  }
  0x16   :  { %2221 = vmatprep.subr.bf16.mxu1 %v3021_v21  ;;  %v2772_v52 = vld [vmem:[%s3875_s1 + $0x30] ss:$20 sps:$4 sm:$0xff]  }
  0x18   :  { %2176 = vmatpush3.bf16.msra.mxu0 %v3027_v22 }
  0x19   :  { %2222 = vmatpush3.bf16.msra.mxu1 %v3033_v23  ;;  %2177 = vmatprep.subr.bf16.mxu0 %v3039_v24 }
  0x1a   :  { %2223 = vmatprep.subr.bf16.mxu1 %v3045_v25 }
  0x1c   :  { %2178 = vmatpush3.bf16.msra.mxu0 %v3051_v26 }
  0x1d   :  { %2224 = vmatpush3.bf16.msra.mxu1 %v3057_v27  ;;  %2179 = vmatprep.subr.bf16.mxu0 %v3063_v28 }
  0x1e   :  { %2225 = vmatprep.subr.bf16.mxu1 %v3069_v29 }
  0x20   :  { %2180 = vmatpush3.bf16.msra.mxu0 %v3075_v30 }
  0x21   :  { %2226 = vmatpush3.bf16.msra.mxu1 %v3081_v31  ;;  %2569 = vmatprep.subr.bf16.mxu0 %v2851_v34 }
  0x22   :  { %2266 = vmatprep.subr.bf16.mxu1 %v2896_v0 }
  0x23   :  { %510 = vmatmul.mubr.bf16.vlgmr.msra.gmra.mrb[0].mxu0 %v2715_v32  ;;  %v2754_v32 = vld [vmem:[%s3875_s1 + $0x28] ss:$20 sps:$4 sm:$0xff]  }
  0x24   :  { %582 = vmatmul.mubr.bf16.vlgmr.msra.gmra.mrb[0].mxu1 %v2718_v35  ;;  %2570 = vmatpush3.bf16.msra.mxu0 %v3102_v37  ;;  %v2757_v35 = vld [vmem:[%s3874_s0 + $0x60] ss:$20 sps:$4 sm:$0xff]  }
  0x25   :  { %2267 = vmatpush3.bf16.msra.mxu1 %v2907_v2  ;;  %517 = vmatprep.mubr.bf16.mxu0 %v2722_v38  ;;  %v2759_v38 = vld [vmem:[%s3875_s1 + $0x7c] ss:$20 sps:$4 sm:$0xff]  }
  0x26   :  { %589 = vmatprep.mubr.bf16.mxu1 %v2724_v39  ;;  %2571 = vmatprep.subr.bf16.mxu0 %v2851_v34  ;;  %v747_v39 = vld [vmem:[%s3875_s1 + $0xa0] sm:$0xff] }
  0x27   :  { %2268 = vmatprep.subr.bf16.mxu1 %v2919_v4 }
  0x28   :  { %2572 = vmatpush3.bf16.msra.mxu0 %v3116_v40 }
  0x29   :  { %2269 = vmatpush3.bf16.msra.mxu1 %v2931_v6  ;;  %2573 = vmatprep.subr.bf16.mxu0 %v2851_v34 }
  0x2a   :  { %2270 = vmatprep.subr.bf16.mxu1 %v2943_v8 }
  0x2b   :  { %518 = vmatmul.mubr.bf16.gmra.mrb[4].mxu0 %v2726_v41  ;;  %v2761_v41 = vld [vmem:[%s3874_s0 + $0x88] ss:$20 sps:$4 sm:$0xff]  }
  0x2c   :  { %590 = vmatmul.mubr.bf16.gmra.mrb[4].mxu1 %v2727_v42  ;;  %525 = vmatprep.mubr.bf16.mxu0 %v2729_v43  ;;  %v2762_v42 = vld [vmem:[%s3875_s1 + $0x78] ss:$20 sps:$4 sm:$0xff]   ;;  %v2078_v43 = vcombine.high %v747_v39, %v747_v39 }
  0x2d   :  { %597 = vmatprep.mubr.bf16.mxu1 %v2731_v44  ;;  %2271 = vmatpush3.bf16.msra.mxu1 %v2955_v10  ;;  %v2764_v44 = vld [vmem:[%s3874_s0 + $0xb0] ss:$0 sps:$4 sm:$0xff]  }
  0x2e   :  { %2272 = vmatprep.subr.bf16.mxu1 %v2967_v12  ;;  %2574 = vmatpush3.bf16.msra.mxu0 %v3138_v45 }
  0x2f   :  { %2575 = vmatprep.subr.bf16.mxu0 %v2851_v34 }
  0x31   :  { %2273 = vmatpush3.bf16.msra.mxu1 %v2979_v14 }
  0x32   :  { %2274 = vmatprep.subr.bf16.mxu1 %v2991_v16  ;;  %2576 = vmatpush3.bf16.msra.mxu0 %v3146_v46 }
  0x33   :  { %526 = vmatmul.mubr.bf16.gmra.mrb[8].mxu0 %v2733_v47  ;;  %2312 = vmatprep.subr.bf16.mxu0 %v2901_v1  ;;  %v2077_v47 = vcombine.low %v747_v39, %v747_v39  ;;  %v2795_v39 = vld [vmem:[%s3876_s2 + $0x28] ss:$20 sps:$4 sm:$0xff]  }
  0x34   :  { %598 = vmatmul.mubr.bf16.gmra.mrb[8].mxu1 %v2734_v48  ;;  %533 = vmatprep.mubr.bf16.mxu0 %v2736_v49  ;;  %v2768_v48 = vld [vmem:[%s3875_s1 + $0xc] ss:$20 sps:$4 sm:$0xff]   ;;  %v2766_v49 = vld [vmem:[%s3875_s1 + $0x8] ss:$20 sps:$4 sm:$0xff]  }
  0x35   :  { %605 = vmatprep.mubr.bf16.mxu1 %v2738_v50  ;;  %2275 = vmatpush3.bf16.msra.mxu1 %v3003_v18  ;;  %v2769_v50 = vld [vmem:[%s3875_s1 + $0x10] ss:$20 sps:$4 sm:$0xff]  }
  0x36   :  { %2276 = vmatprep.subr.bf16.mxu1 %v3015_v20 }
  0x39   :  { %2277 = vmatpush3.bf16.msra.mxu1 %v3027_v22 }
  0x3a   :  { %2278 = vmatprep.subr.bf16.mxu1 %v3039_v24 }
  0x3b   :  { %534 = vmatmul.mubr.bf16.gmra.mrb[12].mxu0 %v2740_v53  ;;  %v2773_v53 = vld [vmem:[%s3875_s1 + $0x38] ss:$20 sps:$4 sm:$0xff]  }
  0x3c   :  { %606 = vmatmul.mubr.bf16.gmra.mrb[12].mxu1 %v2741_v54  ;;  %541 = vmatprep.mubr.bf16.mxu0 %v2010_v55  ;;  %v2774_v54 = vld [vmem:[%s3875_s1 + $0x5c] ss:$20 sps:$4 sm:$0xff]   ;;  %v2776_v55 = vld [vmem:[%s3875_s1 + $0x58] ss:$20 sps:$4 sm:$0xff]  }
  0x3d   :  { %613 = vmatprep.mubr.bf16.mxu1 %v2012_v56  ;;  %2279 = vmatpush3.bf16.msra.mxu1 %v3051_v26  ;;  %v2777_v56 = vld [vmem:[%s3875_s1 + $0x60] ss:$20 sps:$4 sm:$0xff]  }
  0x3e   :  { %2280 = vmatprep.subr.bf16.mxu1 %v3063_v28 }
  0x41   :  { %2281 = vmatpush3.bf16.msra.mxu1 %v3075_v30 }
  0x42   :  { %2597 = vmatprep.subr.bf16.mxu1 %v2851_v34 }
  0x43   :  { %542 = vmatmul.mubr.bf16.gmra.mrb[16].mxu0 %v2009_v57  ;;  %v2778_v57 = vld [vmem:[%s3875_s1 + $0x84] ss:$20 sps:$4 sm:$0xff]  }
  0x44   :  { %614 = vmatmul.mubr.bf16.gmra.mrb[16].mxu1 %v2011_v58  ;;  %2577 = vmatprep.mubr.msk.bf16.mxu0 %vm2852_vm0, %v2851_v34  ;;  %v748_v58 = vld [vmem:[%s3875_s1 + $0xa8] sm:$0xff] }
  0x45   :  { %914 = vmatprep.mubr.bf16.mxu1 %v2749_v59  ;;  %v2780_v59 = vld [vmem:[%s3875_s1 + $0x80] ss:$20 sps:$4 sm:$0xff]  }
  0x4b   :  { %2578 = vmatmul.mubr.msk.bf16.vlgmr.msra.gmra.mrb[20].mxu0 %vm461_vm1, %v2750_v60  ;;  %v2781_v60 = vld [vmem:[%s3875_s1 + $0x88] ss:$20 sps:$4 sm:$0xff]  }
  0x4c   :  { %915 = vmatmul.mubr.bf16.vlgmr.msra.gmra.mrb[20].mxu1 %v2747_v61  ;;  %2313 = vmatpush3.bf16.msra.mxu0 %v2913_v3  ;;  %v2080_v61 = vcombine.high %v748_v58, %v748_v58 }
  0x4d   :  { %2314 = vmatprep.subr.bf16.mxu0 %v2925_v5  ;;  %2598 = vmatpush3.bf16.msra.mxu1 %v3102_v37 }
  0x4e   :  { %2581 = vmatprep.mubr.msk.bf16.mxu0 %vm2852_vm0, %v2851_v34  ;;  %922 = vmatprep.mubr.bf16.mxu1 %v2751_v62  ;;  %v2079_v62 = vcombine.low %v748_v58, %v748_v58 }
  0x4f   :  { %2599 = vmatprep.subr.bf16.mxu1 %v2851_v34 }
  0x50   :  { %2315 = vmatpush3.bf16.msra.mxu0 %v2937_v7 }
  0x51   :  { %2316 = vmatprep.subr.bf16.mxu0 %v2949_v9  ;;  %2600 = vmatpush3.bf16.msra.mxu1 %v3116_v40 }
  0x52   :  { %2601 = vmatprep.subr.bf16.mxu1 %v2851_v34 }
  0x53   :  { %2582 = vmatmul.mubr.msk.bf16.gmra.mrb[24].mxu0 %vm461_vm1, %v2753_v63  ;;  %v2784_v63 = vld [vmem:[%s3875_s1 + $0xb0] ss:$0 sps:$4 sm:$0xff]  }
  0x54   :  { %923 = vmatmul.mubr.bf16.gmra.mrb[24].mxu1 %v2754_v32  ;;  %2317 = vmatpush3.bf16.msra.mxu0 %v2961_v11  ;;  %v2787_v32 = vld [vmem:[%s3876_s2 + $0x4] ss:$20 sps:$4 sm:$0xff]  }
  0x55   :  { %2585 = vmatprep.mubr.msk.bf16.mxu0 %vm2852_vm0, %v2851_v34  ;;  %930 = vmatprep.mubr.bf16.mxu1 %v2755_v33  ;;  %v2790_v33 = vld [vmem:[%s3876_s2 + $0xc] ss:$20 sps:$4 sm:$0xff]  }
  0x56   :  { %2318 = vmatprep.subr.bf16.mxu0 %v2973_v13  ;;  %2602 = vmatpush3.bf16.msra.mxu1 %v3138_v45 }
  0x57   :  { %2603 = vmatprep.subr.bf16.mxu1 %v2851_v34 }
  0x58   :  { %2319 = vmatpush3.bf16.msra.mxu0 %v2985_v15 }
  0x59   :  { %2320 = vmatprep.subr.bf16.mxu0 %v2997_v17 }
  0x5a   :  { %2604 = vmatpush3.bf16.msra.mxu1 %v3146_v46 }
  0x5b   :  { %2586 = vmatmul.mubr.msk.bf16.gmra.mrb[28].mxu0 %vm461_vm1, %v2757_v35  ;;  %2413 = vmatprep.subr.bf16.mxu1 %v2901_v1  ;;  %v2785_v35 = vld [vmem:[%s3876_s2] ss:$20 sps:$4 sm:$0xff]  }
  0x5c   :  { %931 = vmatmul.mubr.bf16.gmra.mrb[28].mxu1 %v2758_v36  ;;  %2321 = vmatpush3.bf16.msra.mxu0 %v3009_v19  ;;  %v2788_v36 = vld [vmem:[%s3876_s2 + $0x8] ss:$20 sps:$4 sm:$0xff]  }
  0x5d   :  { %2589 = vmatprep.mubr.msk.bf16.mxu0 %vm2852_vm0, %v2851_v34  ;;  %938 = vmatprep.mubr.bf16.mxu1 %v2759_v38  ;;  %v2791_v38 = vld [vmem:[%s3876_s2 + $0x2c] ss:$20 sps:$4 sm:$0xff]  }
  0x5e   :  { %2322 = vmatprep.subr.bf16.mxu0 %v3021_v21 }
  0x60   :  { %2323 = vmatpush3.bf16.msra.mxu0 %v3033_v23 }
  0x61   :  { %2324 = vmatprep.subr.bf16.mxu0 %v3045_v25 }
  0x63   :  { %2590 = vmatmul.mubr.msk.bf16.gmra.mrb[32].mxu0 %vm461_vm1, %v2761_v41  ;;  %v2796_v41 = vld [vmem:[%s3876_s2 + $0x30] ss:$20 sps:$4 sm:$0xff]  }
  0x64   :  { %939 = vmatmul.mubr.bf16.gmra.mrb[32].mxu1 %v2762_v42  ;;  %2593 = vmatprep.mubr.msk.bf16.mxu0 %vm2852_vm0, %v2851_v34  ;;  %v2799_v42 = vld [vmem:[%s3876_s2 + $0x5c] ss:$20 sps:$4 sm:$0xff]  }
  0x65   :  { %946 = vmatprep.mubr.bf16.mxu1 %v2078_v43  ;;  %2325 = vmatpush3.bf16.msra.mxu0 %v3057_v27 }
  0x66   :  { %2326 = vmatprep.subr.bf16.mxu0 %v3069_v29 }
  0x69   :  { %2327 = vmatpush3.bf16.msra.mxu0 %v3081_v31 }
  0x6a   :  { %2367 = vmatprep.subr.bf16.mxu0 %v2896_v0 }
  0x6b   :  { %2594 = vmatmul.mubr.msk.bf16.gmra.mrb[36].mxu0 %vm461_vm1, %v2764_v44 }
  0x6c   :  { %947 = vmatmul.mubr.bf16.gmra.mrb[36].mxu1 %v2077_v47  ;;  %986 = vmatprep.mubr.bf16.mxu0 %v2768_v48  ;;  %v2816_v47 = vld [vmem:[%s3877_s3 + $0x4] ss:$20 sps:$4 sm:$0xff]  }
  0x6d   :  { %2605 = vmatprep.mubr.msk.bf16.mxu1 %vm2852_vm0, %v2851_v34 }
  0x73   :  { %987 = vmatmul.mubr.bf16.vlgmr.msra.gmra.mrb[40].mxu0 %v2766_v49  ;;  %v2842_v49 = vld [vmem:[%s3877_s3 + $0x58] ss:$20 sps:$4 sm:$0xff]  }
  0x74   :  { %2606 = vmatmul.mubr.msk.bf16.vlgmr.msra.gmra.mrb[40].mxu1 %vm461_vm1, %v2769_v50  ;;  %2368 = vmatpush3.bf16.msra.mxu0 %v2907_v2 }
  0x75   :  { %2369 = vmatprep.subr.bf16.mxu0 %v2919_v4  ;;  %2414 = vmatpush3.bf16.msra.mxu1 %v2913_v3 }
  0x76   :  { %994 = vmatprep.mubr.bf16.mxu0 %v2770_v51  ;;  %2609 = vmatprep.mubr.msk.bf16.mxu1 %vm2852_vm0, %v2851_v34 }
  0x77   :  { %2415 = vmatprep.subr.bf16.mxu1 %v2925_v5 }
  0x78   :  { %2370 = vmatpush3.bf16.msra.mxu0 %v2931_v6 }
  0x79   :  { %2371 = vmatprep.subr.bf16.mxu0 %v2943_v8  ;;  %2416 = vmatpush3.bf16.msra.mxu1 %v2937_v7 }
  0x7a   :  { %2417 = vmatprep.subr.bf16.mxu1 %v2949_v9 }
  0x7b   :  { %995 = vmatmul.mubr.bf16.gmra.mrb[44].mxu0 %v2772_v52 }
  0x7c   :  { %2610 = vmatmul.mubr.msk.bf16.gmra.mrb[44].mxu1 %vm461_vm1, %v2773_v53  ;;  %2372 = vmatpush3.bf16.msra.mxu0 %v2955_v10  ;;  %v2843_v53 = vld [vmem:[%s3877_s3 + $0x60] ss:$20 sps:$4 sm:$0xff]  }
  0x7d   :  { %1002 = vmatprep.mubr.bf16.mxu0 %v2774_v54  ;;  %2613 = vmatprep.mubr.msk.bf16.mxu1 %vm2852_vm0, %v2851_v34  ;;  %v2844_v54 = vld [vmem:[%s3877_s3 + $0x84] ss:$20 sps:$4 sm:$0xff]  }
  0x7e   :  { %2373 = vmatprep.subr.bf16.mxu0 %v2967_v12  ;;  %2418 = vmatpush3.bf16.msra.mxu1 %v2961_v11 }
  0x7f   :  { %2419 = vmatprep.subr.bf16.mxu1 %v2973_v13 }
  0x80   :  { %2374 = vmatpush3.bf16.msra.mxu0 %v2979_v14 }
  0x81   :  { %2375 = vmatprep.subr.bf16.mxu0 %v2991_v16 }
  0x82   :  { %2420 = vmatpush3.bf16.msra.mxu1 %v2985_v15 }
  0x83   :  { %1003 = vmatmul.mubr.bf16.gmra.mrb[48].mxu0 %v2776_v55  ;;  %2421 = vmatprep.subr.bf16.mxu1 %v2997_v17 }
  0x84   :  { %2614 = vmatmul.mubr.msk.bf16.gmra.mrb[48].mxu1 %vm461_vm1, %v2777_v56  ;;  %2376 = vmatpush3.bf16.msra.mxu0 %v3003_v18 }
  0x85   :  { %1010 = vmatprep.mubr.bf16.mxu0 %v2778_v57  ;;  %2617 = vmatprep.mubr.msk.bf16.mxu1 %vm2852_vm0, %v2851_v34 }
  0x86   :  { %2377 = vmatprep.subr.bf16.mxu0 %v3015_v20  ;;  %2422 = vmatpush3.bf16.msra.mxu1 %v3009_v19 }
  0x87   :  { %2423 = vmatprep.subr.bf16.mxu1 %v3021_v21 }
  0x88   :  { %2378 = vmatpush3.bf16.msra.mxu0 %v3027_v22 }
  0x89   :  { %2379 = vmatprep.subr.bf16.mxu0 %v3039_v24 }
  0x8a   :  { %2424 = vmatpush3.bf16.msra.mxu1 %v3033_v23 }
  0x8b   :  { %1011 = vmatmul.mubr.bf16.gmra.mrb[52].mxu0 %v2780_v59  ;;  %2425 = vmatprep.subr.bf16.mxu1 %v3045_v25 }
  0x8c   :  { %2618 = vmatmul.mubr.msk.bf16.gmra.mrb[52].mxu1 %vm461_vm1, %v2781_v60  ;;  %1018 = vmatprep.mubr.bf16.mxu0 %v2080_v61 }
  0x8d   :  { %2621 = vmatprep.mubr.msk.bf16.mxu1 %vm2852_vm0, %v2851_v34  ;;  %2380 = vmatpush3.bf16.msra.mxu0 %v3051_v26 }
  0x8e   :  { %2426 = vmatpush3.bf16.msra.mxu1 %v3057_v27  ;;  %2381 = vmatprep.subr.bf16.mxu0 %v3063_v28 }
  0x8f   :  { %2427 = vmatprep.subr.bf16.mxu1 %v3069_v29 }
  0x91   :  { %2382 = vmatpush3.bf16.msra.mxu0 %v3075_v30 }
  0x92   :  { %2428 = vmatpush3.bf16.msra.mxu1 %v3081_v31  ;;  %2625 = vmatprep.subr.bf16.mxu0 %v2851_v34 }
  0x93   :  { %1019 = vmatmul.mubr.bf16.gmra.mrb[56].mxu0 %v2079_v62  ;;  %2468 = vmatprep.subr.bf16.mxu1 %v2896_v0  ;;  %v2793_v0 = vld [vmem:[%s3876_s2 + $0x34] ss:$20 sps:$4 sm:$0xff]  }
  0x94   :  { %2622 = vmatmul.mubr.msk.bf16.gmra.mrb[56].mxu1 %vm461_vm1, %v2784_v63  ;;  %1316 = vmatprep.mubr.bf16.mxu0 %v2787_v32  ;;  %v1543_v62 = vld [vmem:[%s3877_s3 + $0xa8] sm:$0xff] }
  0x95   :  { %1388 = vmatprep.mubr.bf16.mxu1 %v2790_v33 }
  0x9b   :  { %1317 = vmatmul.mubr.bf16.vlgmr.msra.gmra.mrb[60].mxu0 %v2785_v35 }
  0x9c   :  { %1389 = vmatmul.mubr.bf16.vlgmr.msra.gmra.mrb[60].mxu1 %v2788_v36  ;;  %2626 = vmatpush3.bf16.msra.mxu0 %v3102_v37  ;;  %v2846_v36 = vld [vmem:[%s3877_s3 + $0x80] ss:$20 sps:$4 sm:$0xff]  }
  0x9d   :  { %2469 = vmatpush3.bf16.msra.mxu1 %v2907_v2  ;;  %1324 = vmatprep.mubr.bf16.mxu0 %v2791_v38  ;;  %v2797_v2 = vld [vmem:[%s3876_s2 + $0x54] ss:$20 sps:$4 sm:$0xff]  }
  0x9e   :  { %1396 = vmatprep.mubr.bf16.mxu1 %v2793_v0  ;;  %2627 = vmatprep.subr.bf16.mxu0 %v2851_v34 }
  0x9f   :  { %2470 = vmatprep.subr.bf16.mxu1 %v2919_v4  ;;  %v2801_v4 = vld [vmem:[%s3876_s2 + $0x50] ss:$20 sps:$4 sm:$0xff]  }
  0xa0   :  { %2628 = vmatpush3.bf16.msra.mxu0 %v3116_v40 }
  0xa1   :  { %2471 = vmatpush3.bf16.msra.mxu1 %v2931_v6  ;;  %2629 = vmatprep.subr.bf16.mxu0 %v2851_v34  ;;  %v2802_v6 = vld [vmem:[%s3876_s2 + $0x58] ss:$20 sps:$4 sm:$0xff]  }
  0xa2   :  { %2472 = vmatprep.subr.bf16.mxu1 %v2943_v8  ;;  %v2803_v8 = vld [vmem:[%s3876_s2 + $0x7c] ss:$20 sps:$4 sm:$0xff]  }
  0xa3   :  { %1325 = vmatmul.mubr.bf16.gmra.mrb[64].mxu0 %v2795_v39 }
  0xa4   :  { %1397 = vmatmul.mubr.bf16.gmra.mrb[64].mxu1 %v2796_v41  ;;  %1332 = vmatprep.mubr.bf16.mxu0 %v2797_v2  ;;  %v2847_v41 = vld [vmem:[%s3877_s3 + $0x88] ss:$20 sps:$4 sm:$0xff]   ;;  %v2140_v2 = vcombine.high %v1543_v62, %v1543_v62 }
  0xa5   :  { %1404 = vmatprep.mubr.bf16.mxu1 %v2799_v42  ;;  %2473 = vmatpush3.bf16.msra.mxu1 %v2955_v10  ;;  %v2805_v10 = vld [vmem:[%s3876_s2 + $0x84] ss:$20 sps:$4 sm:$0xff]  }
  0xa6   :  { %2474 = vmatprep.subr.bf16.mxu1 %v2967_v12  ;;  %2630 = vmatpush3.bf16.msra.mxu0 %v3138_v45  ;;  %v1149_v12 = vld [vmem:[%s3876_s2 + $0xa0] sm:$0xff] }
  0xa7   :  { %2631 = vmatprep.subr.bf16.mxu0 %v2851_v34  ;;  %v2108_v43 = vcombine.high %v1149_v12, %v1149_v12 }
  0xa9   :  { %2475 = vmatpush3.bf16.msra.mxu1 %v2979_v14  ;;  %v1150_v14 = vld [vmem:[%s3876_s2 + $0xa8] sm:$0xff] }
  0xaa   :  { %2476 = vmatprep.subr.bf16.mxu1 %v2991_v16  ;;  %2632 = vmatpush3.bf16.msra.mxu0 %v3146_v46  ;;  %v2807_v16 = vld [vmem:[%s3876_s2 + $0x78] ss:$20 sps:$4 sm:$0xff]   ;;  %v2109_v44 = vcombine.low %v1150_v14, %v1150_v14 }
  0xab   :  { %1333 = vmatmul.mubr.bf16.gmra.mrb[68].mxu0 %v2801_v4  ;;  %2514 = vmatprep.subr.bf16.mxu0 %v2901_v1  ;;  %v2808_v1 = vld [vmem:[%s3876_s2 + $0x80] ss:$20 sps:$4 sm:$0xff]  }
  0xac   :  { %1405 = vmatmul.mubr.bf16.gmra.mrb[68].mxu1 %v2802_v6  ;;  %1340 = vmatprep.mubr.bf16.mxu0 %v2803_v8 }
  0xad   :  { %1412 = vmatprep.mubr.bf16.mxu1 %v2805_v10  ;;  %2477 = vmatpush3.bf16.msra.mxu1 %v3003_v18  ;;  %v2110_v18 = vcombine.high %v1150_v14, %v1150_v14 }
  0xae   :  { %2478 = vmatprep.subr.bf16.mxu1 %v3015_v20  ;;  %v2107_v20 = vcombine.low %v1149_v12, %v1149_v12 }
  0xb1   :  { %2479 = vmatpush3.bf16.msra.mxu1 %v3027_v22  ;;  %v2813_v22 = vld [vmem:[%s3876_s2 + $0x10] ss:$20 sps:$4 sm:$0xff]  }
  0xb2   :  { %2480 = vmatprep.subr.bf16.mxu1 %v3039_v24  ;;  %v2814_v24 = vld [vmem:[%s3877_s3] ss:$20 sps:$4 sm:$0xff]  }
  0xb3   :  { %1341 = vmatmul.mubr.bf16.gmra.mrb[72].mxu0 %v2807_v16 }
  0xb4   :  { %1413 = vmatmul.mubr.bf16.gmra.mrb[72].mxu1 %v2808_v1  ;;  %1348 = vmatprep.mubr.bf16.mxu0 %v2108_v43 }
  0xb5   :  { %1420 = vmatprep.mubr.bf16.mxu1 %v2110_v18  ;;  %2481 = vmatpush3.bf16.msra.mxu1 %v3051_v26  ;;  %v2818_v26 = vld [vmem:[%s3877_s3 + $0x2c] ss:$20 sps:$4 sm:$0xff]  }
  0xb6   :  { %2482 = vmatprep.subr.bf16.mxu1 %v3063_v28  ;;  %v2817_v28 = vld [vmem:[%s3876_s2 + $0x38] ss:$20 sps:$4 sm:$0xff]  }
  0xb9   :  { %2483 = vmatpush3.bf16.msra.mxu1 %v3075_v30  ;;  %v2836_v30 = vld [vmem:[%s3877_s3 + $0x34] ss:$20 sps:$4 sm:$0xff]  }
  0xba   :  { %2653 = vmatprep.subr.bf16.mxu1 %v2851_v34 }
  0xbb   :  { %1349 = vmatmul.mubr.bf16.gmra.mrb[76].mxu0 %v2107_v20  ;;  %v2139_v20 = vcombine.low %v1543_v62, %v1543_v62 }
  0xbc   :  { %1421 = vmatmul.mubr.bf16.gmra.mrb[76].mxu1 %v2109_v44  ;;  %2633 = vmatprep.mubr.msk.bf16.mxu0 %vm2852_vm0, %v2851_v34 }
  0xbd   :  { %1709 = vmatprep.mubr.bf16.mxu1 %v2816_v47 }
  0xc3   :  { %2634 = vmatmul.mubr.msk.bf16.vlgmr.msra.gmra.mrb[80].mxu0 %vm461_vm1, %v2813_v22 }
  0xc4   :  { %2515 = vmatpush3.bf16.msra.mxu0 %v2913_v3  ;;  %1710 = vmatmul.mubr.bf16.vlgmr.msra.gmra.mrb[80].mxu1 %v2814_v24  ;;  %v2820_v3 = vld [vmem:[%s3877_s3 + $0x28] ss:$20 sps:$4 sm:$0xff]   ;;  %v2850_v24 = vld [vmem:[%s3877_s3 + $0xb0] ss:$0 sps:$4 sm:$0xff]  }
  0xc5   :  { %2516 = vmatprep.subr.bf16.mxu0 %v2925_v5  ;;  %2654 = vmatpush3.bf16.msra.mxu1 %v3102_v37  ;;  %v2822_v5 = vld [vmem:[%s3877_s3 + $0x54] ss:$20 sps:$4 sm:$0xff]   ;;  %v2839_v37 = vld [vmem:[%s3877_s3 + $0x38] ss:$20 sps:$4 sm:$0xff]  }
  0xc6   :  { %2637 = vmatprep.mubr.msk.bf16.mxu0 %vm2852_vm0, %v2851_v34  ;;  %1717 = vmatprep.mubr.bf16.mxu1 %v2818_v26 }
  0xc7   :  { %2655 = vmatprep.subr.bf16.mxu1 %v2851_v34 }
  0xc8   :  { %2517 = vmatpush3.bf16.msra.mxu0 %v2937_v7  ;;  %v2821_v7 = vld [vmem:[%s3876_s2 + $0x60] ss:$20 sps:$4 sm:$0xff]  }
  0xc9   :  { %2518 = vmatprep.subr.bf16.mxu0 %v2949_v9  ;;  %2656 = vmatpush3.bf16.msra.mxu1 %v3116_v40  ;;  %v2824_v9 = vld [vmem:[%s3877_s3 + $0x50] ss:$20 sps:$4 sm:$0xff]  }
  0xca   :  { %2657 = vmatprep.subr.bf16.mxu1 %v2851_v34  ;;  %v2840_v40 = vld [vmem:[%s3877_s3 + $0x5c] ss:$20 sps:$4 sm:$0xff]  }
  0xcb   :  { %2638 = vmatmul.mubr.msk.bf16.gmra.mrb[84].mxu0 %vm461_vm1, %v2817_v28 }
  0xcc   :  { %1718 = vmatmul.mubr.bf16.gmra.mrb[84].mxu1 %v2820_v3  ;;  %2519 = vmatpush3.bf16.msra.mxu0 %v2961_v11  ;;  %v2826_v11 = vld [vmem:[%s3877_s3 + $0x7c] ss:$20 sps:$4 sm:$0xff]  }
  0xcd   :  { %2641 = vmatprep.mubr.msk.bf16.mxu0 %vm2852_vm0, %v2851_v34  ;;  %2520 = vmatprep.subr.bf16.mxu0 %v2973_v13  ;;  %v1542_v13 = vld [vmem:[%s3877_s3 + $0xa0] sm:$0xff] }
  0xce   :  { %1725 = vmatprep.mubr.bf16.mxu1 %v2822_v5  ;;  %2658 = vmatpush3.bf16.msra.mxu1 %v3138_v45 }
  0xcf   :  { %2659 = vmatprep.subr.bf16.mxu1 %v2851_v34 }
  0xd0   :  { %2521 = vmatpush3.bf16.msra.mxu0 %v2985_v15  ;;  %v2825_v15 = vld [vmem:[%s3876_s2 + $0x88] ss:$20 sps:$4 sm:$0xff]  }
  0xd1   :  { %2522 = vmatprep.subr.bf16.mxu0 %v2997_v17  ;;  %v2828_v17 = vld [vmem:[%s3877_s3 + $0x78] ss:$20 sps:$4 sm:$0xff]  }
  0xd2   :  { %2660 = vmatpush3.bf16.msra.mxu1 %v3146_v46 }
  0xd3   :  { %2642 = vmatmul.mubr.msk.bf16.gmra.mrb[88].mxu0 %vm461_vm1, %v2821_v7 }
  0xd4   :  { %1726 = vmatmul.mubr.bf16.gmra.mrb[88].mxu1 %v2824_v9  ;;  %2523 = vmatpush3.bf16.msra.mxu0 %v3009_v19  ;;  %v2138_v19 = vcombine.high %v1542_v13, %v1542_v13 }
  0xd5   :  { %2645 = vmatprep.mubr.msk.bf16.mxu0 %vm2852_vm0, %v2851_v34  ;;  %2524 = vmatprep.subr.bf16.mxu0 %v3021_v21  ;;  %v2829_v21 = vld [vmem:[%s3876_s2 + $0xb0] ss:$0 sps:$4 sm:$0xff]  }
  0xd6   :  { %1733 = vmatprep.mubr.bf16.mxu1 %v2826_v11 }
  0xd8   :  { %2525 = vmatpush3.bf16.msra.mxu0 %v3033_v23  ;;  %v2137_v23 = vcombine.low %v1542_v13, %v1542_v13 }
  0xd9   :  { %2526 = vmatprep.subr.bf16.mxu0 %v3045_v25  ;;  %v2834_v25 = vld [vmem:[%s3877_s3 + $0xc] ss:$20 sps:$4 sm:$0xff]  }
  0xdb   :  { %2646 = vmatmul.mubr.msk.bf16.gmra.mrb[92].mxu0 %vm461_vm1, %v2825_v15 }
  0xdc   :  { %1734 = vmatmul.mubr.bf16.gmra.mrb[92].mxu1 %v2828_v17  ;;  %2649 = vmatprep.mubr.msk.bf16.mxu0 %vm2852_vm0, %v2851_v34 }
  0xdd   :  { %2527 = vmatpush3.bf16.msra.mxu0 %v3057_v27  ;;  %1741 = vmatprep.mubr.bf16.mxu1 %v2138_v19  ;;  %v2832_v27 = vld [vmem:[%s3877_s3 + $0x8] ss:$20 sps:$4 sm:$0xff]  }
  0xde   :  { %2528 = vmatprep.subr.bf16.mxu0 %v3069_v29  ;;  %v2835_v29 = vld [vmem:[%s3877_s3 + $0x10] ss:$20 sps:$4 sm:$0xff]  }
  0xe1   :  { %2529 = vmatpush3.bf16.msra.mxu0 %v3081_v31  ;;  %v2838_v31 = vld [vmem:[%s3877_s3 + $0x30] ss:$20 sps:$4 sm:$0xff]  }
  0xe3   :  { %2650 = vmatmul.mubr.msk.bf16.gmra.mrb[96].mxu0 %vm461_vm1, %v2829_v21 }
  0xe4   :  { %1742 = vmatmul.mubr.bf16.gmra.mrb[96].mxu1 %v2137_v23  ;;  %1781 = vmatprep.mubr.bf16.mxu0 %v2834_v25 }
  0xe5   :  { %2661 = vmatprep.mubr.msk.bf16.mxu1 %vm2852_vm0, %v2851_v34 }
  0xeb   :  { %1782 = vmatmul.mubr.bf16.vlgmr.msra.gmra.mrb[100].mxu0 %v2832_v27 }
  0xec   :  { %2662 = vmatmul.mubr.msk.bf16.vlgmr.msra.gmra.mrb[100].mxu1 %vm461_vm1, %v2835_v29  ;;  %1789 = vmatprep.mubr.bf16.mxu0 %v2836_v30 }
  0xed   :  { %2665 = vmatprep.mubr.msk.bf16.mxu1 %vm2852_vm0, %v2851_v34 }
  0xf3   :  { %1790 = vmatmul.mubr.bf16.gmra.mrb[104].mxu0 %v2838_v31 }
  0xf4   :  { %2666 = vmatmul.mubr.msk.bf16.gmra.mrb[104].mxu1 %vm461_vm1, %v2839_v37  ;;  %1797 = vmatprep.mubr.bf16.mxu0 %v2840_v40 }
  0xf5   :  { %2669 = vmatprep.mubr.msk.bf16.mxu1 %vm2852_vm0, %v2851_v34 }
  0xf6   :  { %v2181_v45 = vpop.f32.mrb[0].mxu0 }
  0xf7   :  { %v2227_v46 = vpop.f32.mrb[0].mxu1  ;;  %v2182_v48 = vpop.f32.mrb[1].mxu0 }
  0xf8   :  { %v2183_v50 = vadd.f32 %v2182_v48, %v2181_v45  ;;  %v2228_v51 = vpop.f32.mrb[1].mxu1  ;;  %v2184_v52 = vpop.f32.mrb[2].mxu0 }
  0xf9   :  { %v2229_v55 = vadd.f32 %v2228_v51, %v2227_v46  ;;  %v2230_v56 = vpop.f32.mrb[2].mxu1  ;;  %v2185_v57 = vpop.f32.mrb[3].mxu0 }
  0xfa   :  { %v2186_v58 = vadd.f32 %v2185_v57, %v2184_v52  ;;  %v2231_v59 = vpop.f32.mrb[3].mxu1 }
  0xfb   :  { %v2232_v60 = vadd.f32 %v2231_v59, %v2230_v56  ;;  %1798 = vmatmul.mubr.bf16.gmra.mrb[108].mxu0 %v2842_v49  ;;  %v3550_v61 = vadd.f32 %v2229_v55, %v2183_v50 }
  0xfc   :  { %2670 = vmatmul.mubr.msk.bf16.gmra.mrb[108].mxu1 %vm461_vm1, %v2843_v53  ;;  %1805 = vmatprep.mubr.bf16.mxu0 %v2844_v54 }
  0xfd   :  { %2673 = vmatprep.mubr.msk.bf16.mxu1 %vm2852_vm0, %v2851_v34  ;;  %v3558_v63 = vadd.f32 %v2232_v60, %v2186_v58 }
  0xfe   :  { %v2187_v32 = vpop.f32.mrb[4].mxu0 }
  0xff   :  { %v2233_v33 = vpop.f32.mrb[4].mxu1  ;;  %v2188_v35 = vpop.f32.mrb[5].mxu0 }
 0x100   :  { %v2189_v38 = vadd.f32 %v2188_v35, %v2187_v32  ;;  %v2234_v0 = vpop.f32.mrb[5].mxu1  ;;  %v2190_v39 = vpop.f32.mrb[6].mxu0 }
 0x101   :  { %v2235_v42 = vadd.f32 %v2234_v0, %v2233_v33  ;;  %v2236_v4 = vpop.f32.mrb[6].mxu1  ;;  %v2191_v6 = vpop.f32.mrb[7].mxu0 }
 0x102   :  { %v2192_v8 = vadd.f32 %v2191_v6, %v2190_v39  ;;  %v2237_v10 = vpop.f32.mrb[7].mxu1 }
 0x103   :  { %v2238_v12 = vadd.f32 %v2237_v10, %v2236_v4  ;;  %1806 = vmatmul.mubr.bf16.gmra.mrb[112].mxu0 %v2846_v36  ;;  %v592_v14 = vadd.f32 %v2235_v42, %v2189_v38 }
 0x104   :  { %2674 = vmatmul.mubr.msk.bf16.gmra.mrb[112].mxu1 %vm461_vm1, %v2847_v41  ;;  %1813 = vmatprep.mubr.bf16.mxu0 %v2140_v2 }
 0x105   :  { %2677 = vmatprep.mubr.msk.bf16.mxu1 %vm2852_vm0, %v2851_v34  ;;  %v595_v16 = vadd.f32 %v2238_v12, %v2192_v8 }
 0x106   :  { %v2193_v1 = vpop.f32.mrb[8].mxu0 }
 0x107   :  { %v2239_v43 = vpop.f32.mrb[8].mxu1  ;;  %v2194_v18 = vpop.f32.mrb[9].mxu0 }
 0x108   :  { %v2195_v44 = vadd.f32 %v2194_v18, %v2193_v1  ;;  %v2240_v47 = vpop.f32.mrb[9].mxu1  ;;  %v2196_v22 = vpop.f32.mrb[10].mxu0 }
 0x109   :  { %v2241_v26 = vadd.f32 %v2240_v47, %v2239_v43  ;;  %v2242_v28 = vpop.f32.mrb[10].mxu1  ;;  %v2197_v3 = vpop.f32.mrb[11].mxu0 }
 0x10a   :  { %v2198_v5 = vadd.f32 %v2197_v3, %v2196_v22  ;;  %v2243_v7 = vpop.f32.mrb[11].mxu1 }
 0x10b   :  { %v2244_v9 = vadd.f32 %v2243_v7, %v2242_v28  ;;  %1814 = vmatmul.mubr.bf16.gmra.mrb[116].mxu0 %v2139_v20  ;;  %v600_v34 = vadd.f32 %v2241_v26, %v2195_v44 }
 0x10c   :  { %2678 = vmatmul.mubr.msk.bf16.gmra.mrb[116].mxu1 %vm461_vm1, %v2850_v24 }
 0x10d   :  { %v603_v11 = vadd.f32 %v2244_v9, %v2198_v5 }
 0x10e   :  { %v2199_v13 = vpop.f32.mrb[12].mxu0 }
 0x10f   :  { %v2245_v15 = vpop.f32.mrb[12].mxu1  ;;  %v2200_v17 = vpop.f32.mrb[13].mxu0 }
 0x110   :  { %v2201_v19 = vadd.f32 %v2200_v17, %v2199_v13  ;;  %v2246_v21 = vpop.f32.mrb[13].mxu1  ;;  %v2202_v23 = vpop.f32.mrb[14].mxu0 }
 0x111   :  { %v2247_v25 = vadd.f32 %v2246_v21, %v2245_v15  ;;  %v2248_v27 = vpop.f32.mrb[14].mxu1  ;;  %v2203_v29 = vpop.f32.mrb[15].mxu0 }
 0x112   :  { %v2204_v30 = vadd.f32 %v2203_v29, %v2202_v23  ;;  %v2249_v31 = vpop.f32.mrb[15].mxu1 }
 0x113   :  { %v2250_v37 = vadd.f32 %v2249_v31, %v2248_v27  ;;  %v608_v40 = vadd.f32 %v2247_v25, %v2201_v19 }
 0x115   :  { %v611_v45 = vadd.f32 %v2250_v37, %v2204_v30 }
 0x116   :  { %v2205_v46 = vpop.f32.mrb[16].mxu0 }
 0x117   :  { %v2251_v48 = vpop.f32.mrb[16].mxu1  ;;  %v2206_v49 = vpop.f32.mrb[17].mxu0 }
 0x118   :  { %v2207_v50 = vadd.f32 %v2206_v49, %v2205_v46  ;;  %v2252_v51 = vpop.f32.mrb[17].mxu1  ;;  %v2208_v52 = vpop.f32.mrb[18].mxu0 }
 0x119   :  { %v2253_v53 = vadd.f32 %v2252_v51, %v2251_v48  ;;  %v2209_v54 = vpop.f32.mrb[19].mxu0  ;;  %v2254_v55 = vpop.f32.mrb[18].mxu1 }
 0x11a   :  { %v2255_v56 = vpop.f32.mrb[19].mxu1 }
 0x11b   :  { %v616_v57 = vadd.f32 %v2253_v53, %v2207_v50 }
 0x11e   :  { %v655_v58 = vpop.f32.mrb[20].mxu0 }
 0x11f   :  { %v3574_v59 = vadd.f32 %v655_v58, %v3550_v61  ;;  %v2579_v60 = vpop.f32.mrb[21].mxu0  ;;  %v2282_v62 = vpop.f32.mrb[20].mxu1 }
 0x120   :  { %v658_v32 = vpop.f32.mrb[22].mxu0  ;;  %v2283_v33 = vpop.f32.mrb[21].mxu1 }
 0x121   :  { %v3577_v35 = vadd.f32 %v658_v32, %v3558_v63  ;;  %v2580_v36 = vpop.f32.mrb[23].mxu0  ;;  %v2284_v38 = vadd.f32 %v2283_v33, %v2282_v62  ;;  %v2285_v0 = vpop.f32.mrb[22].mxu1 }
 0x122   :  { %v2286_v39 = vpop.f32.mrb[23].mxu1 }
 0x123   :  { %v3579_v41 = vadd.f32 %v2286_v39, %v2285_v0 }
 0x126   :  { %v663_v2 = vpop.f32.mrb[24].mxu0 }
 0x127   :  { %v3581_v42 = vadd.f32 %v663_v2, %v592_v14  ;;  %v2583_v4 = vpop.f32.mrb[25].mxu0  ;;  %v2288_v6 = vpop.f32.mrb[24].mxu1 }
 0x128   :  { %v666_v61 = vpop.f32.mrb[26].mxu0  ;;  %v2289_v8 = vpop.f32.mrb[25].mxu1  ;;  %v3620_v4 = vld [vmem:[%s3879_s6] ss:$0 sm:$0xff] }
 0x129   :  { %v3583_v10 = vadd.f32 %v666_v61, %v595_v16  ;;  %v2584_v12 = vpop.f32.mrb[27].mxu0  ;;  %v3585_v1 = vadd.f32 %v2289_v8, %v2288_v6  ;;  %v2291_v63 = vpop.f32.mrb[26].mxu1 }
 0x12a   :  { %v2292_v43 = vpop.f32.mrb[27].mxu1 }
 0x12b   :  { %v3587_v18 = vadd.f32 %v2292_v43, %v2291_v63 }
 0x12e   :  { %v671_v20 = vpop.f32.mrb[28].mxu0 }
 0x12f   :  { %v3589_v44 = vadd.f32 %v671_v20, %v600_v34  ;;  %v2587_v47 = vpop.f32.mrb[29].mxu0  ;;  %v2294_v22 = vpop.f32.mrb[28].mxu1 }
 0x130   :  { %v674_v14 = vpop.f32.mrb[30].mxu0  ;;  %v2295_v24 = vpop.f32.mrb[29].mxu1 }
 0x131   :  { %v3591_v26 = vadd.f32 %v674_v14, %v603_v11  ;;  %v2588_v28 = vpop.f32.mrb[31].mxu0  ;;  %v3593_v3 = vadd.f32 %v2295_v24, %v2294_v22  ;;  %v2297_v16 = vpop.f32.mrb[30].mxu1 }
 0x132   :  { %v2298_v5 = vpop.f32.mrb[31].mxu1 }
 0x133   :  { %v3595_v7 = vadd.f32 %v2298_v5, %v2297_v16 }
 0x136   :  { %v679_v9 = vpop.f32.mrb[32].mxu0 }
 0x137   :  { %v3597_v13 = vadd.f32 %v679_v9, %v608_v40  ;;  %v2591_v15 = vpop.f32.mrb[33].mxu0  ;;  %v2300_v17 = vpop.f32.mrb[32].mxu1 }
 0x138   :  { %v682_v34 = vpop.f32.mrb[34].mxu0  ;;  %v2301_v19 = vpop.f32.mrb[33].mxu1 }
 0x139   :  { %v3599_v21 = vadd.f32 %v682_v34, %v611_v45  ;;  %v2592_v23 = vpop.f32.mrb[35].mxu0  ;;  %v3601_v25 = vadd.f32 %v2301_v19, %v2300_v17  ;;  %v2303_v11 = vpop.f32.mrb[34].mxu1 }
 0x13a   :  { %v2304_v27 = vpop.f32.mrb[35].mxu1 }
 0x13b   :  { %v3603_v29 = vadd.f32 %v2304_v27, %v2303_v11 }
 0x13e   :  { %v687_v30 = vpop.f32.mrb[36].mxu0 }
 0x13f   :  { %v3605_v31 = vadd.f32 %v687_v30, %v616_v57  ;;  %v2595_v37 = vpop.f32.mrb[37].mxu0  ;;  %v2306_v46 = vpop.f32.mrb[36].mxu1  ;;  %v3612_v57 = vld [vmem:[%s3878_s5] ss:$0 sm:$0xff] }
 0x140   :  { %v690_v40 = vpop.f32.mrb[38].mxu0  ;;  %v2307_v48 = vpop.f32.mrb[37].mxu1  ;;  %v699_v0 = vmul.f32 %v3612_v57, %v3574_v59  ;;  %v700_v6 = vmul.f32 %v3612_v57, %v3577_v35  ;;  %v701_v17 = vmul.f32 %v3612_v57, %v3581_v42  ;;  %v702_v11 = vmul.f32 %v3612_v57, %v3583_v10 }
 0x141   :  { %v2596_v49 = vpop.f32.mrb[39].mxu0  ;;  %v3607_v50 = vadd.f32 %v2307_v48, %v2306_v46  ;;  %v2309_v51 = vpop.f32.mrb[38].mxu1 }
 0x142   :  { %v2310_v45 = vpop.f32.mrb[39].mxu1  ;;  %v3626_v43 = vadd.f32 %v3620_v4, %v699_v0  ;;  %v3633_v14 = vadd.f32 %v3620_v4, %v700_v6 }
 0x143   :  { %v3657_v45 = vadd.f32 %v3620_v4, %v702_v11 }
 0x146   :  { %v2328_v52 = vpop.f32.mrb[40].mxu0 }
 0x147   :  { %v2329_v53 = vpop.f32.mrb[41].mxu0  ;;  %v1060_v54 = vpop.f32.mrb[40].mxu1 }
 0x148   :  { %v2330_v55 = vadd.f32 %v2329_v53, %v2328_v52  ;;  %v2331_v56 = vpop.f32.mrb[42].mxu0  ;;  %v2607_v58 = vpop.f32.mrb[41].mxu1 }
 0x149   :  { %v2332_v60 = vpop.f32.mrb[43].mxu0  ;;  %v1063_v62 = vpop.f32.mrb[42].mxu1 }
 0x14a   :  { %v2333_v32 = vadd.f32 %v2332_v60, %v2331_v56  ;;  %v989_v33 = vadd.f32 %v2330_v55, %v2284_v38  ;;  %v2608_v36 = vpop.f32.mrb[43].mxu1  ;;  %v703_v60 = vmul.f32 %v3612_v57, %v3589_v44 }
 0x14b   :  { %v704_v36 = vmul.f32 %v3612_v57, %v3591_v26 }
 0x14c   :  { %v1061_v39 = vadd.f32 %v1060_v54, %v989_v33  ;;  %v992_v2 = vadd.f32 %v2333_v32, %v3579_v41 }
 0x14e   :  { %v1098_v61 = vmul.f32 %v3612_v57, %v1061_v39  ;;  %v1064_v8 = vadd.f32 %v1063_v62, %v992_v2  ;;  %v2334_v12 = vpop.f32.mrb[44].mxu0 }
 0x14f   :  { %v2335_v38 = vpop.f32.mrb[45].mxu0  ;;  %v1068_v63 = vpop.f32.mrb[44].mxu1 }
 0x150   :  { %v3629_v59 = vadd.f32 %v3620_v4, %v1098_v61  ;;  %v1099_v41 = vmul.f32 %v3612_v57, %v1064_v8  ;;  %v2336_v20 = vadd.f32 %v2335_v38, %v2334_v12  ;;  %v2337_v47 = vpop.f32.mrb[46].mxu0  ;;  %v2611_v22 = vpop.f32.mrb[45].mxu1 }
 0x151   :  { %v2338_v35 = vpop.f32.mrb[47].mxu0  ;;  %v1071_v24 = vpop.f32.mrb[46].mxu1 }
 0x152   :  { %v1116_v28 = vmax.f32 %v3626_v43, %v3629_v59  ;;  %v3638_v16 = vadd.f32 %v3620_v4, %v1099_v41  ;;  %v2339_v5 = vadd.f32 %v2338_v35, %v2337_v47  ;;  %v997_v9 = vadd.f32 %v2336_v20, %v3585_v1  ;;  %v2612_v15 = vpop.f32.mrb[47].mxu1 }
 0x153   :  { %v3650_v1 = vadd.f32 %v3620_v4, %v701_v17 }
 0x154   :  { %v1117_v34 = vmax.f32 %v3633_v14, %v3638_v16  ;;  %v1069_v19 = vadd.f32 %v1068_v63, %v997_v9  ;;  %v1000_v23 = vadd.f32 %v2339_v5, %v3587_v18  ;;  %v3681_v63 = vadd.f32 %v3620_v4, %v704_v36 }
 0x155   :  { %v705_v5 = vmul.f32 %v3612_v57, %v3597_v13 }
 0x156   :  { %v1100_v27 = vmul.f32 %v3612_v57, %v1069_v19  ;;  %v1072_v30 = vadd.f32 %v1071_v24, %v1000_v23  ;;  %v2340_v37 = vpop.f32.mrb[48].mxu0  ;;  %v706_v19 = vmul.f32 %v3612_v57, %v3599_v21 }
 0x157   :  { %v2341_v46 = vpop.f32.mrb[49].mxu0  ;;  %v1076_v40 = vpop.f32.mrb[48].mxu1 }
 0x158   :  { %v3653_v42 = vadd.f32 %v3620_v4, %v1100_v27  ;;  %v1101_v48 = vmul.f32 %v3612_v57, %v1072_v30  ;;  %v2342_v49 = vadd.f32 %v2341_v46, %v2340_v37  ;;  %v2343_v51 = vpop.f32.mrb[50].mxu0  ;;  %v2615_v18 = vpop.f32.mrb[49].mxu1  ;;  %v3705_v21 = vadd.f32 %v3620_v4, %v706_v19 }
 0x159   :  { %v2344_v10 = vpop.f32.mrb[51].mxu0  ;;  %v1079_v52 = vpop.f32.mrb[50].mxu1 }
 0x15a   :  { %v1118_v53 = vmax.f32 %v3650_v1, %v3653_v42  ;;  %v3662_v54 = vadd.f32 %v3620_v4, %v1101_v48  ;;  %v2345_v55 = vadd.f32 %v2344_v10, %v2343_v51  ;;  %v1005_v56 = vadd.f32 %v2342_v49, %v3593_v3  ;;  %v2616_v58 = vpop.f32.mrb[51].mxu1 }
 0x15b   :  { %v3674_v3 = vadd.f32 %v3620_v4, %v703_v60 }
 0x15c   :  { %v1119_v62 = vmax.f32 %v3657_v45, %v3662_v54  ;;  %v1077_v32 = vadd.f32 %v1076_v40, %v1005_v56  ;;  %v1008_v33 = vadd.f32 %v2345_v55, %v3595_v7  ;;  %v707_v56 = vmul.f32 %v3612_v57, %v3605_v31 }
 0x15e   :  { %v1102_v0 = vmul.f32 %v3612_v57, %v1077_v32  ;;  %v1080_v39 = vadd.f32 %v1079_v52, %v1008_v33  ;;  %v2346_v2 = vpop.f32.mrb[52].mxu0 }
 0x15f   :  { %v2347_v6 = vpop.f32.mrb[53].mxu0  ;;  %v1084_v61 = vpop.f32.mrb[52].mxu1 }
 0x160   :  { %v3677_v44 = vadd.f32 %v3620_v4, %v1102_v0  ;;  %v1103_v8 = vmul.f32 %v3612_v57, %v1080_v39  ;;  %v2348_v12 = vadd.f32 %v2347_v6, %v2346_v2  ;;  %v2349_v38 = vpop.f32.mrb[54].mxu0  ;;  %v2619_v7 = vpop.f32.mrb[53].mxu1  ;;  %v3719_v39 = vadd.f32 %v3620_v4, %v707_v56 }
 0x161   :  { %v2350_v26 = vpop.f32.mrb[55].mxu0  ;;  %v1087_v41 = vpop.f32.mrb[54].mxu1 }
 0x162   :  { %v1120_v20 = vmax.f32 %v3674_v3, %v3677_v44  ;;  %v3686_v47 = vadd.f32 %v3620_v4, %v1103_v8  ;;  %v2351_v22 = vadd.f32 %v2350_v26, %v2349_v38  ;;  %v1013_v35 = vadd.f32 %v2348_v12, %v3601_v25  ;;  %v2620_v24 = vpop.f32.mrb[55].mxu1 }
 0x163   :  { %v3698_v25 = vadd.f32 %v3620_v4, %v705_v5 }
 0x164   :  { %v1121_v9 = vmax.f32 %v3681_v63, %v3686_v47  ;;  %v1085_v15 = vadd.f32 %v1084_v61, %v1013_v35  ;;  %v1016_v17 = vadd.f32 %v2351_v22, %v3603_v29 }
 0x166   :  { %v1104_v23 = vmul.f32 %v3612_v57, %v1085_v15  ;;  %v1088_v11 = vadd.f32 %v1087_v41, %v1016_v17  ;;  %v2352_v27 = vpop.f32.mrb[56].mxu0 }
 0x167   :  { %v2353_v30 = vpop.f32.mrb[57].mxu0  ;;  %v1092_v37 = vpop.f32.mrb[56].mxu1 }
 0x168   :  { %v3701_v13 = vadd.f32 %v3620_v4, %v1104_v23  ;;  %v1105_v46 = vmul.f32 %v3612_v57, %v1088_v11  ;;  %v2354_v40 = vadd.f32 %v2353_v30, %v2352_v27  ;;  %v2355_v48 = vpop.f32.mrb[58].mxu0  ;;  %v2623_v29 = vpop.f32.mrb[57].mxu1 }
 0x169   :  { %v2356_v49 = vpop.f32.mrb[59].mxu0  ;;  %v1095_v51 = vpop.f32.mrb[58].mxu1 }
 0x16a   :  { %v1122_v18 = vmax.f32 %v3698_v25, %v3701_v13  ;;  %v3710_v10 = vadd.f32 %v3620_v4, %v1105_v46  ;;  %v1021_v52 = vadd.f32 %v2354_v40, %v3607_v50  ;;  %v2624_v55 = vpop.f32.mrb[59].mxu1 }
 0x16c   :  { %v1123_v58 = vmax.f32 %v3705_v21, %v3710_v10  ;;  %v1093_v60 = vadd.f32 %v1092_v37, %v1021_v52 }
 0x16e   :  { %v1106_v32 = vmul.f32 %v3612_v57, %v1093_v60  ;;  %v2383_v33 = vpop.f32.mrb[60].mxu0 }
 0x16f   :  { %v2429_v36 = vpop.f32.mrb[60].mxu1  ;;  %v2384_v0 = vpop.f32.mrb[61].mxu0 }
 0x170   :  { %v3722_v2 = vadd.f32 %v3620_v4, %v1106_v32  ;;  %v2385_v50 = vadd.f32 %v2384_v0, %v2383_v33  ;;  %v2430_v6 = vpop.f32.mrb[61].mxu1  ;;  %v2386_v61 = vpop.f32.mrb[62].mxu0 }
 0x171   :  { %v2431_v8 = vadd.f32 %v2430_v6, %v2429_v36  ;;  %v2432_v31 = vpop.f32.mrb[62].mxu1  ;;  %v2387_v12 = vpop.f32.mrb[63].mxu0 }
 0x172   :  { %v2388_v7 = vadd.f32 %v2387_v12, %v2386_v61  ;;  %v2433_v26 = vpop.f32.mrb[63].mxu1 }
 0x173   :  { %v2434_v41 = vadd.f32 %v2433_v26, %v2432_v31  ;;  %v1391_v22 = vadd.f32 %v2431_v8, %v2385_v50 }
 0x175   :  { %v1394_v35 = vadd.f32 %v2434_v41, %v2388_v7 }
 0x176   :  { %v2389_v24 = vpop.f32.mrb[64].mxu0 }
 0x177   :  { %v2435_v5 = vpop.f32.mrb[64].mxu1  ;;  %v2390_v15 = vpop.f32.mrb[65].mxu0 }
 0x178   :  { %v2391_v17 = vadd.f32 %v2390_v15, %v2389_v24  ;;  %v2436_v19 = vpop.f32.mrb[65].mxu1  ;;  %v2392_v23 = vpop.f32.mrb[66].mxu0 }
 0x179   :  { %v2437_v11 = vadd.f32 %v2436_v19, %v2435_v5  ;;  %v2438_v27 = vpop.f32.mrb[66].mxu1  ;;  %v2393_v30 = vpop.f32.mrb[67].mxu0 }
 0x17a   :  { %v2394_v37 = vadd.f32 %v2393_v30, %v2392_v23  ;;  %v2439_v46 = vpop.f32.mrb[67].mxu1 }
 0x17b   :  { %v2440_v40 = vadd.f32 %v2439_v46, %v2438_v27  ;;  %v1399_v48 = vadd.f32 %v2437_v11, %v2391_v17 }
 0x17d   :  { %v1402_v29 = vadd.f32 %v2440_v40, %v2394_v37 }
 0x17e   :  { %v2395_v49 = vpop.f32.mrb[68].mxu0 }
 0x17f   :  { %v2441_v51 = vpop.f32.mrb[68].mxu1  ;;  %v2396_v52 = vpop.f32.mrb[69].mxu0 }
 0x180   :  { %v2397_v55 = vadd.f32 %v2396_v52, %v2395_v49  ;;  %v2442_v56 = vpop.f32.mrb[69].mxu1  ;;  %v2398_v60 = vpop.f32.mrb[70].mxu0 }
 0x181   :  { %v2443_v32 = vadd.f32 %v2442_v56, %v2441_v51  ;;  %v2444_v33 = vpop.f32.mrb[70].mxu1  ;;  %v2399_v36 = vpop.f32.mrb[71].mxu0 }
 0x182   :  { %v2400_v0 = vadd.f32 %v2399_v36, %v2398_v60  ;;  %v2445_v50 = vpop.f32.mrb[71].mxu1 }
 0x183   :  { %v2446_v6 = vadd.f32 %v2445_v50, %v2444_v33  ;;  %v1407_v61 = vadd.f32 %v2443_v32, %v2397_v55 }
 0x185   :  { %v1410_v8 = vadd.f32 %v2446_v6, %v2400_v0 }
 0x186   :  { %v2401_v31 = vpop.f32.mrb[72].mxu0 }
 0x187   :  { %v2447_v12 = vpop.f32.mrb[72].mxu1  ;;  %v2402_v7 = vpop.f32.mrb[73].mxu0 }
 0x188   :  { %v2403_v26 = vadd.f32 %v2402_v7, %v2401_v31  ;;  %v2448_v41 = vpop.f32.mrb[73].mxu1  ;;  %v2404_v24 = vpop.f32.mrb[74].mxu0 }
 0x189   :  { %v2449_v5 = vadd.f32 %v2448_v41, %v2447_v12  ;;  %v2450_v15 = vpop.f32.mrb[74].mxu1  ;;  %v2405_v17 = vpop.f32.mrb[75].mxu0 }
 0x18a   :  { %v2406_v19 = vadd.f32 %v2405_v17, %v2404_v24  ;;  %v2451_v23 = vpop.f32.mrb[75].mxu1 }
 0x18b   :  { %v2452_v11 = vadd.f32 %v2451_v23, %v2450_v15  ;;  %v1415_v27 = vadd.f32 %v2449_v5, %v2403_v26 }
 0x18d   :  { %v1418_v30 = vadd.f32 %v2452_v11, %v2406_v19 }
 0x18e   :  { %v2407_v37 = vpop.f32.mrb[76].mxu0 }
 0x18f   :  { %v2453_v46 = vpop.f32.mrb[76].mxu1  ;;  %v2408_v40 = vpop.f32.mrb[77].mxu0 }
 0x190   :  { %v2409_v49 = vadd.f32 %v2408_v40, %v2407_v37  ;;  %v2454_v51 = vpop.f32.mrb[77].mxu1  ;;  %v2410_v52 = vpop.f32.mrb[78].mxu0 }
 0x191   :  { %v2455_v55 = vadd.f32 %v2454_v51, %v2453_v46  ;;  %v2411_v56 = vpop.f32.mrb[79].mxu0  ;;  %v2456_v60 = vpop.f32.mrb[78].mxu1 }
 0x192   :  { %v2457_v32 = vpop.f32.mrb[79].mxu1 }
 0x193   :  { %v1423_v33 = vadd.f32 %v2455_v55, %v2409_v49 }
 0x196   :  { %v1462_v36 = vpop.f32.mrb[80].mxu0 }
 0x197   :  { %v3726_v0 = vadd.f32 %v1462_v36, %v1391_v22  ;;  %v2635_v50 = vpop.f32.mrb[81].mxu0  ;;  %v2484_v6 = vpop.f32.mrb[80].mxu1 }
 0x198   :  { %v1465_v31 = vpop.f32.mrb[82].mxu0  ;;  %v2485_v12 = vpop.f32.mrb[81].mxu1 }
 0x199   :  { %v3728_v7 = vadd.f32 %v1465_v31, %v1394_v35  ;;  %v2636_v26 = vpop.f32.mrb[83].mxu0  ;;  %v2486_v41 = vadd.f32 %v2485_v12, %v2484_v6  ;;  %v2487_v24 = vpop.f32.mrb[82].mxu1 }
 0x19a   :  { %v2488_v5 = vpop.f32.mrb[83].mxu1 }
 0x19b   :  { %v2489_v15 = vadd.f32 %v2488_v5, %v2487_v24 }
 0x19e   :  { %v1470_v17 = vpop.f32.mrb[84].mxu0 }
 0x19f   :  { %v3730_v19 = vadd.f32 %v1470_v17, %v1399_v48  ;;  %v2639_v23 = vpop.f32.mrb[85].mxu0  ;;  %v2490_v11 = vpop.f32.mrb[84].mxu1 }
 0x1a0   :  { %v1473_v37 = vpop.f32.mrb[86].mxu0  ;;  %v2491_v46 = vpop.f32.mrb[85].mxu1 }
 0x1a1   :  { %v3732_v22 = vadd.f32 %v1473_v37, %v1402_v29  ;;  %v2640_v40 = vpop.f32.mrb[87].mxu0  ;;  %v3734_v49 = vadd.f32 %v2491_v46, %v2490_v11  ;;  %v2493_v51 = vpop.f32.mrb[86].mxu1 }
 0x1a2   :  { %v2494_v35 = vpop.f32.mrb[87].mxu1 }
 0x1a3   :  { %v3736_v52 = vadd.f32 %v2494_v35, %v2493_v51 }
 0x1a6   :  { %v1478_v55 = vpop.f32.mrb[88].mxu0 }
 0x1a7   :  { %v3738_v56 = vadd.f32 %v1478_v55, %v1407_v61  ;;  %v2643_v60 = vpop.f32.mrb[89].mxu0  ;;  %v2496_v32 = vpop.f32.mrb[88].mxu1 }
 0x1a8   :  { %v1481_v48 = vpop.f32.mrb[90].mxu0  ;;  %v2497_v36 = vpop.f32.mrb[89].mxu1 }
 0x1a9   :  { %v3740_v50 = vadd.f32 %v1481_v48, %v1410_v8  ;;  %v2644_v6 = vpop.f32.mrb[91].mxu0  ;;  %v3742_v31 = vadd.f32 %v2497_v36, %v2496_v32  ;;  %v2499_v29 = vpop.f32.mrb[90].mxu1 }
 0x1aa   :  { %v2500_v12 = vpop.f32.mrb[91].mxu1 }
 0x1ab   :  { %v3744_v26 = vadd.f32 %v2500_v12, %v2499_v29 }
 0x1ae   :  { %v1486_v24 = vpop.f32.mrb[92].mxu0 }
 0x1af   :  { %v3746_v5 = vadd.f32 %v1486_v24, %v1415_v27  ;;  %v2647_v17 = vpop.f32.mrb[93].mxu0  ;;  %v2502_v23 = vpop.f32.mrb[92].mxu1 }
 0x1b0   :  { %v1489_v61 = vpop.f32.mrb[94].mxu0  ;;  %v2503_v11 = vpop.f32.mrb[93].mxu1 }
 0x1b1   :  { %v3748_v37 = vadd.f32 %v1489_v61, %v1418_v30  ;;  %v2648_v46 = vpop.f32.mrb[95].mxu0  ;;  %v3750_v40 = vadd.f32 %v2503_v11, %v2502_v23  ;;  %v2505_v8 = vpop.f32.mrb[94].mxu1 }
 0x1b2   :  { %v2506_v51 = vpop.f32.mrb[95].mxu1 }
 0x1b3   :  { %v3752_v35 = vadd.f32 %v2506_v51, %v2505_v8 }
 0x1b6   :  { %v1494_v55 = vpop.f32.mrb[96].mxu0 }
 0x1b7   :  { %v3754_v60 = vadd.f32 %v1494_v55, %v1423_v33  ;;  %v2651_v32 = vpop.f32.mrb[97].mxu0  ;;  %v2508_v48 = vpop.f32.mrb[96].mxu1 }
 0x1b8   :  { %v1497_v27 = vpop.f32.mrb[98].mxu0  ;;  %v2509_v36 = vpop.f32.mrb[97].mxu1  ;;  %v1500_v32 = vmul.f32 %v3612_v57, %v3726_v0 }
 0x1b9   :  { %v2652_v6 = vpop.f32.mrb[99].mxu0  ;;  %v3756_v29 = vadd.f32 %v2509_v36, %v2508_v48  ;;  %v2511_v12 = vpop.f32.mrb[98].mxu1  ;;  %v1501_v48 = vmul.f32 %v3612_v57, %v3728_v7 }
 0x1ba   :  { %v2512_v30 = vpop.f32.mrb[99].mxu1 }
 0x1be   :  { %v2530_v24 = vpop.f32.mrb[100].mxu0 }
 0x1bf   :  { %v2531_v17 = vpop.f32.mrb[101].mxu0  ;;  %v1855_v23 = vpop.f32.mrb[100].mxu1 }
 0x1c0   :  { %v2532_v61 = vadd.f32 %v2531_v17, %v2530_v24  ;;  %v2533_v11 = vpop.f32.mrb[102].mxu0  ;;  %v2663_v46 = vpop.f32.mrb[101].mxu1 }
 0x1c1   :  { %v2534_v8 = vpop.f32.mrb[103].mxu0  ;;  %v1858_v51 = vpop.f32.mrb[102].mxu1  ;;  %v1509_v46 = vadd.f32 %v3620_v4, %v1500_v32  ;;  %v1502_v32 = vmul.f32 %v3612_v57, %v3730_v19 }
 0x1c2   :  { %v2535_v38 = vadd.f32 %v2534_v8, %v2533_v11  ;;  %v1784_v33 = vadd.f32 %v2532_v61, %v2486_v41  ;;  %v2664_v55 = vpop.f32.mrb[103].mxu1 }
 0x1c4   :  { %v1856_v27 = vadd.f32 %v1855_v23, %v1784_v33  ;;  %v1787_v6 = vadd.f32 %v2535_v38, %v2489_v15  ;;  %v1510_v38 = vadd.f32 %v3620_v4, %v1501_v48 }
 0x1c6   :  { %v1893_v36 = vmul.f32 %v3612_v57, %v1856_v27  ;;  %v1859_v12 = vadd.f32 %v1858_v51, %v1787_v6  ;;  %v2536_v30 = vpop.f32.mrb[104].mxu0 }
 0x1c7   :  { %v2537_v24 = vpop.f32.mrb[105].mxu0  ;;  %v1863_v17 = vpop.f32.mrb[104].mxu1 }
 0x1c8   :  { %v1902_v11 = vadd.f32 %v3620_v4, %v1893_v36  ;;  %v1894_v41 = vmul.f32 %v3612_v57, %v1859_v12  ;;  %v2538_v61 = vadd.f32 %v2537_v24, %v2536_v30  ;;  %v2539_v8 = vpop.f32.mrb[106].mxu0  ;;  %v2667_v0 = vpop.f32.mrb[105].mxu1  ;;  %v1503_v30 = vmul.f32 %v3612_v57, %v3732_v22 }
 0x1c9   :  { %v2540_v15 = vpop.f32.mrb[107].mxu0  ;;  %v1866_v23 = vpop.f32.mrb[106].mxu1 }
 0x1ca   :  { %v1911_v7 = vmax.f32 %v1509_v46, %v1902_v11  ;;  %v1903_v33 = vadd.f32 %v3620_v4, %v1894_v41  ;;  %v2541_v51 = vadd.f32 %v2540_v15, %v2539_v8  ;;  %v1792_v55 = vadd.f32 %v2538_v61, %v3734_v49  ;;  %v2668_v27 = vpop.f32.mrb[107].mxu1 }
 0x1cb   :  { %v1511_v41 = vadd.f32 %v3620_v4, %v1502_v32  ;;  %v1512_v14 = vadd.f32 %v3620_v4, %v1503_v30 }
 0x1cc   :  { %v1920_v6 = vmax.f32 %v1116_v28, %v1911_v7  ;;  %v1912_v36 = vmax.f32 %v1510_v38, %v1903_v33  ;;  %v1864_v12 = vadd.f32 %v1863_v17, %v1792_v55  ;;  %v1795_v48 = vadd.f32 %v2541_v51, %v3736_v52 }
 0x1ce   :  { %v1929_v24 = vmax.f32 %v1920_v6, 0.0  ;;  %v1921_v49 = vmax.f32 %v1117_v34, %v1912_v36  ;;  %v1895_v46 = vmul.f32 %v3612_v57, %v1864_v12  ;;  %v1867_v11 = vadd.f32 %v1866_v23, %v1795_v48  ;;  %v2542_v19 = vpop.f32.mrb[108].mxu0 }
 0x1cf   :  { %v2543_v43 = vpop.f32.mrb[109].mxu0  ;;  %v1871_v59 = vpop.f32.mrb[108].mxu1  ;;  %v1504_v6 = vmul.f32 %v3612_v57, %v3738_v56  ;;  %v1505_v36 = vmul.f32 %v3612_v57, %v3740_v50 }
 0x1d0   :  { %v2156_v28 = vpack.c.bf16 %v1929_v24, %v1929_v24  ;;  %v1930_v17 = vmax.f32 %v1921_v49, 0.0  ;;  %v1904_v52 = vadd.f32 %v3620_v4, %v1895_v46  ;;  %v1896_v22 = vmul.f32 %v3612_v57, %v1867_v11  ;;  %v2545_v61 = vpop.f32.mrb[110].mxu0  ;;  %v2671_v8 = vpop.f32.mrb[109].mxu1 }
 0x1d1   :  { %v2544_v16 = vadd.f32 %v2543_v43, %v2542_v19  ;;  %v2546_v34 = vpop.f32.mrb[111].mxu0  ;;  %v1874_v0 = vpop.f32.mrb[110].mxu1  ;;  %v1513_v50 = vadd.f32 %v3620_v4, %v1504_v6 }
 0x1d2   :  { %1976 = vst.msk [vmem:[%s3880_s7] sm:$0xf] %vm1975_vm2, %v2156_v28  ;;  %v2157_v38 = vpack.c.bf16 %v1930_v17, %v1930_v17  ;;  %v1913_v15 = vmax.f32 %v1511_v41, %v1904_v52  ;;  %v1905_v23 = vadd.f32 %v3620_v4, %v1896_v22  ;;  %v2547_v7 = vadd.f32 %v2546_v34, %v2545_v61  ;;  %v2672_v33 = vpop.f32.mrb[111].mxu1 }
 0x1d3   :  { %v1800_v51 = vadd.f32 %v2544_v16, %v3742_v31  ;;  %v1514_v41 = vadd.f32 %v3620_v4, %v1505_v36  ;;  %v1506_v22 = vmul.f32 %v3612_v57, %v3746_v5  ;;  %v1507_v34 = vmul.f32 %v3612_v57, %v3748_v37 }
 0x1d4   :  { %1977 = vst.msk [vmem:[%s3880_s7 + $0x4] sm:$0xf] %vm1975_vm2, %v2157_v38  ;;  %v1922_v55 = vmax.f32 %v1118_v53, %v1913_v15  ;;  %v1914_v27 = vmax.f32 %v1512_v14, %v1905_v23  ;;  %v1803_v32 = vadd.f32 %v2547_v7, %v3744_v26 }
 0x1d5   :  { %v1872_v12 = vadd.f32 %v1871_v59, %v1800_v51  ;;  %v1515_v23 = vadd.f32 %v3620_v4, %v1506_v22  ;;  %v1516_v63 = vadd.f32 %v3620_v4, %v1507_v34 }
 0x1d6   :  { %v1931_v31 = vmax.f32 %v1922_v55, 0.0  ;;  %v1923_v48 = vmax.f32 %v1119_v62, %v1914_v27  ;;  %v1875_v30 = vadd.f32 %v1874_v0, %v1803_v32  ;;  %v2548_v24 = vpop.f32.mrb[112].mxu0 }
 0x1d7   :  { %v1897_v1 = vmul.f32 %v3612_v57, %v1872_v12  ;;  %v2549_v42 = vpop.f32.mrb[113].mxu0  ;;  %v1879_v53 = vpop.f32.mrb[112].mxu1 }
 0x1d8   :  { %v2158_v49 = vpack.c.bf16 %v1931_v31, %v1931_v31  ;;  %v1932_v26 = vmax.f32 %v1923_v48, 0.0  ;;  %v1898_v46 = vmul.f32 %v3612_v57, %v1875_v30  ;;  %v2550_v56 = vadd.f32 %v2549_v42, %v2548_v24  ;;  %v2551_v11 = vpop.f32.mrb[114].mxu0  ;;  %v2675_v19 = vpop.f32.mrb[113].mxu1 }
 0x1d9   :  { %v1906_v45 = vadd.f32 %v3620_v4, %v1897_v1  ;;  %v2552_v54 = vpop.f32.mrb[115].mxu0  ;;  %v1882_v62 = vpop.f32.mrb[114].mxu1  ;;  %v1508_v48 = vmul.f32 %v3612_v57, %v3754_v60 }
 0x1da   :  { %1978 = vst.msk [vmem:[%s3880_s7 + $0x8] sm:$0xf] %vm1975_vm2, %v2158_v49  ;;  %v2159_v43 = vpack.c.bf16 %v1932_v26, %v1932_v26  ;;  %v1907_v59 = vadd.f32 %v3620_v4, %v1898_v46  ;;  %v2553_v28 = vadd.f32 %v2552_v54, %v2551_v11  ;;  %v1808_v17 = vadd.f32 %v2550_v56, %v3750_v40  ;;  %v2676_v52 = vpop.f32.mrb[115].mxu1 }
 0x1db   :  { %v1915_v61 = vmax.f32 %v1513_v50, %v1906_v45  ;;  %v1517_v60 = vadd.f32 %v3620_v4, %v1508_v48 }
 0x1dc   :  { %1979 = vst.msk [vmem:[%s3880_s7 + $0xc] sm:$0xf] %vm1975_vm2, %v2159_v43  ;;  %v1916_v8 = vmax.f32 %v1514_v41, %v1907_v59  ;;  %v1880_v14 = vadd.f32 %v1879_v53, %v1808_v17  ;;  %v1811_v16 = vadd.f32 %v2553_v28, %v3752_v35 }
 0x1dd   :  { %v1924_v40 = vmax.f32 %v1120_v20, %v1915_v61 }
 0x1de   :  { %v1925_v5 = vmax.f32 %v1121_v9, %v1916_v8  ;;  %v1899_v0 = vmul.f32 %v3612_v57, %v1880_v14  ;;  %v1883_v38 = vadd.f32 %v1882_v62, %v1811_v16  ;;  %v2554_v15 = vpop.f32.mrb[116].mxu0 }
 0x1df   :  { %v1933_v7 = vmax.f32 %v1924_v40, 0.0  ;;  %v2555_v33 = vpop.f32.mrb[117].mxu0  ;;  %v1887_v35 = vpop.f32.mrb[116].mxu1 }
 0x1e0   :  { %v1934_v51 = vmax.f32 %v1925_v5, 0.0  ;;  %v1908_v37 = vadd.f32 %v3620_v4, %v1899_v0  ;;  %v1900_v55 = vmul.f32 %v3612_v57, %v1883_v38  ;;  %v2556_v3 = vadd.f32 %v2555_v33, %v2554_v15  ;;  %v2557_v44 = vpop.f32.mrb[118].mxu0  ;;  %v2679_v20 = vpop.f32.mrb[117].mxu1 }
 0x1e1   :  { %v2160_v47 = vpack.c.bf16 %v1933_v7, %v1933_v7  ;;  %v2558_v9 = vpop.f32.mrb[119].mxu0  ;;  %v1890_v27 = vpop.f32.mrb[118].mxu1 }
 0x1e2   :  { %v2161_v32 = vpack.c.bf16 %v1934_v51, %v1934_v51  ;;  %v1917_v6 = vmax.f32 %v1515_v23, %v1908_v37  ;;  %v1909_v36 = vadd.f32 %v3620_v4, %v1900_v55  ;;  %v1816_v12 = vadd.f32 %v2556_v3, %v3756_v29  ;;  %v2680_v31 = vpop.f32.mrb[119].mxu1 }
 0x1e3   :  { %1980 = vst.msk [vmem:[%s3880_s7 + $0x10] sm:$0xf] %vm1975_vm2, %v2160_v47 }
 0x1e4   :  { %1981 = vst.msk [vmem:[%s3880_s7 + $0x14] sm:$0xf] %vm1975_vm2, %v2161_v32  ;;  %v1926_v30 = vmax.f32 %v1122_v18, %v1917_v6  ;;  %v1918_v24 = vmax.f32 %v1516_v63, %v1909_v36  ;;  %v1888_v29 = vadd.f32 %v1887_v35, %v1816_v12 }
 0x1e6   :  { %v1935_v1 = vmax.f32 %v1926_v30, 0.0  ;;  %v1927_v42 = vmax.f32 %v1123_v58, %v1918_v24  ;;  %v1901_v53 = vmul.f32 %v3612_v57, %v1888_v29  ;;  %v3881_v57 = vmax.f32 %v3719_v39, %v3722_v2 }
 0x1e8   :  { %v2162_v49 = vpack.c.bf16 %v1935_v1, %v1935_v1  ;;  %v1936_v26 = vmax.f32 %v1927_v42, 0.0  ;;  %v1910_v46 = vadd.f32 %v3620_v4, %v1901_v53 }
 0x1ea   :  { %1982 = vst.msk [vmem:[%s3880_s7 + $0x18] sm:$0xf] %vm1975_vm2, %v2162_v49  ;;  %v2163_v25 = vpack.c.bf16 %v1936_v26, %v1936_v26  ;;  %v1919_v13 = vmax.f32 %v1517_v60, %v1910_v46 }
 0x1ec   :  { %1983 = vst.msk [vmem:[%s3880_s7 + $0x1c] sm:$0xf] %vm1975_vm2, %v2163_v25  ;;  %v1928_v21 = vmax.f32 %v3881_v57, %v1919_v13 }
 0x1ee   :  { %v1937_v18 = vmax.f32 %v1928_v21, 0.0 }
 0x1f0   :  { %v2164_v10 = vpack.c.bf16 %v1937_v18, %v1937_v18 }
 0x1f2   :  { %1984 = vst.msk [vmem:[%s3880_s7 + $0x20] sm:$0xf] %vm1975_vm2, %v2164_v10 }

// kernel: forward.7
= control target key start
LH: loop header
LB: loop body
LE: loop exit
PB: predicated region body
PF: predicated region fallthrough
CT: control target
= control target key end

     0   :  { %v482_v2 = vmov 0.0   ;;  %v74_v10 = vlaneseq  ;;  %v483_v14 = vmov 1966171168   ;;  %s618_s0 = inlined_call_operand.vmem [shape: bf16[2,256], index: 0, kind: input, shape index: {}]   ;;  %s619_s1 = inlined_call_operand.vmem [shape: bf16[256,128], index: 1, kind: input, shape index: {}]   ;;  %s620_s2 = inlined_call_operand.vmem [shape: f32[1,128], index: 2, kind: input, shape index: {}]   ;;  %s621_s3 = inlined_call_operand.vmem [shape: bf16[128,24], index: 3, kind: input, shape index: {}]   ;;  %s622_s4 = inlined_call_operand.vmem [shape: f32[1,24], index: 4, kind: input, shape index: {}]   ;;  %s623_s5 = inlined_call_operand.hbm [shape: f32[2,24], index: 5, kind: output, shape index: {}]  }
   0x1   :  { %v434_v0 = vld [vmem:[%s619_s1 + $0x40] sm:$0xff]   ;;  %410 = vmatprep.subr.bf16.mxu1 %v482_v2  ;;  %v436_v3 = vld [vmem:[%s619_s1 + $0x48] sm:$0xff]   ;;  %v438_v5 = vld [vmem:[%s619_s1 + $0x50] sm:$0xff]   ;;  %v72_v15 = vunpack.c.l.s4 %v483_v14 }
   0x2   :  { %v435_v1 = vld [vmem:[%s619_s1] sm:$0xff]   ;;  %379 = vmatprep.subr.bf16.mxu0 %v434_v0  ;;  %v437_v4 = vld [vmem:[%s619_s1 + $0x8] sm:$0xff]   ;;  %v439_v6 = vld [vmem:[%s619_s1 + $0x10] sm:$0xff]   ;;  %v75_v16 = vshrl.u32 %v74_v10, 7 }
   0x3   :  { %380 = vmatpush3.bf16.msra.mxu0 %v435_v1  ;;  %v440_v7 = vld [vmem:[%s619_s1 + $0x58] sm:$0xff]   ;;  %v442_v9 = vld [vmem:[%s619_s1 + $0x60] sm:$0xff]   ;;  %v444_v12 = vld [vmem:[%s619_s1 + $0x68] sm:$0xff]   ;;  %v73_v20 = vunpack.c.0.s8 %v72_v15 }
   0x4   :  { %381 = vmatprep.subr.bf16.mxu0 %v436_v3  ;;  %v441_v8 = vld [vmem:[%s619_s1 + $0x18] sm:$0xff]   ;;  %v443_v11 = vld [vmem:[%s619_s1 + $0x20] sm:$0xff]   ;;  %v445_v18 = vld [vmem:[%s619_s1 + $0x28] sm:$0xff]  }
   0x5   :  { %v353_v13 = vld.sshfl [vmem:[%s618_s0] sm:$0x11 pattern:$0x75316420]  ;;  %v451_v21 = vld [vmem:[%s621_s3 + $0x8] sm:$0xff]   ;;  %v446_v22 = vld [vmem:[%s619_s1 + $0x70] sm:$0xff]   ;;  %v76_v24 = vsub.s32 %v73_v20, %v75_v16 }
   0x6   :  { %v450_v17 = vld [vmem:[%s621_s3] sm:$0xff]   ;;  %v70_v19 = vcombine.high %v353_v13, %v353_v13  ;;  %v447_v23 = vld [vmem:[%s619_s1 + $0x30] sm:$0xff]   ;;  %v448_v27 = vld [vmem:[%s619_s1 + $0x78] sm:$0xff]  }
   0x7   :  { %382 = vmatpush3.bf16.msra.mxu0 %v437_v4  ;;  %411 = vmatpush3.bf16.msra.mxu1 %v450_v17  ;;  %v452_v25 = vld [vmem:[%s621_s3 + $0x10] sm:$0xff]  }
   0x8   :  { %383 = vmatprep.subr.bf16.mxu0 %v438_v5  ;;  %412 = vmatprep.subr.bf16.mxu1 %v482_v2  ;;  %v84_v26 = vrot.slane %v70_v19, %v76_v24 }
   0xb   :  { %384 = vmatpush3.bf16.msra.mxu0 %v439_v6  ;;  %413 = vmatpush3.bf16.msra.mxu1 %v451_v21 }
   0xc   :  { %385 = vmatprep.subr.bf16.mxu0 %v440_v7  ;;  %414 = vmatprep.subr.bf16.mxu1 %v482_v2 }
   0xf   :  { %386 = vmatpush3.bf16.msra.mxu0 %v441_v8 }
  0x10   :  { %387 = vmatprep.subr.bf16.mxu0 %v442_v9 }
  0x13   :  { %388 = vmatpush3.bf16.msra.mxu0 %v443_v11 }
  0x14   :  { %389 = vmatprep.subr.bf16.mxu0 %v444_v12 }
  0x17   :  { %390 = vmatpush3.bf16.msra.mxu0 %v445_v18 }
  0x18   :  { %391 = vmatprep.subr.bf16.mxu0 %v446_v22 }
  0x19   :  { %10 = vsyncpa [#allocation3], 0  ;;  %215 = vmatprep.mubr.bf16.mxu0 %v84_v26  ;;  %v449_v28 = vld [vmem:[%s619_s1 + $0x38] sm:$0xff]   ;;  %415 = vmatpush3.bf16.msra.mxu1 %v452_v25  ;;  %v77_v30 = vrot.slane %v353_v13, %v76_v24  ;;  %v454_v31 = vld [vmem:[%s621_s3 + $0x20] sm:$0xff]   ;;  %vm484_vm0 = vmmov 0   ;;  %vm336_vm1 = vcmask 189440  }
  0x1a   :  { %v453_v29 = vld [vmem:[%s621_s3 + $0x18] sm:$0xff]   ;;  %416 = vmatprep.subr.bf16.mxu1 %v482_v2  ;;  %v455_v32 = vld [vmem:[%s621_s3 + $0x28] sm:$0xff]   ;;  %v456_v33 = vld [vmem:[%s621_s3 + $0x30] sm:$0xff]   ;;  %426 = vmatprep.mubr.msk.bf16.mxu1 %vm484_vm0, %v482_v2 }
  0x1b   :  { %392 = vmatpush3.bf16.msra.mxu0 %v447_v23  ;;  %v457_v34 = vld [vmem:[%s621_s3 + $0x38] sm:$0xff]   ;;  %v352_v36 = vld [vmem:[%s620_s2] ss:$0 sm:$0xff]  ;;  %s485_s3 = smov [#allocation2]  }
  0x1c   :  { %393 = vmatprep.subr.bf16.mxu0 %v448_v27  ;;  %v370_v44 = vld [vmem:[%s622_s4] ss:$0 sm:$0xff]  ;;  %s344_s20 = sshll.u32 %s485_s3, 4  ;;  %s345_s20 = int_to_ptr.vmem [resolvable:$true] %s344_s20 }
  0x1d   :  { %417 = vmatpush3.bf16.msra.mxu1 %v453_v29  ;;  %s458_s2 = scalar_lea.vmem %s345_s20, 32  ;;  %p463_p1 = scmp.lt.s32.totalorder %s345_s20, %s345_s20 }
  0x1e   :  { %418 = vmatprep.subr.bf16.mxu1 %v482_v2  ;;  %p459_p0 = scmp.ne.s32.totalorder %s345_s20, %s458_s2  ;;  %p464_p2 = scmp.lt.s32.totalorder %s458_s2, %s458_s2 }
  0x1f   :  { %394 = vmatpush3.bf16.msra.mxu0 %v449_v28 }
  0x20   :  { %p465_p3 = por %p464_p2, %p463_p1 }
  0x21   :  { %419 = vmatpush3.bf16.msra.mxu1 %v454_v31 }
  0x22   :  { %216 = vmatmul.mubr.bf16.vlgmr.msra.gmra.mrb[0].mxu0 %v77_v30  ;;  %420 = vmatprep.subr.bf16.mxu1 %v482_v2  ;;  %p466_p4 = pnand %p465_p3, %p459_p0 }
  0x25   :  { %421 = vmatpush3.bf16.msra.mxu1 %v455_v32 }
  0x26   :  { %422 = vmatprep.subr.bf16.mxu1 %v482_v2 }
  0x29   :  { %423 = vmatpush3.bf16.msra.mxu1 %v456_v33 }
  0x2a   :  { %424 = vmatprep.subr.bf16.mxu1 %v482_v2 }
  0x2d   :  { %425 = vmatpush3.bf16.msra.mxu1 %v457_v34 }
  0xf5   :  { %v395_v35 = vpop.f32.mrb[0].mxu0 }
  0xf6   :  { %v396_v37 = vpop.f32.mrb[1].mxu0 }
  0xf7   :  { %v397_v38 = vadd.f32 %v396_v37, %v395_v35  ;;  %v398_v39 = vpop.f32.mrb[2].mxu0 }
  0xf8   :  { %v399_v40 = vpop.f32.mrb[3].mxu0 }
  0xf9   :  { %v218_v41 = vadd.f32 %v397_v38, %v352_v36 }
  0xfb   :  { %v223_v42 = vmax.f32 %v218_v41, 0.0 }
  0xfd   :  { %v224_v43 = vpack.c.bf16 %v223_v42, %v223_v42 }
  0xff   :  { %427 = vmatmul.mubr.bf16.vlgmr.msra.gmra.mrb[0].mxu1 %v224_v43 }
 0x1d2   :  { %v330_v45 = vpop.f32.mrb[0].mxu1 }
 0x1d3   :  { %v331_v46 = vadd.f32 %v370_v44, %v330_v45  ;;  %v428_v47 = vpop.f32.mrb[1].mxu1 }
 0x1d4   :  { %v333_v48 = vpop.f32.mrb[2].mxu1 }
 0x1d5   :  { %v429_v49 = vpop.f32.mrb[3].mxu1  ;;  %337 = vst.msk [vmem:[#allocation2] sm:$0x3] %vm336_vm1, %v331_v46 }
 0x1d6   :  { %469 = shalt.err (!%p466_p4)
}
 0x1d7   :  { %s470_s4 = scalar_lea.hbm %s623_s5, 32 }
 0x1d8   :  { %p471_p5 = scmp.ne.s32.totalorder %s623_s5, %s470_s4  ;;  %p474_p6 = scmp.lt.u32.totalorder %s470_s4, %s623_s5 }
 0x1da   :  { %p476_p7 = pnand %p474_p6, %p471_p5 }
 0x1dc   :  { %479 = shalt.err (!%p476_p7)
}
 0x1dd   :  { %347 = dma.vmem_to_hbm [thread:$0]  %s345_s20, 32, %s623_s5, [#allocation3]  }
 0x1de   :  { %480 = dma.done.wait [#allocation3], 32  }
 0x1df   :  { %481 = vsyncadd [#allocation3], 4294967264 }
 0x1e0   :  { %351 = vsyncpa [#allocation3], 1 }

// kernel: forward.6
= control target key start
LH: loop header
LB: loop body
LE: loop exit
PB: predicated region body
PF: predicated region fallthrough
CT: control target
= control target key end

     0   :  { %v1285_v36 = vmov 0.0   ;;  %vm1286_vm0 = vmmov 0   ;;  %vm337_vm1 = vcmask 523264   ;;  %vm915_vm2 = vcmask 519168   ;;  %s1724_s4 = inlined_call_operand.vmem [shape: bf16[576,64], index: 4, kind: input, shape index: {}]   ;;  %s1725_s0 = inlined_call_operand.vmem [shape: bf16[8,576], index: 0, kind: input, shape index: {}]   ;;  %s1726_s1 = inlined_call_operand.vmem [shape: bf16[8,576], index: 1, kind: input, shape index: {}]   ;;  %s1727_s2 = inlined_call_operand.vmem [shape: bf16[8,576], index: 2, kind: input, shape index: {}]   ;;  %s1728_s3 = inlined_call_operand.vmem [shape: bf16[8,576], index: 3, kind: input, shape index: {}]   ;;  %s1729_s5 = inlined_call_operand.vmem [shape: f32[1,64], index: 5, kind: input, shape index: {}]   ;;  %s1730_s6 = inlined_call_operand.vmem [shape: f32[1,64], index: 6, kind: input, shape index: {}]   ;;  %s1731_s7 = inlined_call_operand.vmem [shape: bf16[8,64], index: 7, kind: output, shape index: {}]  }
   0x1   :  { %v1330_v0 = vld [vmem:[%s1724_s4 + $0x40] sm:$0xff]   ;;  %v1353_v4 = vld [vmem:[%s1724_s4 + $0x48] sm:$0xff]   ;;  %v1377_v8 = vld [vmem:[%s1724_s4 + $0x50] sm:$0xff]  }
   0x2   :  { %v1335_v1 = vld [vmem:[%s1724_s4 + $0xc0] sm:$0xff]   ;;  %983 = vmatprep.subr.bf16.mxu0 %v1330_v0  ;;  %v1359_v5 = vld [vmem:[%s1724_s4 + $0xc8] sm:$0xff]   ;;  %v1383_v9 = vld [vmem:[%s1724_s4 + $0xd0] sm:$0xff]  }
   0x3   :  { %v1341_v2 = vld [vmem:[%s1724_s4] sm:$0xff]   ;;  %1005 = vmatprep.subr.bf16.mxu1 %v1335_v1  ;;  %v1365_v6 = vld [vmem:[%s1724_s4 + $0x8] sm:$0xff]   ;;  %v1389_v10 = vld [vmem:[%s1724_s4 + $0x10] sm:$0xff]  }
   0x4   :  { %v1347_v3 = vld [vmem:[%s1724_s4 + $0x80] sm:$0xff]   ;;  %984 = vmatpush3.bf16.msra.mxu0 %v1341_v2  ;;  %v1371_v7 = vld [vmem:[%s1724_s4 + $0x88] sm:$0xff]   ;;  %v1395_v11 = vld [vmem:[%s1724_s4 + $0x90] sm:$0xff]  }
   0x5   :  { %1006 = vmatpush3.bf16.msra.mxu1 %v1347_v3  ;;  %985 = vmatprep.subr.bf16.mxu0 %v1353_v4  ;;  %v1401_v12 = vld [vmem:[%s1724_s4 + $0x58] sm:$0xff]   ;;  %v1425_v16 = vld [vmem:[%s1724_s4 + $0x60] sm:$0xff]   ;;  %v1449_v20 = vld [vmem:[%s1724_s4 + $0x68] sm:$0xff]  }
   0x6   :  { %1007 = vmatprep.subr.bf16.mxu1 %v1359_v5  ;;  %v1407_v13 = vld [vmem:[%s1724_s4 + $0xd8] sm:$0xff]   ;;  %v1431_v17 = vld [vmem:[%s1724_s4 + $0xe0] sm:$0xff]   ;;  %v1455_v21 = vld [vmem:[%s1724_s4 + $0xe8] sm:$0xff]  }
   0x7   :  { %v1413_v14 = vld [vmem:[%s1724_s4 + $0x18] sm:$0xff]   ;;  %v1437_v18 = vld [vmem:[%s1724_s4 + $0x20] sm:$0xff]   ;;  %v1461_v22 = vld [vmem:[%s1724_s4 + $0x28] sm:$0xff]  }
   0x8   :  { %986 = vmatpush3.bf16.msra.mxu0 %v1365_v6  ;;  %v1419_v15 = vld [vmem:[%s1724_s4 + $0x98] sm:$0xff]   ;;  %v1443_v19 = vld [vmem:[%s1724_s4 + $0xa0] sm:$0xff]   ;;  %v1467_v23 = vld [vmem:[%s1724_s4 + $0xa8] sm:$0xff]  }
   0x9   :  { %1008 = vmatpush3.bf16.msra.mxu1 %v1371_v7  ;;  %987 = vmatprep.subr.bf16.mxu0 %v1377_v8  ;;  %v1473_v24 = vld [vmem:[%s1724_s4 + $0x70] sm:$0xff]   ;;  %v1497_v28 = vld [vmem:[%s1724_s4 + $0x78] sm:$0xff]   ;;  %v101_v32 = vld [vmem:[%s1725_s0] sm:$0xff] }
   0xa   :  { %1009 = vmatprep.subr.bf16.mxu1 %v1383_v9  ;;  %v1479_v25 = vld [vmem:[%s1724_s4 + $0xf0] sm:$0xff]   ;;  %v1503_v29 = vld [vmem:[%s1724_s4 + $0xf8] sm:$0xff]   ;;  %v921_v33 = vcombine.low %v101_v32, %v101_v32  ;;  %v922_v34 = vcombine.high %v101_v32, %v101_v32  ;;  %v102_v35 = vld [vmem:[%s1725_s0 + $0x8] sm:$0xff] }
   0xb   :  { %v1485_v26 = vld [vmem:[%s1724_s4 + $0x30] sm:$0xff]   ;;  %v1509_v30 = vld [vmem:[%s1724_s4 + $0x38] sm:$0xff]   ;;  %v923_v37 = vcombine.low %v102_v35, %v102_v35  ;;  %v924_v38 = vcombine.high %v102_v35, %v102_v35  ;;  %v1530_v39 = vld [vmem:[%s1724_s4 + $0x100] sm:$0xff]  }
   0xc   :  { %988 = vmatpush3.bf16.msra.mxu0 %v1389_v10  ;;  %v1491_v27 = vld [vmem:[%s1724_s4 + $0xb0] sm:$0xff]   ;;  %v1515_v31 = vld [vmem:[%s1724_s4 + $0xb8] sm:$0xff]   ;;  %373 = vmatprep.mubr.bf16.mxu0 %v922_v34  ;;  %v1536_v40 = vld [vmem:[%s1724_s4 + $0x108] sm:$0xff]  }
   0xd   :  { %1010 = vmatpush3.bf16.msra.mxu1 %v1395_v11  ;;  %989 = vmatprep.subr.bf16.mxu0 %v1401_v12  ;;  %v475_v41 = vld [vmem:[%s1726_s1] sm:$0xff]  ;;  %v1550_v43 = vld [vmem:[%s1724_s4 + $0x110] sm:$0xff]   ;;  %v1559_v44 = vld [vmem:[%s1724_s4 + $0x118] sm:$0xff]  }
   0xe   :  { %1011 = vmatprep.subr.bf16.mxu1 %v1407_v13  ;;  %413 = vmatprep.mubr.bf16.mxu1 %v924_v38  ;;  %v966_v42 = vcombine.high %v475_v41, %v475_v41  ;;  %v476_v45 = vld [vmem:[%s1726_s1 + $0x8] sm:$0xff]  ;;  %v1263_v46 = vld [vmem:[%s1725_s0 + $0x10] ss:$0 sps:$4 sm:$0xff]   ;;  %v965_v48 = vcombine.low %v475_v41, %v475_v41  ;;  %v621_v50 = vld [vmem:[%s1727_s2] sm:$0xff] }
   0xf   :  { %v968_v47 = vcombine.high %v476_v45, %v476_v45  ;;  %v967_v49 = vcombine.low %v476_v45, %v476_v45  ;;  %v1272_v51 = vld [vmem:[%s1726_s1 + $0x10] ss:$0 sps:$4 sm:$0xff]   ;;  %v622_v52 = vld [vmem:[%s1727_s2 + $0x8] sm:$0xff]  ;;  %v972_v53 = vcombine.high %v621_v50, %v621_v50  ;;  %v971_v55 = vcombine.low %v621_v50, %v621_v50  ;;  %v766_v57 = vld [vmem:[%s1728_s3] sm:$0xff] }
  0x10   :  { %990 = vmatpush3.bf16.msra.mxu0 %v1413_v14  ;;  %v974_v54 = vcombine.high %v622_v52, %v622_v52  ;;  %v973_v56 = vcombine.low %v622_v52, %v622_v52  ;;  %v978_v58 = vcombine.high %v766_v57, %v766_v57  ;;  %v767_v59 = vld [vmem:[%s1728_s3 + $0x8] sm:$0xff]  ;;  %v1277_v60 = vld [vmem:[%s1727_s2 + $0x10] ss:$0 sps:$4 sm:$0xff]   ;;  %v977_v62 = vcombine.low %v766_v57, %v766_v57  ;;  %v964_v35 = vld [vmem:[%s1730_s6] ss:$0 sm:$0xff] }
  0x11   :  { %1012 = vmatpush3.bf16.msra.mxu1 %v1419_v15  ;;  %991 = vmatprep.subr.bf16.mxu0 %v1425_v16  ;;  %v980_v61 = vcombine.high %v767_v59, %v767_v59  ;;  %v979_v63 = vcombine.low %v767_v59, %v767_v59 }
  0x12   :  { %1013 = vmatprep.subr.bf16.mxu1 %v1431_v17 }
  0x14   :  { %992 = vmatpush3.bf16.msra.mxu0 %v1437_v18 }
  0x15   :  { %1014 = vmatpush3.bf16.msra.mxu1 %v1443_v19  ;;  %993 = vmatprep.subr.bf16.mxu0 %v1449_v20 }
  0x16   :  { %1015 = vmatprep.subr.bf16.mxu1 %v1455_v21 }
  0x18   :  { %994 = vmatpush3.bf16.msra.mxu0 %v1461_v22 }
  0x19   :  { %1016 = vmatpush3.bf16.msra.mxu1 %v1467_v23  ;;  %995 = vmatprep.subr.bf16.mxu0 %v1473_v24 }
  0x1a   :  { %1017 = vmatprep.subr.bf16.mxu1 %v1479_v25 }
  0x1c   :  { %996 = vmatpush3.bf16.msra.mxu0 %v1485_v26 }
  0x1d   :  { %1018 = vmatpush3.bf16.msra.mxu1 %v1491_v27  ;;  %997 = vmatprep.subr.bf16.mxu0 %v1497_v28 }
  0x1e   :  { %1019 = vmatprep.subr.bf16.mxu1 %v1503_v29 }
  0x20   :  { %998 = vmatpush3.bf16.msra.mxu0 %v1509_v30 }
  0x21   :  { %1020 = vmatpush3.bf16.msra.mxu1 %v1515_v31  ;;  %1179 = vmatprep.subr.bf16.mxu0 %v1285_v36 }
  0x22   :  { %1032 = vmatprep.subr.bf16.mxu1 %v1330_v0 }
  0x23   :  { %374 = vmatmul.mubr.bf16.vlgmr.msra.gmra.mrb[0].mxu0 %v921_v33 }
  0x24   :  { %414 = vmatmul.mubr.bf16.vlgmr.msra.gmra.mrb[0].mxu1 %v923_v37  ;;  %1180 = vmatpush3.bf16.msra.mxu0 %v1530_v39 }
  0x25   :  { %1033 = vmatpush3.bf16.msra.mxu1 %v1341_v2  ;;  %1181 = vmatprep.subr.bf16.mxu0 %v1285_v36 }
  0x26   :  { %1034 = vmatprep.subr.bf16.mxu1 %v1353_v4  ;;  %1187 = vmatprep.mubr.msk.bf16.mxu0 %vm1286_vm0, %v1285_v36 }
  0x27   :  { %530 = vmatprep.mubr.bf16.mxu1 %v966_v42 }
  0x28   :  { %1182 = vmatpush3.bf16.msra.mxu0 %v1536_v40 }
  0x29   :  { %1035 = vmatpush3.bf16.msra.mxu1 %v1365_v6  ;;  %1183 = vmatprep.subr.bf16.mxu0 %v1285_v36 }
  0x2a   :  { %1036 = vmatprep.subr.bf16.mxu1 %v1377_v8 }
  0x2c   :  { %1184 = vmatpush3.bf16.msra.mxu0 %v1550_v43 }
  0x2d   :  { %1037 = vmatpush3.bf16.msra.mxu1 %v1389_v10  ;;  %1185 = vmatprep.subr.bf16.mxu0 %v1285_v36 }
  0x2e   :  { %1038 = vmatprep.subr.bf16.mxu1 %v1401_v12 }
  0x30   :  { %1186 = vmatpush3.bf16.msra.mxu0 %v1559_v44 }
  0x31   :  { %1039 = vmatpush3.bf16.msra.mxu1 %v1413_v14  ;;  %1054 = vmatprep.subr.bf16.mxu0 %v1335_v1 }
  0x32   :  { %1040 = vmatprep.subr.bf16.mxu1 %v1425_v16 }
  0x33   :  { %1188 = vmatmul.mubr.msk.bf16.vlgmr.msra.gmra.mrb[4].mxu0 %vm337_vm1, %v1263_v46 }
  0x34   :  { %1055 = vmatpush3.bf16.msra.mxu0 %v1347_v3  ;;  %570 = vmatprep.mubr.bf16.mxu0 %v968_v47 }
  0x35   :  { %1041 = vmatpush3.bf16.msra.mxu1 %v1437_v18  ;;  %1056 = vmatprep.subr.bf16.mxu0 %v1359_v5 }
  0x36   :  { %1042 = vmatprep.subr.bf16.mxu1 %v1449_v20 }
  0x38   :  { %1057 = vmatpush3.bf16.msra.mxu0 %v1371_v7 }
  0x39   :  { %1043 = vmatpush3.bf16.msra.mxu1 %v1461_v22  ;;  %1058 = vmatprep.subr.bf16.mxu0 %v1383_v9 }
  0x3a   :  { %1044 = vmatprep.subr.bf16.mxu1 %v1473_v24 }
  0x3c   :  { %1059 = vmatpush3.bf16.msra.mxu0 %v1395_v11 }
  0x3d   :  { %1045 = vmatpush3.bf16.msra.mxu1 %v1485_v26  ;;  %1060 = vmatprep.subr.bf16.mxu0 %v1407_v13 }
  0x3e   :  { %1046 = vmatprep.subr.bf16.mxu1 %v1497_v28 }
  0x40   :  { %1061 = vmatpush3.bf16.msra.mxu0 %v1419_v15 }
  0x41   :  { %1047 = vmatpush3.bf16.msra.mxu1 %v1509_v30  ;;  %1062 = vmatprep.subr.bf16.mxu0 %v1431_v17 }
  0x42   :  { %1191 = vmatprep.subr.bf16.mxu1 %v1285_v36 }
  0x44   :  { %531 = vmatmul.mubr.bf16.vlgmr.msra.gmra.mrb[4].mxu1 %v965_v48  ;;  %1063 = vmatpush3.bf16.msra.mxu0 %v1443_v19 }
  0x45   :  { %1192 = vmatpush3.bf16.msra.mxu1 %v1530_v39  ;;  %1064 = vmatprep.subr.bf16.mxu0 %v1455_v21 }
  0x46   :  { %1193 = vmatprep.subr.bf16.mxu1 %v1285_v36  ;;  %1199 = vmatprep.mubr.msk.bf16.mxu1 %vm1286_vm0, %v1285_v36 }
  0x48   :  { %1065 = vmatpush3.bf16.msra.mxu0 %v1467_v23 }
  0x49   :  { %1194 = vmatpush3.bf16.msra.mxu1 %v1536_v40  ;;  %1066 = vmatprep.subr.bf16.mxu0 %v1479_v25 }
  0x4a   :  { %1195 = vmatprep.subr.bf16.mxu1 %v1285_v36 }
  0x4c   :  { %1067 = vmatpush3.bf16.msra.mxu0 %v1491_v27 }
  0x4d   :  { %1196 = vmatpush3.bf16.msra.mxu1 %v1550_v43  ;;  %1068 = vmatprep.subr.bf16.mxu0 %v1503_v29 }
  0x4e   :  { %1197 = vmatprep.subr.bf16.mxu1 %v1285_v36 }
  0x50   :  { %1069 = vmatpush3.bf16.msra.mxu0 %v1515_v31 }
  0x51   :  { %1198 = vmatpush3.bf16.msra.mxu1 %v1559_v44  ;;  %1081 = vmatprep.subr.bf16.mxu0 %v1330_v0 }
  0x52   :  { %1103 = vmatprep.subr.bf16.mxu1 %v1335_v1 }
  0x53   :  { %571 = vmatmul.mubr.bf16.vlgmr.msra.gmra.mrb[8].mxu0 %v967_v49 }
  0x54   :  { %1200 = vmatmul.mubr.msk.bf16.vlgmr.msra.gmra.mrb[8].mxu1 %vm337_vm1, %v1272_v51  ;;  %1082 = vmatpush3.bf16.msra.mxu0 %v1341_v2 }
  0x55   :  { %1104 = vmatpush3.bf16.msra.mxu1 %v1347_v3  ;;  %1083 = vmatprep.subr.bf16.mxu0 %v1353_v4 }
  0x56   :  { %1105 = vmatprep.subr.bf16.mxu1 %v1359_v5  ;;  %676 = vmatprep.mubr.bf16.mxu0 %v972_v53 }
  0x57   :  { %716 = vmatprep.mubr.bf16.mxu1 %v974_v54 }
  0x58   :  { %1084 = vmatpush3.bf16.msra.mxu0 %v1365_v6 }
  0x59   :  { %1106 = vmatpush3.bf16.msra.mxu1 %v1371_v7  ;;  %1085 = vmatprep.subr.bf16.mxu0 %v1377_v8 }
  0x5a   :  { %1107 = vmatprep.subr.bf16.mxu1 %v1383_v9 }
  0x5c   :  { %1086 = vmatpush3.bf16.msra.mxu0 %v1389_v10 }
  0x5d   :  { %1108 = vmatpush3.bf16.msra.mxu1 %v1395_v11  ;;  %1087 = vmatprep.subr.bf16.mxu0 %v1401_v12 }
  0x5e   :  { %1109 = vmatprep.subr.bf16.mxu1 %v1407_v13 }
  0x60   :  { %1088 = vmatpush3.bf16.msra.mxu0 %v1413_v14 }
  0x61   :  { %1110 = vmatpush3.bf16.msra.mxu1 %v1419_v15  ;;  %1089 = vmatprep.subr.bf16.mxu0 %v1425_v16 }
  0x62   :  { %1111 = vmatprep.subr.bf16.mxu1 %v1431_v17 }
  0x64   :  { %1090 = vmatpush3.bf16.msra.mxu0 %v1437_v18 }
  0x65   :  { %1112 = vmatpush3.bf16.msra.mxu1 %v1443_v19  ;;  %1091 = vmatprep.subr.bf16.mxu0 %v1449_v20 }
  0x66   :  { %1113 = vmatprep.subr.bf16.mxu1 %v1455_v21 }
  0x68   :  { %1092 = vmatpush3.bf16.msra.mxu0 %v1461_v22 }
  0x69   :  { %1114 = vmatpush3.bf16.msra.mxu1 %v1467_v23  ;;  %1093 = vmatprep.subr.bf16.mxu0 %v1473_v24 }
  0x6a   :  { %1115 = vmatprep.subr.bf16.mxu1 %v1479_v25 }
  0x6c   :  { %1094 = vmatpush3.bf16.msra.mxu0 %v1485_v26 }
  0x6d   :  { %1116 = vmatpush3.bf16.msra.mxu1 %v1491_v27  ;;  %1095 = vmatprep.subr.bf16.mxu0 %v1497_v28 }
  0x6e   :  { %1117 = vmatprep.subr.bf16.mxu1 %v1503_v29 }
  0x70   :  { %1096 = vmatpush3.bf16.msra.mxu0 %v1509_v30 }
  0x71   :  { %1118 = vmatpush3.bf16.msra.mxu1 %v1515_v31  ;;  %1203 = vmatprep.subr.bf16.mxu0 %v1285_v36 }
  0x72   :  { %1130 = vmatprep.subr.bf16.mxu1 %v1330_v0  ;;  %v1282_v0 = vld [vmem:[%s1728_s3 + $0x10] ss:$0 sps:$4 sm:$0xff]  }
  0x73   :  { %677 = vmatmul.mubr.bf16.vlgmr.msra.gmra.mrb[12].mxu0 %v971_v55 }
  0x74   :  { %717 = vmatmul.mubr.bf16.vlgmr.msra.gmra.mrb[12].mxu1 %v973_v56  ;;  %1204 = vmatpush3.bf16.msra.mxu0 %v1530_v39 }
  0x75   :  { %1131 = vmatpush3.bf16.msra.mxu1 %v1341_v2  ;;  %1205 = vmatprep.subr.bf16.mxu0 %v1285_v36 }
  0x76   :  { %1132 = vmatprep.subr.bf16.mxu1 %v1353_v4  ;;  %1211 = vmatprep.mubr.msk.bf16.mxu0 %vm1286_vm0, %v1285_v36 }
  0x77   :  { %821 = vmatprep.mubr.bf16.mxu1 %v978_v58 }
  0x78   :  { %1206 = vmatpush3.bf16.msra.mxu0 %v1536_v40 }
  0x79   :  { %1133 = vmatpush3.bf16.msra.mxu1 %v1365_v6  ;;  %1207 = vmatprep.subr.bf16.mxu0 %v1285_v36 }
  0x7a   :  { %1134 = vmatprep.subr.bf16.mxu1 %v1377_v8 }
  0x7c   :  { %1208 = vmatpush3.bf16.msra.mxu0 %v1550_v43 }
  0x7d   :  { %1135 = vmatpush3.bf16.msra.mxu1 %v1389_v10  ;;  %1209 = vmatprep.subr.bf16.mxu0 %v1285_v36 }
  0x7e   :  { %1136 = vmatprep.subr.bf16.mxu1 %v1401_v12 }
  0x80   :  { %1210 = vmatpush3.bf16.msra.mxu0 %v1559_v44 }
  0x81   :  { %1137 = vmatpush3.bf16.msra.mxu1 %v1413_v14  ;;  %1152 = vmatprep.subr.bf16.mxu0 %v1335_v1 }
  0x82   :  { %1138 = vmatprep.subr.bf16.mxu1 %v1425_v16 }
  0x83   :  { %1212 = vmatmul.mubr.msk.bf16.vlgmr.msra.gmra.mrb[16].mxu0 %vm337_vm1, %v1277_v60 }
  0x84   :  { %1153 = vmatpush3.bf16.msra.mxu0 %v1347_v3  ;;  %861 = vmatprep.mubr.bf16.mxu0 %v980_v61 }
  0x85   :  { %1139 = vmatpush3.bf16.msra.mxu1 %v1437_v18  ;;  %1154 = vmatprep.subr.bf16.mxu0 %v1359_v5 }
  0x86   :  { %1140 = vmatprep.subr.bf16.mxu1 %v1449_v20 }
  0x88   :  { %1155 = vmatpush3.bf16.msra.mxu0 %v1371_v7 }
  0x89   :  { %1141 = vmatpush3.bf16.msra.mxu1 %v1461_v22  ;;  %1156 = vmatprep.subr.bf16.mxu0 %v1383_v9 }
  0x8a   :  { %1142 = vmatprep.subr.bf16.mxu1 %v1473_v24 }
  0x8c   :  { %1157 = vmatpush3.bf16.msra.mxu0 %v1395_v11 }
  0x8d   :  { %1143 = vmatpush3.bf16.msra.mxu1 %v1485_v26  ;;  %1158 = vmatprep.subr.bf16.mxu0 %v1407_v13 }
  0x8e   :  { %1144 = vmatprep.subr.bf16.mxu1 %v1497_v28  ;;  %v963_v28 = vld [vmem:[%s1729_s5] ss:$0 sm:$0xff] }
  0x90   :  { %1159 = vmatpush3.bf16.msra.mxu0 %v1419_v15 }
  0x91   :  { %1145 = vmatpush3.bf16.msra.mxu1 %v1509_v30  ;;  %1160 = vmatprep.subr.bf16.mxu0 %v1431_v17 }
  0x92   :  { %1215 = vmatprep.subr.bf16.mxu1 %v1285_v36 }
  0x94   :  { %1161 = vmatpush3.bf16.msra.mxu0 %v1443_v19  ;;  %822 = vmatmul.mubr.bf16.vlgmr.msra.gmra.mrb[16].mxu1 %v977_v62 }
  0x95   :  { %1216 = vmatpush3.bf16.msra.mxu1 %v1530_v39  ;;  %1162 = vmatprep.subr.bf16.mxu0 %v1455_v21 }
  0x96   :  { %1217 = vmatprep.subr.bf16.mxu1 %v1285_v36  ;;  %1223 = vmatprep.mubr.msk.bf16.mxu1 %vm1286_vm0, %v1285_v36 }
  0x98   :  { %1163 = vmatpush3.bf16.msra.mxu0 %v1467_v23 }
  0x99   :  { %1218 = vmatpush3.bf16.msra.mxu1 %v1536_v40  ;;  %1164 = vmatprep.subr.bf16.mxu0 %v1479_v25 }
  0x9a   :  { %1219 = vmatprep.subr.bf16.mxu1 %v1285_v36 }
  0x9c   :  { %1165 = vmatpush3.bf16.msra.mxu0 %v1491_v27 }
  0x9d   :  { %1220 = vmatpush3.bf16.msra.mxu1 %v1550_v43  ;;  %1166 = vmatprep.subr.bf16.mxu0 %v1503_v29 }
  0x9e   :  { %1221 = vmatprep.subr.bf16.mxu1 %v1285_v36 }
  0xa0   :  { %1167 = vmatpush3.bf16.msra.mxu0 %v1515_v31 }
  0xa1   :  { %1222 = vmatpush3.bf16.msra.mxu1 %v1559_v44 }
  0xa3   :  { %862 = vmatmul.mubr.bf16.vlgmr.msra.gmra.mrb[20].mxu0 %v979_v63 }
  0xa4   :  { %1224 = vmatmul.mubr.msk.bf16.vlgmr.msra.gmra.mrb[20].mxu1 %vm337_vm1, %v1282_v0 }
  0xf6   :  { %v999_v1 = vpop.f32.mrb[0].mxu0 }
  0xf7   :  { %v1021_v2 = vpop.f32.mrb[0].mxu1  ;;  %v1000_v3 = vpop.f32.mrb[1].mxu0 }
  0xf8   :  { %v1001_v4 = vadd.f32 %v1000_v3, %v999_v1  ;;  %v1022_v5 = vpop.f32.mrb[1].mxu1  ;;  %v1002_v6 = vpop.f32.mrb[2].mxu0 }
  0xf9   :  { %v1023_v7 = vadd.f32 %v1022_v5, %v1021_v2  ;;  %v1003_v8 = vpop.f32.mrb[3].mxu0  ;;  %v1024_v9 = vpop.f32.mrb[2].mxu1 }
  0xfa   :  { %v1025_v10 = vpop.f32.mrb[3].mxu1 }
  0xfb   :  { %v416_v11 = vadd.f32 %v1023_v7, %v1001_v4 }
 0x106   :  { %v455_v12 = vpop.f32.mrb[4].mxu0 }
 0x107   :  { %v456_v13 = vadd.f32 %v455_v12, %v416_v11  ;;  %v1189_v14 = vpop.f32.mrb[5].mxu0 }
 0x108   :  { %v458_v15 = vpop.f32.mrb[6].mxu0 }
 0x109   :  { %v1190_v16 = vpop.f32.mrb[7].mxu0  ;;  %v467_v33 = vmul.f32 %v963_v28, %v456_v13 }
 0x10b   :  { %v474_v37 = vadd.f32 %v964_v35, %v467_v33 }
 0x117   :  { %v1048_v17 = vpop.f32.mrb[4].mxu1 }
 0x118   :  { %v1049_v18 = vpop.f32.mrb[5].mxu1 }
 0x119   :  { %v1050_v19 = vadd.f32 %v1049_v18, %v1048_v17  ;;  %v1051_v20 = vpop.f32.mrb[6].mxu1 }
 0x11a   :  { %v1052_v21 = vpop.f32.mrb[7].mxu1 }
 0x126   :  { %v1070_v22 = vpop.f32.mrb[8].mxu0 }
 0x127   :  { %v1071_v23 = vpop.f32.mrb[9].mxu0  ;;  %v612_v24 = vpop.f32.mrb[8].mxu1 }
 0x128   :  { %v1072_v25 = vadd.f32 %v1071_v23, %v1070_v22  ;;  %v1073_v26 = vpop.f32.mrb[10].mxu0  ;;  %v1201_v27 = vpop.f32.mrb[9].mxu1 }
 0x129   :  { %v1074_v29 = vpop.f32.mrb[11].mxu0  ;;  %v615_v30 = vpop.f32.mrb[10].mxu1 }
 0x12a   :  { %v573_v31 = vadd.f32 %v1072_v25, %v1050_v19  ;;  %v1202_v32 = vpop.f32.mrb[11].mxu1 }
 0x12c   :  { %v613_v34 = vadd.f32 %v612_v24, %v573_v31 }
 0x12e   :  { %v618_v36 = vmul.f32 %v963_v28, %v613_v34 }
 0x130   :  { %v619_v38 = vadd.f32 %v964_v35, %v618_v36 }
 0x132   :  { %v620_v39 = vmax.f32 %v474_v37, %v619_v38 }
 0x146   :  { %v1097_v40 = vpop.f32.mrb[12].mxu0 }
 0x147   :  { %v1119_v41 = vpop.f32.mrb[12].mxu1  ;;  %v1098_v42 = vpop.f32.mrb[13].mxu0 }
 0x148   :  { %v1099_v43 = vadd.f32 %v1098_v42, %v1097_v40  ;;  %v1120_v44 = vpop.f32.mrb[13].mxu1  ;;  %v1100_v45 = vpop.f32.mrb[14].mxu0 }
 0x149   :  { %v1121_v46 = vadd.f32 %v1120_v44, %v1119_v41  ;;  %v1101_v47 = vpop.f32.mrb[15].mxu0  ;;  %v1122_v48 = vpop.f32.mrb[14].mxu1 }
 0x14a   :  { %v1123_v49 = vpop.f32.mrb[15].mxu1 }
 0x14b   :  { %v719_v50 = vadd.f32 %v1121_v46, %v1099_v43 }
 0x156   :  { %v758_v51 = vpop.f32.mrb[16].mxu0 }
 0x157   :  { %v759_v52 = vadd.f32 %v758_v51, %v719_v50  ;;  %v1213_v53 = vpop.f32.mrb[17].mxu0 }
 0x158   :  { %v761_v54 = vpop.f32.mrb[18].mxu0 }
 0x159   :  { %v1214_v55 = vpop.f32.mrb[19].mxu0  ;;  %v764_v7 = vmul.f32 %v963_v28, %v759_v52 }
 0x15b   :  { %v765_v10 = vadd.f32 %v964_v35, %v764_v7 }
 0x167   :  { %v1146_v56 = vpop.f32.mrb[16].mxu1 }
 0x168   :  { %v1147_v57 = vpop.f32.mrb[17].mxu1 }
 0x169   :  { %v1148_v58 = vadd.f32 %v1147_v57, %v1146_v56  ;;  %v1149_v59 = vpop.f32.mrb[18].mxu1 }
 0x16a   :  { %v1150_v60 = vpop.f32.mrb[19].mxu1 }
 0x176   :  { %v1168_v61 = vpop.f32.mrb[20].mxu0 }
 0x177   :  { %v1169_v62 = vpop.f32.mrb[21].mxu0  ;;  %v903_v63 = vpop.f32.mrb[20].mxu1 }
 0x178   :  { %v1170_v0 = vadd.f32 %v1169_v62, %v1168_v61  ;;  %v1171_v1 = vpop.f32.mrb[22].mxu0  ;;  %v1225_v2 = vpop.f32.mrb[21].mxu1 }
 0x179   :  { %v1172_v3 = vpop.f32.mrb[23].mxu0  ;;  %v906_v4 = vpop.f32.mrb[22].mxu1 }
 0x17a   :  { %v864_v5 = vadd.f32 %v1170_v0, %v1148_v58  ;;  %v1226_v6 = vpop.f32.mrb[23].mxu1 }
 0x17c   :  { %v904_v8 = vadd.f32 %v903_v63, %v864_v5 }
 0x17e   :  { %v909_v9 = vmul.f32 %v963_v28, %v904_v8 }
 0x180   :  { %v910_v11 = vadd.f32 %v964_v35, %v909_v9 }
 0x182   :  { %v911_v12 = vmax.f32 %v765_v10, %v910_v11 }
 0x184   :  { %v912_v13 = vmax.f32 %v620_v39, %v911_v12 }
 0x186   :  { %v913_v14 = vmax.f32 %v912_v13, 0.0 }
 0x188   :  { %v914_v15 = vpack.c.bf16 %v913_v14, %v913_v14 }
 0x18a   :  { %916 = vst.msk [vmem:[%s1731_s7] sm:$0xf] %vm915_vm2, %v914_v15 }

</bundles_post_ra>
